<compile_context>
chip_gen: v6e
topology: v6e:2x2x1
jax: 0.10.0
libtpu: 0.0.40
codegen_flags: <defaults>
</compile_context>

<pallas_src>
import math
import functools

import jax
import jax.numpy as jnp
from jax.experimental import pallas as pl
from jax.experimental.pallas import tpu as pltpu


def _cross_attention_kernel(q_ref, k_ref, v_ref,
                            wq_ref, wk_ref, wv_ref, wfc_ref,
                            gamma_ref, beta_ref,
                            o_ref,
                            qp_scr, m_scr, l_scr, acc_scr,
                            *, n_head, d_k, d_v, eps, compute_dtype):
    kv_idx = pl.program_id(2)
    n_kv = pl.num_programs(2)

    tq = q_ref.shape[1]
    tk = k_ref.shape[1]
    d_model = q_ref.shape[2]
    inv_temp = 1.0 / math.sqrt(d_k)

    # ---- first KV step for this (batch, q-tile): LayerNorm + Q projection,
    #      reset online-softmax state (scratch persists across the KV axis).
    @pl.when(kv_idx == 0)
    def _init():
        q = q_ref[0]                                          # (tq, D) f32
        mean = jnp.mean(q, axis=-1, keepdims=True)
        cen = q - mean
        var = jnp.mean(cen * cen, axis=-1, keepdims=True)
        q_ln = cen * jax.lax.rsqrt(var + eps)                 # f32 LN math
        q_ln = q_ln * gamma_ref[...] + beta_ref[...]          # (tq, D)

        q_b = jnp.broadcast_to(q_ln.astype(compute_dtype)[None],
                               (n_head, tq, d_model))         # (H, tq, D)
        qp = jnp.einsum('hqd,hdk->hqk', q_b, wq_ref[...],
                        preferred_element_type=jnp.float32)   # (H, tq, d_k)
        qp_scr[...] = (qp * inv_temp).astype(compute_dtype)

        m_scr[...] = jnp.full(m_scr.shape, -jnp.inf, dtype=jnp.float32)
        l_scr[...] = jnp.zeros(l_scr.shape, dtype=jnp.float32)
        acc_scr[...] = jnp.zeros(acc_scr.shape, dtype=jnp.float32)

    # ---- project the current KV tile for all heads (batched, no slicing) ----
    k_b = jnp.broadcast_to(k_ref[0].astype(compute_dtype)[None],
                           (n_head, tk, d_model))
    v_b = jnp.broadcast_to(v_ref[0].astype(compute_dtype)[None],
                           (n_head, tk, d_model))
    kp = jnp.einsum('hkd,hdc->hkc', k_b, wk_ref[...],
                    preferred_element_type=jnp.float32).astype(compute_dtype)
    vp = jnp.einsum('hkd,hdc->hkc', v_b, wv_ref[...],
                    preferred_element_type=jnp.float32).astype(compute_dtype)

    # ---- scores (contraction on last axes of both operands; no k.T) ----
    s = jnp.einsum('hqc,hkc->hqk', qp_scr[...], kp,
                   preferred_element_type=jnp.float32)        # (H, tq, tk) f32

    # ---- online softmax update (all statistics in f32) ----
    m_prev = m_scr[...]
    m_new = jnp.maximum(m_prev, jnp.max(s, axis=-1, keepdims=True))
    alpha = jnp.exp(m_prev - m_new)
    p = jnp.exp(s - m_new)
    l_scr[...] = alpha * l_scr[...] + jnp.sum(p, axis=-1, keepdims=True)
    acc_scr[...] = alpha * acc_scr[...] + jnp.einsum(
        'hqk,hkv->hqv', p.astype(compute_dtype), vp,
        preferred_element_type=jnp.float32)
    m_scr[...] = m_new

    # ---- last KV step: normalize, per-head fc fold, residual add, store ----
    @pl.when(kv_idx == n_kv - 1)
    def _finalize():
        inv_l = pl.reciprocal(l_scr[...], approx=True)        # EUP reciprocal
        acc_n = (acc_scr[...] * inv_l).astype(compute_dtype)  # (H, tq, d_v)
        out_h = jnp.einsum('hqv,hvd->hqd', acc_n, wfc_ref[...],
                           preferred_element_type=jnp.float32)  # (H, tq, D)
        out = jnp.sum(out_h, axis=0) + q_ref[0]               # + residual (f32)
        o_ref[0] = out.astype(o_ref.dtype)


def cross_attention(q, k, v, params, *, n_head, d_k, d_v, eps=1e-6,
                    q_tile=None, kv_tile=None, compute_dtype=jnp.bfloat16):
    """q, k, v: (B, C, emb_dim, L) with L == d_model. Returns same shape."""
    B, C, emb_dim, L = q.shape
    d_model = L
    N = C * emb_dim

    if q_tile is None:
        q_tile = N if N <= 256 else 256
    if kv_tile is None:
        kv_tile = N if N <= 512 else 512
    q_tile = min(q_tile, N)
    kv_tile = min(kv_tile, N)
    assert N % q_tile == 0 and N % kv_tile == 0, "N must be divisible by tiles"

    wq, wk, wv, wfc, gamma, beta = params
    # Pre-reshape weights to head-batched layouts (host side, free):
    #   wq/wk/wv: (D, H*dk) -> (H, D, dk);  wfc: (H*dv, D) -> (H, dv, D)
    wq_h = wq.reshape(d_model, n_head, d_k).transpose(1, 0, 2).astype(compute_dtype)
    wk_h = wk.reshape(d_model, n_head, d_k).transpose(1, 0, 2).astype(compute_dtype)
    wv_h = wv.reshape(d_model, n_head, d_v).transpose(1, 0, 2).astype(compute_dtype)
    wfc_h = wfc.reshape(n_head, d_v, d_model).astype(compute_dtype)
    gamma2 = gamma.reshape(1, d_model).astype(jnp.float32)
    beta2 = beta.reshape(1, d_model).astype(jnp.float32)

    q3 = q.reshape(B, N, d_model).astype(jnp.float32)
    k3 = k.reshape(B, N, d_model).astype(jnp.float32)
    v3 = v.reshape(B, N, d_model).astype(jnp.float32)

    n_q = N // q_tile
    n_kv = N // kv_tile
    grid = (B, n_q, n_kv)

    kernel = functools.partial(
        _cross_attention_kernel, n_head=n_head, d_k=d_k, d_v=d_v, eps=eps,
        compute_dtype=compute_dtype)

    # Weight / LN-param blocks have a constant block index, so Pallas only
    # DMAs them once per call (no re-fetch across grid steps).
    def full3d(arr):
        return pl.BlockSpec(arr.shape, lambda b, qi, ki: (0, 0, 0))

    def full2d(arr):
        return pl.BlockSpec(arr.shape, lambda b, qi, ki: (0, 0))

    # Advisory cost estimate for the XLA scheduler.
    flops = int(2 * B * (N * d_model * n_head * d_k
                         + n_q * N * d_model * n_head * (d_k + d_v)
                         + N * N * n_head * (d_k + d_v)
                         + N * n_head * d_v * d_model))
    transcendentals = int(B * n_head * N * N)
    w_bytes = (wq_h.size + wk_h.size + wv_h.size + wfc_h.size) * jnp.dtype(compute_dtype).itemsize
    bytes_accessed = int(4 * B * N * d_model * (2 + 2 * n_q) + w_bytes
                         + 4 * B * N * d_model)

    out3 = pl.pallas_call(
        kernel,
        out_shape=jax.ShapeDtypeStruct((B, N, d_model), jnp.float32),
        grid_spec=pltpu.PrefetchScalarGridSpec(
            num_scalar_prefetch=0,
            grid=grid,
            in_specs=[
                pl.BlockSpec((1, q_tile, d_model), lambda b, qi, ki: (b, qi, 0)),
                pl.BlockSpec((1, kv_tile, d_model), lambda b, qi, ki: (b, ki, 0)),
                pl.BlockSpec((1, kv_tile, d_model), lambda b, qi, ki: (b, ki, 0)),
                full3d(wq_h), full3d(wk_h), full3d(wv_h), full3d(wfc_h),
                full2d(gamma2), full2d(beta2),
            ],
            out_specs=pl.BlockSpec((1, q_tile, d_model),
                                   lambda b, qi, ki: (b, qi, 0)),
            scratch_shapes=[
                pltpu.VMEM((n_head, q_tile, d_k), compute_dtype),  # scaled Q proj
                pltpu.VMEM((n_head, q_tile, 1), jnp.float32),      # running max
                pltpu.VMEM((n_head, q_tile, 1), jnp.float32),      # running sum
                pltpu.VMEM((n_head, q_tile, d_v), jnp.float32),    # accumulator
            ],
        ),
        compiler_params=pltpu.CompilerParams(
            dimension_semantics=("parallel", "parallel", "arbitrary"),
            vmem_limit_bytes=48 * 1024 * 1024,   # within v7x's 64 MiB physical VMEM
        ),
        cost_estimate=pl.CostEstimate(
            flops=flops, transcendentals=transcendentals,
            bytes_accessed=bytes_accessed),
    )(q3, k3, v3, wq_h, wk_h, wv_h, wfc_h, gamma2, beta2)

    return out3.reshape(B, C, emb_dim, L)


def _reference(q, k, v, params, *, n_head, d_k, d_v, eps=1e-6):
    """Pure-JAX reference mirroring the PyTorch module (eval mode)."""
    B, C, emb_dim, L = q.shape
    d_model = L
    N = C * emb_dim
    wq, wk, wv, wfc, gamma, beta = params

    residual = q.reshape(B, N, d_model)
    x = residual
    mean = jnp.mean(x, axis=-1, keepdims=True)
    var = jnp.mean((x - mean) ** 2, axis=-1, keepdims=True)
    xn = (x - mean) / jnp.sqrt(var + eps) * gamma + beta

    qp = (xn @ wq).reshape(B, N, n_head, d_k).transpose(0, 2, 1, 3)
    kp = (k.reshape(B, N, d_model) @ wk).reshape(B, N, n_head, d_k).transpose(0, 2, 1, 3)
    vp = (v.reshape(B, N, d_model) @ wv).reshape(B, N, n_head, d_v).transpose(0, 2, 1, 3)

    attn = jax.nn.softmax((qp / math.sqrt(d_k)) @ kp.transpose(0, 1, 3, 2), axis=-1)
    o = (attn @ vp).transpose(0, 2, 1, 3).reshape(B, N, n_head * d_v)
    o = o @ wfc
    return (o + residual).reshape(B, C, emb_dim, L)


if __name__ == "__main__":
    # Small deterministic setup consistent with the module's forward:
    # base_shape = (B, C, emb_dim, L) with L == d_model.
    # N = C*emb_dim = 256, so the 128-row q/kv tiling and the online softmax
    # over multiple KV tiles are actually exercised (grid = (2, 2, 2)).
    B, C, emb_dim = 2, 8, 32
    n_head, d_k, d_v = 2, 8, 8
    d_model = 16
    L = d_model

    key = jax.random.PRNGKey(0)
    kq, kk, kv_, k1, k2, k3, k4 = jax.random.split(key, 7)

    q = jax.random.normal(kq, (B, C, emb_dim, L), jnp.float32)
    k = jax.random.normal(kk, (B, C, emb_dim, L), jnp.float32)
    v = jax.random.normal(kv_, (B, C, emb_dim, L), jnp.float32)

    # Weights stored as (in, out), i.e. W^T of the PyTorch nn.Linear weight.
    wq = 0.1 * jax.random.normal(k1, (d_model, n_head * d_k), jnp.float32)
    wk = 0.1 * jax.random.normal(k2, (d_model, n_head * d_k), jnp.float32)
    wv = 0.1 * jax.random.normal(k3, (d_model, n_head * d_v), jnp.float32)
    wfc = 0.1 * jax.random.normal(k4, (n_head * d_v, d_model), jnp.float32)
    gamma = jnp.ones((d_model,), jnp.float32)   # LayerNorm weight
    beta = jnp.zeros((d_model,), jnp.float32)   # LayerNorm bias
    params = (wq, wk, wv, wfc, gamma, beta)

    ref = _reference(q, k, v, params, n_head=n_head, d_k=d_k, d_v=d_v)

    # 1) f32-operand path: tight numerical check of the flash/head-batched kernel.
    out_f32 = cross_attention(q, k, v, params, n_head=n_head, d_k=d_k, d_v=d_v,
                              q_tile=128, kv_tile=128,
                              compute_dtype=jnp.float32)
    out_f32 = jax.block_until_ready(out_f32)
    assert out_f32.shape == (B, C, emb_dim, L)
    assert jnp.allclose(out_f32, ref, atol=2e-3, rtol=2e-3), "f32 path mismatch"

    # 2) default fast path: bf16 MXU operands, f32 accumulation / softmax stats.
    out_bf16 = cross_attention(q, k, v, params, n_head=n_head, d_k=d_k, d_v=d_v,
                               q_tile=128, kv_tile=128)
    out_bf16 = jax.block_until_ready(out_bf16)
    assert out_bf16.shape == (B, C, emb_dim, L)
    assert jnp.allclose(out_bf16, ref, atol=1e-1, rtol=1e-1), "bf16 path mismatch"

    print("KERNEL_OK")
</pallas_src>

<mosaic_0001>
module attributes {stable_mosaic.version = 11 : i64} {
  func.func @_cross_attention_kernel(%arg0: i32, %arg1: i32, %arg2: i32, %arg3: memref<1x128x16xf32, #tpu.memory_space<vmem>>, %arg4: memref<1x128x16xf32, #tpu.memory_space<vmem>>, %arg5: memref<1x128x16xf32, #tpu.memory_space<vmem>>, %arg6: memref<2x16x8xf32, #tpu.memory_space<vmem>>, %arg7: memref<2x16x8xf32, #tpu.memory_space<vmem>>, %arg8: memref<2x16x8xf32, #tpu.memory_space<vmem>>, %arg9: memref<2x8x16xf32, #tpu.memory_space<vmem>>, %arg10: memref<1x16xf32, #tpu.memory_space<vmem>>, %arg11: memref<1x16xf32, #tpu.memory_space<vmem>>, %arg12: memref<1x128x16xf32, #tpu.memory_space<vmem>>, %arg13: memref<2x128x8xf32, #tpu.memory_space<vmem>>, %arg14: memref<2x128x1xf32, #tpu.memory_space<vmem>>, %arg15: memref<2x128x1xf32, #tpu.memory_space<vmem>>, %arg16: memref<2x128x8xf32, #tpu.memory_space<vmem>>) attributes {dimension_semantics = [#tpu.dimension_semantics<parallel>, #tpu.dimension_semantics<parallel>, #tpu.dimension_semantics<arbitrary>], iteration_bounds = array<i64: 2, 2, 2>, scalar_prefetch = 0 : i64, scratch_operands = 4 : i64, tpu.core_type = #tpu.core_type<tc>, window_params = [{transform_indices = @transform_0, window_bounds = array<i64: 1, 128, 16>}, {transform_indices = @transform_1, window_bounds = array<i64: 1, 128, 16>}, {transform_indices = @transform_2, window_bounds = array<i64: 1, 128, 16>}, {pipeline_mode = #tpu.pipeline_mode<synchronous>, transform_indices = @transform_3, window_bounds = array<i64: 2, 16, 8>}, {pipeline_mode = #tpu.pipeline_mode<synchronous>, transform_indices = @transform_4, window_bounds = array<i64: 2, 16, 8>}, {pipeline_mode = #tpu.pipeline_mode<synchronous>, transform_indices = @transform_5, window_bounds = array<i64: 2, 16, 8>}, {pipeline_mode = #tpu.pipeline_mode<synchronous>, transform_indices = @transform_6, window_bounds = array<i64: 2, 8, 16>}, {pipeline_mode = #tpu.pipeline_mode<synchronous>, transform_indices = @transform_7, window_bounds = array<i64: 1, 16>}, {pipeline_mode = #tpu.pipeline_mode<synchronous>, transform_indices = @transform_8, window_bounds = array<i64: 1, 16>}, {transform_indices = @transform_9, window_bounds = array<i64: 1, 128, 16>}]} {
    %c0_i32 = arith.constant 0 : i32
    %0 = arith.cmpi eq, %arg2, %c0_i32 : i32
    %1 = arith.extui %0 : i1 to i32
    %c0_i32_0 = arith.constant 0 : i32
    %2 = arith.cmpi ne, %1, %c0_i32_0 : i32
    scf.if %2 {
      %c0_39 = arith.constant 0 : index
      %c0_40 = arith.constant 0 : index
      %c0_41 = arith.constant 0 : index
      %44 = vector.load %arg3[%c0_39, %c0_40, %c0_41] : memref<1x128x16xf32, #tpu.memory_space<vmem>>, vector<1x128x16xf32>
      %45 = vector.shape_cast %44 : vector<1x128x16xf32> to vector<128x16xf32>
      %cst_42 = arith.constant dense<0.000000e+00> : vector<128xf32>
      %46 = vector.multi_reduction <add>, %45, %cst_42 [1] : vector<128x16xf32> to vector<128xf32>
      %47 = vector.shape_cast %46 : vector<128xf32> to vector<128x1xf32>
      %cst_43 = arith.constant 1.600000e+01 : f32
      %48 = vector.broadcast %cst_43 : f32 to vector<128x1xf32>
      %49 = arith.divf %47, %48 : vector<128x1xf32>
      %50 = vector.broadcast %49 : vector<128x1xf32> to vector<128x16xf32>
      %51 = arith.subf %45, %50 : vector<128x16xf32>
      %52 = arith.mulf %51, %51 : vector<128x16xf32>
      %cst_44 = arith.constant dense<0.000000e+00> : vector<128xf32>
      %53 = vector.multi_reduction <add>, %52, %cst_44 [1] : vector<128x16xf32> to vector<128xf32>
      %54 = vector.shape_cast %53 : vector<128xf32> to vector<128x1xf32>
      %cst_45 = arith.constant 1.600000e+01 : f32
      %55 = vector.broadcast %cst_45 : f32 to vector<128x1xf32>
      %56 = arith.divf %54, %55 : vector<128x1xf32>
      %cst_46 = arith.constant 9.99999997E-7 : f32
      %57 = vector.broadcast %cst_46 : f32 to vector<128x1xf32>
      %58 = arith.addf %56, %57 : vector<128x1xf32>
      %59 = math.rsqrt %58 : vector<128x1xf32>
      %60 = vector.broadcast %59 : vector<128x1xf32> to vector<128x16xf32>
      %61 = arith.mulf %51, %60 : vector<128x16xf32>
      %c0_47 = arith.constant 0 : index
      %c0_48 = arith.constant 0 : index
      %62 = vector.load %arg10[%c0_47, %c0_48] : memref<1x16xf32, #tpu.memory_space<vmem>>, vector<1x16xf32>
      %63 = vector.broadcast %62 : vector<1x16xf32> to vector<128x16xf32>
      %64 = arith.mulf %61, %63 : vector<128x16xf32>
      %c0_49 = arith.constant 0 : index
      %c0_50 = arith.constant 0 : index
      %65 = vector.load %arg11[%c0_49, %c0_50] : memref<1x16xf32, #tpu.memory_space<vmem>>, vector<1x16xf32>
      %66 = vector.broadcast %65 : vector<1x16xf32> to vector<128x16xf32>
      %67 = arith.addf %64, %66 : vector<128x16xf32>
      %68 = vector.shape_cast %67 : vector<128x16xf32> to vector<1x128x16xf32>
      %69 = vector.shape_cast %68 : vector<1x128x16xf32> to vector<1x128x16xf32>
      %70 = vector.broadcast %69 : vector<1x128x16xf32> to vector<2x128x16xf32>
      %c0_51 = arith.constant 0 : index
      %c0_52 = arith.constant 0 : index
      %c0_53 = arith.constant 0 : index
      %71 = vector.load %arg6[%c0_51, %c0_52, %c0_53] : memref<2x16x8xf32, #tpu.memory_space<vmem>>, vector<2x16x8xf32>
      "tpu.trace_start"() <{level = 10 : i32, message = "hqd,hdk->hqk"}> : () -> ()
      %cst_54 = arith.constant dense<0.000000e+00> : vector<2x128x8xf32>
      %72 = tpu.matmul %70, %71, %cst_54 {dimension_numbers = #tpu.dot_dimension_numbers<[2], [1], [1], [2], [0, 0, 0, 1, 1, 2], [0], [0]>} : vector<2x128x16xf32>, vector<2x16x8xf32>, vector<2x128x8xf32> -> vector<2x128x8xf32>
      "tpu.trace_stop"() : () -> ()
      %cst_55 = arith.constant 0.353553385 : f32
      %73 = vector.broadcast %cst_55 : f32 to vector<2x128x8xf32>
      %74 = arith.mulf %72, %73 : vector<2x128x8xf32>
      %c0_56 = arith.constant 0 : index
      %c0_57 = arith.constant 0 : index
      %c0_58 = arith.constant 0 : index
      %75 = vector.load %arg13[%c0_56, %c0_57, %c0_58] : memref<2x128x8xf32, #tpu.memory_space<vmem>>, vector<2x128x8xf32>
      tpu.vector_store %arg13[%c0_56, %c0_57, %c0_58], %74 {strides = array<i32>} : memref<2x128x8xf32, #tpu.memory_space<vmem>>, vector<2x128x8xf32>,
      %cst_59 = arith.constant 0xFF800000 : f32
      %76 = vector.broadcast %cst_59 : f32 to vector<2x128x1xf32>
      %c0_60 = arith.constant 0 : index
      %c0_61 = arith.constant 0 : index
      %c0_62 = arith.constant 0 : index
      %77 = vector.load %arg14[%c0_60, %c0_61, %c0_62] : memref<2x128x1xf32, #tpu.memory_space<vmem>>, vector<2x128x1xf32>
      tpu.vector_store %arg14[%c0_60, %c0_61, %c0_62], %76 {strides = array<i32>} : memref<2x128x1xf32, #tpu.memory_space<vmem>>, vector<2x128x1xf32>,
      %cst_63 = arith.constant 0.000000e+00 : f32
      %78 = vector.broadcast %cst_63 : f32 to vector<2x128x1xf32>
      %c0_64 = arith.constant 0 : index
      %c0_65 = arith.constant 0 : index
      %c0_66 = arith.constant 0 : index
      %79 = vector.load %arg15[%c0_64, %c0_65, %c0_66] : memref<2x128x1xf32, #tpu.memory_space<vmem>>, vector<2x128x1xf32>
      tpu.vector_store %arg15[%c0_64, %c0_65, %c0_66], %78 {strides = array<i32>} : memref<2x128x1xf32, #tpu.memory_space<vmem>>, vector<2x128x1xf32>,
      %cst_67 = arith.constant 0.000000e+00 : f32
      %80 = vector.broadcast %cst_67 : f32 to vector<2x128x8xf32>
      %c0_68 = arith.constant 0 : index
      %c0_69 = arith.constant 0 : index
      %c0_70 = arith.constant 0 : index
      %81 = vector.load %arg16[%c0_68, %c0_69, %c0_70] : memref<2x128x8xf32, #tpu.memory_space<vmem>>, vector<2x128x8xf32>
      tpu.vector_store %arg16[%c0_68, %c0_69, %c0_70], %80 {strides = array<i32>} : memref<2x128x8xf32, #tpu.memory_space<vmem>>, vector<2x128x8xf32>,
    } else {
    }
    %c0 = arith.constant 0 : index
    %c0_1 = arith.constant 0 : index
    %c0_2 = arith.constant 0 : index
    %3 = vector.load %arg4[%c0, %c0_1, %c0_2] : memref<1x128x16xf32, #tpu.memory_space<vmem>>, vector<1x128x16xf32>
    %4 = vector.shape_cast %3 : vector<1x128x16xf32> to vector<128x16xf32>
    %5 = vector.shape_cast %4 : vector<128x16xf32> to vector<1x128x16xf32>
    %6 = vector.shape_cast %5 : vector<1x128x16xf32> to vector<1x128x16xf32>
    %7 = vector.broadcast %6 : vector<1x128x16xf32> to vector<2x128x16xf32>
    %c0_3 = arith.constant 0 : index
    %c0_4 = arith.constant 0 : index
    %c0_5 = arith.constant 0 : index
    %8 = vector.load %arg5[%c0_3, %c0_4, %c0_5] : memref<1x128x16xf32, #tpu.memory_space<vmem>>, vector<1x128x16xf32>
    %9 = vector.shape_cast %8 : vector<1x128x16xf32> to vector<128x16xf32>
    %10 = vector.shape_cast %9 : vector<128x16xf32> to vector<1x128x16xf32>
    %11 = vector.shape_cast %10 : vector<1x128x16xf32> to vector<1x128x16xf32>
    %12 = vector.broadcast %11 : vector<1x128x16xf32> to vector<2x128x16xf32>
    %c0_6 = arith.constant 0 : index
    %c0_7 = arith.constant 0 : index
    %c0_8 = arith.constant 0 : index
    %13 = vector.load %arg7[%c0_6, %c0_7, %c0_8] : memref<2x16x8xf32, #tpu.memory_space<vmem>>, vector<2x16x8xf32>
    "tpu.trace_start"() <{level = 10 : i32, message = "hkd,hdc->hkc"}> : () -> ()
    %cst = arith.constant dense<0.000000e+00> : vector<2x128x8xf32>
    %14 = tpu.matmul %7, %13, %cst {dimension_numbers = #tpu.dot_dimension_numbers<[2], [1], [1], [2], [0, 0, 0, 1, 1, 2], [0], [0]>} : vector<2x128x16xf32>, vector<2x16x8xf32>, vector<2x128x8xf32> -> vector<2x128x8xf32>
    "tpu.trace_stop"() : () -> ()
    %c0_9 = arith.constant 0 : index
    %c0_10 = arith.constant 0 : index
    %c0_11 = arith.constant 0 : index
    %15 = vector.load %arg8[%c0_9, %c0_10, %c0_11] : memref<2x16x8xf32, #tpu.memory_space<vmem>>, vector<2x16x8xf32>
    "tpu.trace_start"() <{level = 10 : i32, message = "hkd,hdc->hkc"}> : () -> ()
    %cst_12 = arith.constant dense<0.000000e+00> : vector<2x128x8xf32>
    %16 = tpu.matmul %12, %15, %cst_12 {dimension_numbers = #tpu.dot_dimension_numbers<[2], [1], [1], [2], [0, 0, 0, 1, 1, 2], [0], [0]>} : vector<2x128x16xf32>, vector<2x16x8xf32>, vector<2x128x8xf32> -> vector<2x128x8xf32>
    "tpu.trace_stop"() : () -> ()
    %c0_13 = arith.constant 0 : index
    %c0_14 = arith.constant 0 : index
    %c0_15 = arith.constant 0 : index
    %17 = vector.load %arg13[%c0_13, %c0_14, %c0_15] : memref<2x128x8xf32, #tpu.memory_space<vmem>>, vector<2x128x8xf32>
    "tpu.trace_start"() <{level = 10 : i32, message = "hqc,hkc->hqk"}> : () -> ()
    %cst_16 = arith.constant dense<0.000000e+00> : vector<2x128x128xf32>
    %18 = tpu.matmul %17, %14, %cst_16 {dimension_numbers = #tpu.dot_dimension_numbers<[2], [2], [1], [1], [0, 0, 0, 1, 1, 1], [0], [0]>} : vector<2x128x8xf32>, vector<2x128x8xf32>, vector<2x128x128xf32> -> vector<2x128x128xf32>
    "tpu.trace_stop"() : () -> ()
    %c0_17 = arith.constant 0 : index
    %c0_18 = arith.constant 0 : index
    %c0_19 = arith.constant 0 : index
    %19 = vector.load %arg14[%c0_17, %c0_18, %c0_19] : memref<2x128x1xf32, #tpu.memory_space<vmem>>, vector<2x128x1xf32>
    %cst_20 = arith.constant dense<0xFF800000> : vector<2x128xf32>
    %20 = vector.multi_reduction <maximumf>, %18, %cst_20 [2] : vector<2x128x128xf32> to vector<2x128xf32>
    %21 = vector.shape_cast %20 : vector<2x128xf32> to vector<2x128x1xf32>
    %22 = arith.maximumf %19, %21 : vector<2x128x1xf32>
    %23 = arith.subf %19, %22 : vector<2x128x1xf32>
    %24 = math.exp %23 : vector<2x128x1xf32>
    %25 = vector.broadcast %22 : vector<2x128x1xf32> to vector<2x128x128xf32>
    %26 = arith.subf %18, %25 : vector<2x128x128xf32>
    %27 = math.exp %26 : vector<2x128x128xf32>
    %c0_21 = arith.constant 0 : index
    %c0_22 = arith.constant 0 : index
    %c0_23 = arith.constant 0 : index
    %28 = vector.load %arg15[%c0_21, %c0_22, %c0_23] : memref<2x128x1xf32, #tpu.memory_space<vmem>>, vector<2x128x1xf32>
    %29 = arith.mulf %24, %28 : vector<2x128x1xf32>
    %cst_24 = arith.constant dense<0.000000e+00> : vector<2x128xf32>
    %30 = vector.multi_reduction <add>, %27, %cst_24 [2] : vector<2x128x128xf32> to vector<2x128xf32>
    %31 = vector.shape_cast %30 : vector<2x128xf32> to vector<2x128x1xf32>
    %32 = arith.addf %29, %31 : vector<2x128x1xf32>
    %c0_25 = arith.constant 0 : index
    %c0_26 = arith.constant 0 : index
    %c0_27 = arith.constant 0 : index
    %33 = vector.load %arg15[%c0_25, %c0_26, %c0_27] : memref<2x128x1xf32, #tpu.memory_space<vmem>>, vector<2x128x1xf32>
    tpu.vector_store %arg15[%c0_25, %c0_26, %c0_27], %32 {strides = array<i32>} : memref<2x128x1xf32, #tpu.memory_space<vmem>>, vector<2x128x1xf32>,
    %c0_28 = arith.constant 0 : index
    %c0_29 = arith.constant 0 : index
    %c0_30 = arith.constant 0 : index
    %34 = vector.load %arg16[%c0_28, %c0_29, %c0_30] : memref<2x128x8xf32, #tpu.memory_space<vmem>>, vector<2x128x8xf32>
    %35 = vector.broadcast %24 : vector<2x128x1xf32> to vector<2x128x8xf32>
    %36 = arith.mulf %35, %34 : vector<2x128x8xf32>
    "tpu.trace_start"() <{level = 10 : i32, message = "hqk,hkv->hqv"}> : () -> ()
    %cst_31 = arith.constant dense<0.000000e+00> : vector<2x128x8xf32>
    %37 = tpu.matmul %27, %16, %cst_31 {dimension_numbers = #tpu.dot_dimension_numbers<[2], [1], [1], [2], [0, 0, 0, 1, 1, 2], [0], [0]>} : vector<2x128x128xf32>, vector<2x128x8xf32>, vector<2x128x8xf32> -> vector<2x128x8xf32>
    "tpu.trace_stop"() : () -> ()
    %38 = arith.addf %36, %37 : vector<2x128x8xf32>
    %c0_32 = arith.constant 0 : index
    %c0_33 = arith.constant 0 : index
    %c0_34 = arith.constant 0 : index
    %39 = vector.load %arg16[%c0_32, %c0_33, %c0_34] : memref<2x128x8xf32, #tpu.memory_space<vmem>>, vector<2x128x8xf32>
    tpu.vector_store %arg16[%c0_32, %c0_33, %c0_34], %38 {strides = array<i32>} : memref<2x128x8xf32, #tpu.memory_space<vmem>>, vector<2x128x8xf32>,
    %c0_35 = arith.constant 0 : index
    %c0_36 = arith.constant 0 : index
    %c0_37 = arith.constant 0 : index
    %40 = vector.load %arg14[%c0_35, %c0_36, %c0_37] : memref<2x128x1xf32, #tpu.memory_space<vmem>>, vector<2x128x1xf32>
    tpu.vector_store %arg14[%c0_35, %c0_36, %c0_37], %22 {strides = array<i32>} : memref<2x128x1xf32, #tpu.memory_space<vmem>>, vector<2x128x1xf32>,
    %c1_i32 = arith.constant 1 : i32
    %41 = arith.cmpi eq, %arg2, %c1_i32 : i32
    %42 = arith.extui %41 : i1 to i32
    %c0_i32_38 = arith.constant 0 : i32
    %43 = arith.cmpi ne, %42, %c0_i32_38 : i32
    scf.if %43 {
      %c0_39 = arith.constant 0 : index
      %c0_40 = arith.constant 0 : index
      %c0_41 = arith.constant 0 : index
      %44 = vector.load %arg15[%c0_39, %c0_40, %c0_41] : memref<2x128x1xf32, #tpu.memory_space<vmem>>, vector<2x128x1xf32>
      %45 = tpu.reciprocal %44 {approx = true} : vector<2x128x1xf32> -> vector<2x128x1xf32>
      %c0_42 = arith.constant 0 : index
      %c0_43 = arith.constant 0 : index
      %c0_44 = arith.constant 0 : index
      %46 = vector.load %arg16[%c0_42, %c0_43, %c0_44] : memref<2x128x8xf32, #tpu.memory_space<vmem>>, vector<2x128x8xf32>
      %47 = vector.broadcast %45 : vector<2x128x1xf32> to vector<2x128x8xf32>
      %48 = arith.mulf %46, %47 : vector<2x128x8xf32>
      %c0_45 = arith.constant 0 : index
      %c0_46 = arith.constant 0 : index
      %c0_47 = arith.constant 0 : index
      %49 = vector.load %arg9[%c0_45, %c0_46, %c0_47] : memref<2x8x16xf32, #tpu.memory_space<vmem>>, vector<2x8x16xf32>
      "tpu.trace_start"() <{level = 10 : i32, message = "hqv,hvd->hqd"}> : () -> ()
      %cst_48 = arith.constant dense<0.000000e+00> : vector<2x128x16xf32>
      %50 = tpu.matmul %48, %49, %cst_48 {dimension_numbers = #tpu.dot_dimension_numbers<[2], [1], [1], [2], [0, 0, 0, 1, 1, 2], [0], [0]>} : vector<2x128x8xf32>, vector<2x8x16xf32>, vector<2x128x16xf32> -> vector<2x128x16xf32>
      "tpu.trace_stop"() : () -> ()
      %cst_49 = arith.constant dense<0.000000e+00> : vector<128x16xf32>
      %51 = vector.multi_reduction <add>, %50, %cst_49 [0] : vector<2x128x16xf32> to vector<128x16xf32>
      %c0_50 = arith.constant 0 : index
      %c0_51 = arith.constant 0 : index
      %c0_52 = arith.constant 0 : index
      %52 = vector.load %arg3[%c0_50, %c0_51, %c0_52] : memref<1x128x16xf32, #tpu.memory_space<vmem>>, vector<1x128x16xf32>
      %53 = vector.shape_cast %52 : vector<1x128x16xf32> to vector<128x16xf32>
      %54 = arith.addf %51, %53 : vector<128x16xf32>
      %c0_53 = arith.constant 0 : index
      %c0_54 = arith.constant 0 : index
      %c0_55 = arith.constant 0 : index
      %55 = vector.load %arg12[%c0_53, %c0_54, %c0_55] : memref<1x128x16xf32, #tpu.memory_space<vmem>>, vector<1x128x16xf32>
      %56 = vector.shape_cast %55 : vector<1x128x16xf32> to vector<128x16xf32>
      %57 = vector.shape_cast %54 : vector<128x16xf32> to vector<1x128x16xf32>
      tpu.vector_store %arg12[%c0_53, %c0_54, %c0_55], %57 {strides = array<i32>} : memref<1x128x16xf32, #tpu.memory_space<vmem>>, vector<1x128x16xf32>,
    } else {
    }
    return
  }
  func.func @transform_0(%arg0: i32, %arg1: i32, %arg2: i32) -> (i32, i32, i32) {
    %c0_i32 = arith.constant 0 : i32
    %c0_i32_0 = arith.constant 0 : i32
    return %arg0, %arg1, %c0_i32 : i32, i32, i32
  }
  func.func @transform_1(%arg0: i32, %arg1: i32, %arg2: i32) -> (i32, i32, i32) {
    %c0_i32 = arith.constant 0 : i32
    %c0_i32_0 = arith.constant 0 : i32
    return %arg0, %arg2, %c0_i32 : i32, i32, i32
  }
  func.func @transform_2(%arg0: i32, %arg1: i32, %arg2: i32) -> (i32, i32, i32) {
    %c0_i32 = arith.constant 0 : i32
    %c0_i32_0 = arith.constant 0 : i32
    return %arg0, %arg2, %c0_i32 : i32, i32, i32
  }
  func.func @transform_3(%arg0: i32, %arg1: i32, %arg2: i32) -> (i32, i32, i32) {
    %c0_i32 = arith.constant 0 : i32
    %c0_i32_0 = arith.constant 0 : i32
    %c0_i32_1 = arith.constant 0 : i32
    %c0_i32_2 = arith.constant 0 : i32
    return %c0_i32, %c0_i32_0, %c0_i32_1 : i32, i32, i32
  }
  func.func @transform_4(%arg0: i32, %arg1: i32, %arg2: i32) -> (i32, i32, i32) {
    %c0_i32 = arith.constant 0 : i32
    %c0_i32_0 = arith.constant 0 : i32
    %c0_i32_1 = arith.constant 0 : i32
    %c0_i32_2 = arith.constant 0 : i32
    return %c0_i32, %c0_i32_0, %c0_i32_1 : i32, i32, i32
  }
  func.func @transform_5(%arg0: i32, %arg1: i32, %arg2: i32) -> (i32, i32, i32) {
    %c0_i32 = arith.constant 0 : i32
    %c0_i32_0 = arith.constant 0 : i32
    %c0_i32_1 = arith.constant 0 : i32
    %c0_i32_2 = arith.constant 0 : i32
    return %c0_i32, %c0_i32_0, %c0_i32_1 : i32, i32, i32
  }
  func.func @transform_6(%arg0: i32, %arg1: i32, %arg2: i32) -> (i32, i32, i32) {
    %c0_i32 = arith.constant 0 : i32
    %c0_i32_0 = arith.constant 0 : i32
    %c0_i32_1 = arith.constant 0 : i32
    %c0_i32_2 = arith.constant 0 : i32
    return %c0_i32, %c0_i32_0, %c0_i32_1 : i32, i32, i32
  }
  func.func @transform_7(%arg0: i32, %arg1: i32, %arg2: i32) -> (i32, i32) {
    %c0_i32 = arith.constant 0 : i32
    %c0_i32_0 = arith.constant 0 : i32
    %c0_i32_1 = arith.constant 0 : i32
    return %c0_i32, %c0_i32_0 : i32, i32
  }
  func.func @transform_8(%arg0: i32, %arg1: i32, %arg2: i32) -> (i32, i32) {
    %c0_i32 = arith.constant 0 : i32
    %c0_i32_0 = arith.constant 0 : i32
    %c0_i32_1 = arith.constant 0 : i32
    return %c0_i32, %c0_i32_0 : i32, i32
  }
  func.func @transform_9(%arg0: i32, %arg1: i32, %arg2: i32) -> (i32, i32, i32) {
    %c0_i32 = arith.constant 0 : i32
    %c0_i32_0 = arith.constant 0 : i32
    return %arg0, %arg1, %c0_i32 : i32, i32, i32
  }
}

</mosaic_0001>

<bundles_post_ra>
// kernel: tpu_custom_call.1
= control target key start
LH: loop header
LB: loop body
LE: loop exit
PB: predicated region body
PF: predicated region fallthrough
CT: control target
= control target key end

     0   :  { %s5981_s30 = smov 0   ;;  %s5983_s10 = smov 0   ;;  %s7767_s0 = inlined_call_operand.vmem [shape: f32[2,256,16], index: 0, kind: input, shape index: {}]   ;;  %s7768_s1 = inlined_call_operand.vmem [shape: f32[2,256,16], index: 1, kind: input, shape index: {}]   ;;  %s7769_s2 = inlined_call_operand.vmem [shape: f32[2,256,16], index: 2, kind: input, shape index: {}]   ;;  %s7770_s3 = inlined_call_operand.vmem [shape: f32[2,16,8], index: 3, kind: input, shape index: {}]   ;;  %s7771_s4 = inlined_call_operand.vmem [shape: f32[2,16,8], index: 4, kind: input, shape index: {}]   ;;  %s7772_s5 = inlined_call_operand.vmem [shape: f32[2,16,8], index: 5, kind: input, shape index: {}]   ;;  %s7773_s6 = inlined_call_operand.vmem [shape: f32[2,8,16], index: 6, kind: input, shape index: {}]   ;;  %s7774_s7 = inlined_call_operand.vmem [shape: f32[1,16], index: 7, kind: input, shape index: {}]   ;;  %s7775_s8 = inlined_call_operand.vmem [shape: f32[1,16], index: 8, kind: input, shape index: {}]   ;;  %s7776_s9 = inlined_call_operand.vmem [shape: f32[2,256,16], index: 9, kind: output, shape index: {}]  }
   0x1   :  { %s5985_s11 = smov 0   ;;  %s5987_s12 = smov 0  }
   0x2   :  { %s5989_s13 = smov 0   ;;  %s5991_s14 = smov 0  }
   0x3   :  { %s5993_s15 = smov 0  }
   0x4 LB: > { %7812 = sst [smem:[#allocation6_spill]] %s5921_s14  ;;  %s31_s16 = sadd.s32 1, %s5913_s12  ;;  %s5925_s15 = sphi %s5993_s15, %s19_s15   ;;  %s5921_s14 = sphi %s5991_s14, %s7907_s14   ;;  %s5917_s13 = sphi %s5989_s13, %s7911_s13   ;;  %s5913_s12 = sphi %s5987_s12, %s7910_s12   ;;  %s5909_s11 = sphi %s5985_s11, %s7904_s11   ;;  %s5905_s10 = sphi %s5983_s10, %s7909_s10   ;;  %s5901_s30 = sphi %s5981_s30, %s7908_s30  }
   0x5   : > { %p32_p0 = scmp.ge.s32.totalorder %s31_s16, 2  ;;  %s34_s17 = sadd.s32 1, %s5917_s13 }
   0x6   : > { %p4658_p1 = scmp.ge.s32.totalorder %s5925_s15, 1  ;;  %p349_p2 = scmp.lt.s32.totalorder %s5925_s15, 9 }
   0x7   : > { %s7913_s16 = smov (%p32_p0, %s31_s16), 0  ;;  %s7915_s17 = smov (!%p32_p0, %s34_s17), %s5917_s13 }
   0x8   : > { %7813 = sst [smem:[#allocation7_spill]] %s7913_s16  ;;  %p350_p3 = pnand %p4658_p1, %p349_p2 }
   0x9   : > { %p36_p4 = scmp.ge.s32.totalorder %s7915_s17, 2  ;;  %s38_s18 = sadd.s32 1, %s5921_s14 }
   0xb   : > { %s7917_s17 = smov (%p36_p4, %s7915_s17), 0  ;;  %s7919_s18 = smov (!%p36_p4, %s38_s18), %s5921_s14 }
   0xc   : > { %7814 = sst [smem:[#allocation8_spill]] %s7917_s17  ;;  %p40_p5 = scmp.ge.s32.totalorder %s7919_s18, 2 }
   0xd   : > { %353 = sbr.rel (%p350_p3) target bundleno = 2014 (0x7de), region = 56 }
   0xe   : > { %s7921_s18 = smov (%p40_p5, %s7919_s18), 0 }
   0xf   : > { %7815 = sst [smem:[#allocation9_spill]] %s7921_s18 }
  0x12   : > { %s4659_s19 = sshll.u32 %s5905_s10, 4  ;;  %p412_p6 = scmp.lt.s32.totalorder %s5909_s11, 1 }
  0x13   : > { %p414_p7 = scmp.lt.s32.totalorder %s4659_s19, 31  ;;  %s4662_s20 = sshll.u32 %s5901_s30, 4 }
  0x14   : > { %s7923_s11 = smov (!%p412_p6, %s5909_s11), 1  ;;  %p424_p8 = scmp.lt.s32.totalorder %s4662_s20, 31 }
  0x15   : > { %s7925_s19 = smov (!%p414_p7, %s4659_s19), 31  ;;  %s4660_s21 = sshll.u32 %s7923_s11, 5 }
  0x16   : > { %s417_s22 = sadd.s32 %s4660_s21, %s7925_s19  ;;  %s7927_s20 = smov (!%p424_p8, %s4662_s20), 31 }
  0x17   : > { %s4661_s23 = sshll.u32 %s417_s22, 3  ;;  %s427_s10 = sadd.s32 %s4660_s21, %s7927_s20 }
  0x18   : > { %s6029_s26 = scalar_lea.vmem %s7767_s0, %s4661_s23  ;;  %s6034_s29 = scalar_lea.vmem %s7776_s9, %s4661_s23 }
  0x19   : > { %s4664_s18 = sshll.u32 %s427_s10, 3  ;;  %p4671_p9 = scmp.ne.s32.totalorder %s5901_s30, 0 }
  0x1a   : > { %s6039_s11 = scalar_lea.vmem %s7768_s1, %s4664_s18  ;;  %s6044_s14 = scalar_lea.vmem %s7769_s2, %s4664_s18 }
  0x1b   : > { %454 = sbr.rel (%p4671_p9) target bundleno = 571 (0x23b), region = 60 }
  0x20   : > { %v455_v0 = vld [vmem:[%s6029_s26] sm:$0xff]  ;;  %vm471_vm0 = vcmask 130048   ;;  %v457_v1 = vld [vmem:[%s6029_s26 + $0x10] sm:$0xff]  ;;  %v456_v2 = vld [vmem:[%s6029_s26 + $0x8] sm:$0xff]  ;;  %vm1101_vm1 = vcmask 64512   ;;  %vm1134_vm2 = vcmask 7168  }
  0x21   : > { %v472_v3 = vsel %vm471_vm0, %v455_v0, 0.0  ;;  %v478_v4 = vsel %vm471_vm0, %v457_v1, 0.0  ;;  %v458_v5 = vld [vmem:[%s6029_s26 + $0x18] sm:$0xff]  ;;  %v475_v6 = vsel %vm471_vm0, %v456_v2, 0.0  ;;  %v459_v8 = vld [vmem:[%s6029_s26 + $0x20] sm:$0xff]  ;;  %v460_v9 = vld [vmem:[%s6029_s26 + $0x28] sm:$0xff] }
  0x22   : > { %473 = vadd.xlane.f32.xlu0 %v472_v3  ;;  %479 = vadd.xlane.f32.xlu1 %v478_v4  ;;  %v481_v7 = vsel %vm471_vm0, %v458_v5, 0.0  ;;  %v484_v10 = vsel %vm471_vm0, %v459_v8, 0.0  ;;  %v487_v11 = vsel %vm471_vm0, %v460_v9, 0.0  ;;  %v6060_v12 = vld [vmem:[%s6029_s26 + $0x30] sm:$0xff]  ;;  %v6063_v13 = vld [vmem:[%s6029_s26 + $0x38] sm:$0xff]  ;;  %v6070_v16 = vld [vmem:[%s6029_s26 + $0x40] sm:$0xff] }
  0x23   : > { %v490_v14 = vsel %vm471_vm0, %v6060_v12, 0.0  ;;  %v493_v15 = vsel %vm471_vm0, %v6063_v13, 0.0  ;;  %v6073_v17 = vld [vmem:[%s6029_s26 + $0x48] sm:$0xff]  ;;  %v496_v18 = vsel %vm471_vm0, %v6070_v16, 0.0  ;;  %v6080_v20 = vld [vmem:[%s6029_s26 + $0x50] sm:$0xff]  ;;  %v6083_v21 = vld [vmem:[%s6029_s26 + $0x58] sm:$0xff] }
  0x24   : > { %v499_v19 = vsel %vm471_vm0, %v6073_v17, 0.0  ;;  %v502_v22 = vsel %vm471_vm0, %v6080_v20, 0.0  ;;  %v505_v23 = vsel %vm471_vm0, %v6083_v21, 0.0  ;;  %v6090_v24 = vld [vmem:[%s6029_s26 + $0x60] sm:$0xff]  ;;  %v6093_v25 = vld [vmem:[%s6029_s26 + $0x68] sm:$0xff]  ;;  %v6100_v28 = vld [vmem:[%s6029_s26 + $0x70] sm:$0xff] }
  0x25   : > { %v508_v26 = vsel %vm471_vm0, %v6090_v24, 0.0  ;;  %v511_v27 = vsel %vm471_vm0, %v6093_v25, 0.0  ;;  %v6103_v29 = vld [vmem:[%s6029_s26 + $0x78] sm:$0xff]  ;;  %v514_v30 = vsel %vm471_vm0, %v6100_v28, 0.0 }
  0x26   : > { %476 = vadd.xlane.f32.xlu0 %v475_v6  ;;  %482 = vadd.xlane.f32.xlu1 %v481_v7  ;;  %v517_v31 = vsel %vm471_vm0, %v6103_v29, 0.0 }
  0x2a   : > { %485 = vadd.xlane.f32.xlu0 %v484_v10  ;;  %488 = vadd.xlane.f32.xlu1 %v487_v11 }
  0x2e   : > { %491 = vadd.xlane.f32.xlu0 %v490_v14  ;;  %494 = vadd.xlane.f32.xlu1 %v493_v15 }
  0x32   : > { %497 = vadd.xlane.f32.xlu0 %v496_v18  ;;  %500 = vadd.xlane.f32.xlu1 %v499_v19 }
  0x36   : > { %503 = vadd.xlane.f32.xlu0 %v502_v22  ;;  %506 = vadd.xlane.f32.xlu1 %v505_v23 }
  0x3a   : > { %509 = vadd.xlane.f32.xlu0 %v508_v26  ;;  %512 = vadd.xlane.f32.xlu1 %v511_v27 }
  0x3e   : > { %515 = vadd.xlane.f32.xlu0 %v514_v30  ;;  %518 = vadd.xlane.f32.xlu1 %v517_v31 }
  0xab   : > { %v474_v32 = vpop.xlane.xlu0 %473  ;;  %v480_v33 = vpop.xlane.xlu1 %479 }
  0xac   : > { %v521_v34 = vmul.f32 0.0625, %v474_v32  ;;  %v523_v35 = vmul.f32 0.0625, %v480_v33 }
  0xae   : > { %v6109_v36 = vsub.f32 %v455_v0, %v521_v34  ;;  %v6111_v37 = vsub.f32 %v457_v1, %v523_v35 }
  0xaf   : > { %v477_v38 = vpop.xlane.xlu0 %476  ;;  %v483_v39 = vpop.xlane.xlu1 %482 }
  0xb0   : > { %v522_v40 = vmul.f32 0.0625, %v477_v38  ;;  %v524_v41 = vmul.f32 0.0625, %v483_v39  ;;  %v553_v42 = vmul.f32 %v6109_v36, %v6109_v36  ;;  %v555_v43 = vmul.f32 %v6111_v37, %v6111_v37 }
  0xb2   : > { %v6117_v44 = vsub.f32 %v456_v2, %v522_v40  ;;  %v6119_v45 = vsub.f32 %v458_v5, %v524_v41  ;;  %v569_v46 = vsel %vm471_vm0, %v553_v42, 0.0  ;;  %v575_v49 = vsel %vm471_vm0, %v555_v43, 0.0 }
  0xb3   : > { %570 = vadd.xlane.f32.xlu0 %v569_v46  ;;  %v486_v47 = vpop.xlane.xlu0 %485  ;;  %v489_v48 = vpop.xlane.xlu1 %488 }
  0xb4   : > { %v525_v50 = vmul.f32 0.0625, %v486_v47  ;;  %v526_v51 = vmul.f32 0.0625, %v489_v48  ;;  %v554_v52 = vmul.f32 %v6117_v44, %v6117_v44  ;;  %v556_v53 = vmul.f32 %v6119_v45, %v6119_v45 }
  0xb6   : > { %v6127_v54 = vsub.f32 %v459_v8, %v525_v50  ;;  %v6129_v55 = vsub.f32 %v460_v9, %v526_v51  ;;  %v572_v56 = vsel %vm471_vm0, %v554_v52, 0.0  ;;  %v578_v59 = vsel %vm471_vm0, %v556_v53, 0.0  ;;  %v730_v53 = vld [vmem:[%s7770_s3 + $0x18] sm:$0xff] }
  0xb7   : > { %576 = vadd.xlane.f32.xlu0 %v575_v49  ;;  %573 = vadd.xlane.f32.xlu1 %v572_v56  ;;  %v492_v57 = vpop.xlane.xlu0 %491  ;;  %v495_v58 = vpop.xlane.xlu1 %494  ;;  %v727_v56 = vld [vmem:[%s7770_s3] sm:$0xff] }
  0xb8   : > { %v527_v60 = vmul.f32 0.0625, %v492_v57  ;;  %v528_v61 = vmul.f32 0.0625, %v495_v58  ;;  %v557_v62 = vmul.f32 %v6127_v54, %v6127_v54  ;;  %v558_v63 = vmul.f32 %v6129_v55, %v6129_v55  ;;  %5167 = vmatprep.subr.mxu1 %v730_v53  ;;  %v729_v57 = vld [vmem:[%s7770_s3 + $0x10] sm:$0xff] }
  0xb9   : > { %5168 = vmatpush3.msra.mxu1 %v730_v53 }
  0xba   : > { %v6138_v0 = vsub.f32 %v6060_v12, %v527_v60  ;;  %v6141_v1 = vsub.f32 %v6063_v13, %v528_v61  ;;  %v581_v2 = vsel %vm471_vm0, %v557_v62, 0.0  ;;  %v584_v5 = vsel %vm471_vm0, %v558_v63, 0.0  ;;  %5169 = vmatprep.subr.mxu1 %v729_v57 }
  0xbb   : > { %579 = vadd.xlane.f32.xlu1 %v578_v59  ;;  %582 = vadd.xlane.f32.xlu0 %v581_v2  ;;  %v498_v3 = vpop.xlane.xlu0 %497  ;;  %v501_v4 = vpop.xlane.xlu1 %500 }
  0xbc   : > { %v529_v6 = vmul.f32 0.0625, %v498_v3  ;;  %v530_v7 = vmul.f32 0.0625, %v501_v4  ;;  %v559_v8 = vmul.f32 %v6138_v0, %v6138_v0  ;;  %v560_v9 = vmul.f32 %v6141_v1, %v6141_v1  ;;  %5170 = vmatpush3.msra.mxu1 %v729_v57 }
  0xbe   : > { %v6150_v10 = vsub.f32 %v6070_v16, %v529_v6  ;;  %v6153_v11 = vsub.f32 %v6073_v17, %v530_v7  ;;  %v587_v12 = vsel %vm471_vm0, %v559_v8, 0.0  ;;  %v590_v15 = vsel %vm471_vm0, %v560_v9, 0.0 }
  0xbf   : > { %585 = vadd.xlane.f32.xlu1 %v584_v5  ;;  %588 = vadd.xlane.f32.xlu0 %v587_v12  ;;  %v504_v13 = vpop.xlane.xlu0 %503  ;;  %v507_v14 = vpop.xlane.xlu1 %506 }
  0xc0   : > { %v531_v18 = vmul.f32 0.0625, %v504_v13  ;;  %v532_v19 = vmul.f32 0.0625, %v507_v14  ;;  %v561_v22 = vmul.f32 %v6150_v10, %v6150_v10  ;;  %v562_v16 = vmul.f32 %v6153_v11, %v6153_v11 }
  0xc2   : > { %v6162_v23 = vsub.f32 %v6080_v20, %v531_v18  ;;  %v6165_v17 = vsub.f32 %v6083_v21, %v532_v19  ;;  %v593_v26 = vsel %vm471_vm0, %v561_v22, 0.0  ;;  %v596_v31 = vsel %vm471_vm0, %v562_v16, 0.0 }
  0xc3   : > { %591 = vadd.xlane.f32.xlu1 %v590_v15  ;;  %594 = vadd.xlane.f32.xlu0 %v593_v26  ;;  %v510_v27 = vpop.xlane.xlu0 %509  ;;  %v513_v30 = vpop.xlane.xlu1 %512 }
  0xc4   : > { %v533_v32 = vmul.f32 0.0625, %v510_v27  ;;  %v534_v33 = vmul.f32 0.0625, %v513_v30  ;;  %v563_v34 = vmul.f32 %v6162_v23, %v6162_v23  ;;  %v564_v20 = vmul.f32 %v6165_v17, %v6165_v17 }
  0xc6   : > { %v6174_v35 = vsub.f32 %v6090_v24, %v533_v32  ;;  %v6177_v21 = vsub.f32 %v6093_v25, %v534_v33  ;;  %v599_v38 = vsel %vm471_vm0, %v563_v34, 0.0  ;;  %v602_v41 = vsel %vm471_vm0, %v564_v20, 0.0  ;;  %v6214_v32 = vld [vmem:[%s7774_s7] ss:$0 sm:$0xff] }
  0xc7   : > { %597 = vadd.xlane.f32.xlu1 %v596_v31  ;;  %600 = vadd.xlane.f32.xlu0 %v599_v38  ;;  %v516_v39 = vpop.xlane.xlu0 %515  ;;  %v519_v40 = vpop.xlane.xlu1 %518 }
  0xc8   : > { %v535_v42 = vmul.f32 0.0625, %v516_v39  ;;  %v536_v43 = vmul.f32 0.0625, %v519_v40  ;;  %v565_v46 = vmul.f32 %v6174_v35, %v6174_v35  ;;  %v566_v24 = vmul.f32 %v6177_v21, %v6177_v21  ;;  %v6220_v40 = vld [vmem:[%s7775_s8] ss:$0 sm:$0xff] }
  0xca   : > { %v6186_v47 = vsub.f32 %v6100_v28, %v535_v42  ;;  %v6189_v25 = vsub.f32 %v6103_v29, %v536_v43  ;;  %v605_v48 = vsel %vm471_vm0, %v565_v46, 0.0  ;;  %v608_v49 = vsel %vm471_vm0, %v566_v24, 0.0  ;;  %v728_v29 = vld [vmem:[%s7770_s3 + $0x8] sm:$0xff] }
  0xcb   : > { %603 = vadd.xlane.f32.xlu1 %v602_v41  ;;  %606 = vadd.xlane.f32.xlu0 %v605_v48 }
  0xcc   : > { %v567_v50 = vmul.f32 %v6186_v47, %v6186_v47  ;;  %v568_v51 = vmul.f32 %v6189_v25, %v6189_v25  ;;  %5139 = vmatprep.subr.mxu0 %v728_v29 }
  0xcd   : > { %5140 = vmatpush3.msra.mxu0 %v728_v29 }
  0xce   : > { %v611_v52 = vsel %vm471_vm0, %v567_v50, 0.0  ;;  %v614_v28 = vsel %vm471_vm0, %v568_v51, 0.0  ;;  %5141 = vmatprep.subr.mxu0 %v727_v56 }
  0xcf   : > { %609 = vadd.xlane.f32.xlu1 %v608_v49  ;;  %612 = vadd.xlane.f32.xlu0 %v611_v52 }
  0xd0   : > { %5142 = vmatpush3.msra.mxu0 %v727_v56 }
  0xd3   : > { %615 = vadd.xlane.f32.xlu1 %v614_v28 }
 0x13c   : > { %v571_v58 = vpop.xlane.xlu0 %570 }
 0x13d   : > { %v617_v59 = vmul.f32 0.0625, %v571_v58 }
 0x13f   : > { %v633_v60 = vadd.f32 1e-06, %v617_v59 }
 0x140   : > { %v574_v61 = vpop.xlane.xlu1 %573  ;;  %v577_v62 = vpop.xlane.xlu0 %576 }
 0x141   : > { %5643 = vrsqrt.f32 %v633_v60  ;;  %v618_v63 = vmul.f32 0.0625, %v574_v61  ;;  %v619_v2 = vmul.f32 0.0625, %v577_v62 }
 0x143   : > { %v634_v3 = vadd.f32 1e-06, %v618_v63  ;;  %v635_v4 = vadd.f32 1e-06, %v619_v2 }
 0x144   : > { %v580_v5 = vpop.xlane.xlu1 %579  ;;  %v583_v6 = vpop.xlane.xlu0 %582 }
 0x145   : > { %5645 = vrsqrt.f32 %v634_v3  ;;  %v620_v7 = vmul.f32 0.0625, %v580_v5  ;;  %v621_v8 = vmul.f32 0.0625, %v583_v6 }
 0x146   : > { %5647 = vrsqrt.f32 %v635_v4 }
 0x147   : > { %v636_v9 = vadd.f32 1e-06, %v620_v7  ;;  %v637_v12 = vadd.f32 1e-06, %v621_v8 }
 0x148   : > { %v586_v13 = vpop.xlane.xlu1 %585  ;;  %v589_v14 = vpop.xlane.xlu0 %588 }
 0x149   : > { %5649 = vrsqrt.f32 %v636_v9  ;;  %v622_v15 = vmul.f32 0.0625, %v586_v13  ;;  %v623_v18 = vmul.f32 0.0625, %v589_v14 }
 0x14a   : > { %5651 = vrsqrt.f32 %v637_v12 }
 0x14b   : > { %v638_v19 = vadd.f32 1e-06, %v622_v15  ;;  %v639_v22 = vadd.f32 1e-06, %v623_v18 }
 0x14c   : > { %v592_v16 = vpop.xlane.xlu1 %591  ;;  %v595_v26 = vpop.xlane.xlu0 %594 }
 0x14d   : > { %5653 = vrsqrt.f32 %v638_v19  ;;  %v624_v27 = vmul.f32 0.0625, %v592_v16  ;;  %v625_v30 = vmul.f32 0.0625, %v595_v26 }
 0x14e   : > { %v5644_v31 = vpop.eup %5643  ;;  %5655 = vrsqrt.f32 %v639_v22 }
 0x14f   : > { %v640_v33 = vadd.f32 1e-06, %v624_v27  ;;  %v641_v34 = vadd.f32 1e-06, %v625_v30  ;;  %v665_v20 = vmul.f32 %v5644_v31, %v6109_v36 }
 0x150   : > { %v598_v38 = vpop.xlane.xlu1 %597  ;;  %v601_v39 = vpop.xlane.xlu0 %600 }
 0x151   : > { %5657 = vrsqrt.f32 %v640_v33  ;;  %v626_v41 = vmul.f32 0.0625, %v598_v38  ;;  %v627_v42 = vmul.f32 0.0625, %v601_v39  ;;  %v688_v43 = vmul.f32 %v6214_v32, %v665_v20 }
 0x152   : > { %v5646_v46 = vpop.eup %5645  ;;  %5659 = vrsqrt.f32 %v641_v34 }
 0x153   : > { %v5648_v24 = vpop.eup %5647  ;;  %v642_v48 = vadd.f32 1e-06, %v626_v41  ;;  %v643_v49 = vadd.f32 1e-06, %v627_v42  ;;  %v711_v50 = vadd.f32 %v6220_v40, %v688_v43  ;;  %v666_v36 = vmul.f32 %v5646_v46, %v6117_v44 }
 0x154   : > { %v604_v51 = vpop.xlane.xlu1 %603  ;;  %v607_v52 = vpop.xlane.xlu0 %606  ;;  %v667_v28 = vmul.f32 %v5648_v24, %v6111_v37 }
 0x155   : > { %5661 = vrsqrt.f32 %v642_v48  ;;  %v628_v29 = vmul.f32 0.0625, %v604_v51  ;;  %v629_v53 = vmul.f32 0.0625, %v607_v52  ;;  %5143 = vmatprep.mubr.msk.f32.mxu0 %vm471_vm0, %v711_v50  ;;  %5171 = vmatprep.mubr.msk.f32.mxu1 %vm471_vm0, %v711_v50  ;;  %v689_v56 = vmul.f32 %v6214_v32, %v666_v36 }
 0x156   : > { %v5650_v57 = vpop.eup %5649  ;;  %5663 = vrsqrt.f32 %v643_v49  ;;  %v690_v58 = vmul.f32 %v6214_v32, %v667_v28 }
 0x157   : > { %v5652_v59 = vpop.eup %5651  ;;  %v644_v60 = vadd.f32 1e-06, %v628_v29  ;;  %v645_v44 = vadd.f32 1e-06, %v629_v53  ;;  %v712_v61 = vadd.f32 %v6220_v40, %v689_v56  ;;  %v668_v37 = vmul.f32 %v5650_v57, %v6119_v45 }
 0x158   : > { %v610_v62 = vpop.xlane.xlu1 %609  ;;  %v613_v63 = vpop.xlane.xlu0 %612  ;;  %v713_v2 = vadd.f32 %v6220_v40, %v690_v58  ;;  %v669_v3 = vmul.f32 %v5652_v59, %v6127_v54 }
 0x159   : > { %5665 = vrsqrt.f32 %v644_v60  ;;  %v630_v4 = vmul.f32 0.0625, %v610_v62  ;;  %v631_v5 = vmul.f32 0.0625, %v613_v63  ;;  %5144 = vmatmul.mubr.msk.f32.vlgmr.msra.gmra.mxu0 %vm471_vm0, %v712_v61  ;;  %5172 = vmatmul.mubr.msk.f32.vlgmr.msra.gmra.mxu1 %vm471_vm0, %v712_v61  ;;  %v691_v6 = vmul.f32 %v6214_v32, %v668_v37 }
 0x15a   : > { %v5654_v7 = vpop.eup %5653  ;;  %5667 = vrsqrt.f32 %v645_v44  ;;  %5146 = vmatprep.mubr.msk.f32.mxu0 %vm471_vm0, %v713_v2  ;;  %5174 = vmatprep.mubr.msk.f32.mxu1 %vm471_vm0, %v713_v2  ;;  %v692_v45 = vmul.f32 %v6214_v32, %v669_v3 }
 0x15b   : > { %v5656_v8 = vpop.eup %5655  ;;  %v646_v9 = vadd.f32 1e-06, %v630_v4  ;;  %v647_v54 = vadd.f32 1e-06, %v631_v5  ;;  %v714_v12 = vadd.f32 %v6220_v40, %v691_v6  ;;  %v670_v13 = vmul.f32 %v5654_v7, %v6129_v55 }
 0x15c   : > { %v616_v14 = vpop.xlane.xlu1 %615  ;;  %v715_v15 = vadd.f32 %v6220_v40, %v692_v45  ;;  %v671_v18 = vmul.f32 %v5656_v8, %v6138_v0 }
 0x15d   : > { %5669 = vrsqrt.f32 %v646_v9  ;;  %v632_v19 = vmul.f32 0.0625, %v616_v14  ;;  %5147 = vmatmul.mubr.msk.f32.gmra.mxu0 %vm471_vm0, %v714_v12  ;;  %5175 = vmatmul.mubr.msk.f32.gmra.mxu1 %vm471_vm0, %v714_v12  ;;  %v693_v22 = vmul.f32 %v6214_v32, %v670_v13 }
 0x15e   : > { %v5658_v16 = vpop.eup %5657  ;;  %5671 = vrsqrt.f32 %v647_v54  ;;  %5149 = vmatprep.mubr.msk.f32.mxu0 %vm471_vm0, %v715_v15  ;;  %5177 = vmatprep.mubr.msk.f32.mxu1 %vm471_vm0, %v715_v15  ;;  %v694_v55 = vmul.f32 %v6214_v32, %v671_v18 }
 0x15f   : > { %v5660_v26 = vpop.eup %5659  ;;  %v648_v27 = vadd.f32 1e-06, %v632_v19  ;;  %v716_v0 = vadd.f32 %v6220_v40, %v693_v22  ;;  %v672_v30 = vmul.f32 %v5658_v16, %v6141_v1 }
 0x160   : > { %v717_v31 = vadd.f32 %v6220_v40, %v694_v55  ;;  %v673_v33 = vmul.f32 %v5660_v26, %v6150_v10 }
 0x161   : > { %5673 = vrsqrt.f32 %v648_v27  ;;  %5150 = vmatmul.mubr.msk.f32.gmra.mxu0 %vm471_vm0, %v716_v0  ;;  %5178 = vmatmul.mubr.msk.f32.gmra.mxu1 %vm471_vm0, %v716_v0  ;;  %v695_v34 = vmul.f32 %v6214_v32, %v672_v30 }
 0x162   : > { %v5662_v20 = vpop.eup %5661  ;;  %5152 = vmatprep.mubr.msk.f32.mxu0 %vm471_vm0, %v717_v31  ;;  %5180 = vmatprep.mubr.msk.f32.mxu1 %vm471_vm0, %v717_v31  ;;  %v696_v38 = vmul.f32 %v6214_v32, %v673_v33 }
 0x163   : > { %v5664_v39 = vpop.eup %5663  ;;  %v718_v1 = vadd.f32 %v6220_v40, %v695_v34  ;;  %v674_v41 = vmul.f32 %v5662_v20, %v6153_v11 }
 0x164   : > { %v719_v10 = vadd.f32 %v6220_v40, %v696_v38  ;;  %v675_v42 = vmul.f32 %v5664_v39, %v6162_v23 }
 0x165   : > { %5153 = vmatmul.mubr.msk.f32.gmra.mxu0 %vm471_vm0, %v718_v1  ;;  %5181 = vmatmul.mubr.msk.f32.gmra.mxu1 %vm471_vm0, %v718_v1  ;;  %v697_v43 = vmul.f32 %v6214_v32, %v674_v41 }
 0x166   : > { %v5666_v46 = vpop.eup %5665  ;;  %5155 = vmatprep.mubr.msk.f32.mxu0 %vm471_vm0, %v719_v10  ;;  %5183 = vmatprep.mubr.msk.f32.mxu1 %vm471_vm0, %v719_v10  ;;  %v698_v24 = vmul.f32 %v6214_v32, %v675_v42 }
 0x167   : > { %v5668_v48 = vpop.eup %5667  ;;  %v720_v11 = vadd.f32 %v6220_v40, %v697_v43  ;;  %v676_v49 = vmul.f32 %v5666_v46, %v6165_v17 }
 0x168   : > { %v721_v23 = vadd.f32 %v6220_v40, %v698_v24  ;;  %v677_v50 = vmul.f32 %v5668_v48, %v6174_v35 }
 0x169   : > { %5156 = vmatmul.mubr.msk.f32.gmra.mxu0 %vm471_vm0, %v720_v11  ;;  %5184 = vmatmul.mubr.msk.f32.gmra.mxu1 %vm471_vm0, %v720_v11  ;;  %v699_v36 = vmul.f32 %v6214_v32, %v676_v49 }
 0x16a   : > { %v5670_v51 = vpop.eup %5669  ;;  %5158 = vmatprep.mubr.msk.f32.mxu0 %vm471_vm0, %v721_v23  ;;  %5186 = vmatprep.mubr.msk.f32.mxu1 %vm471_vm0, %v721_v23  ;;  %v700_v52 = vmul.f32 %v6214_v32, %v677_v50 }
 0x16b   : > { %v5672_v28 = vpop.eup %5671  ;;  %v722_v17 = vadd.f32 %v6220_v40, %v699_v36  ;;  %v678_v29 = vmul.f32 %v5670_v51, %v6177_v21 }
 0x16c   : > { %v723_v35 = vadd.f32 %v6220_v40, %v700_v52  ;;  %v679_v53 = vmul.f32 %v5672_v28, %v6186_v47 }
 0x16d   : > { %5159 = vmatmul.mubr.msk.f32.gmra.mxu0 %vm471_vm0, %v722_v17  ;;  %5187 = vmatmul.mubr.msk.f32.gmra.mxu1 %vm471_vm0, %v722_v17  ;;  %v701_v56 = vmul.f32 %v6214_v32, %v678_v29 }
 0x16e   : > { %v5674_v57 = vpop.eup %5673  ;;  %5161 = vmatprep.mubr.msk.f32.mxu0 %vm471_vm0, %v723_v35  ;;  %5189 = vmatprep.mubr.msk.f32.mxu1 %vm471_vm0, %v723_v35  ;;  %v702_v58 = vmul.f32 %v6214_v32, %v679_v53 }
 0x16f   : > { %v724_v59 = vadd.f32 %v6220_v40, %v701_v56  ;;  %v680_v21 = vmul.f32 %v5674_v57, %v6189_v25  ;;  %v5927_v25 = vmov -inf  }
 0x170   : > { %v725_v60 = vadd.f32 %v6220_v40, %v702_v58  ;;  %1135 = vst.msk [vmem:[#allocation3] sm:$0xff] %vm1134_vm2, %v5927_v25  ;;  %1136 = vst.msk [vmem:[#allocation3 + $0x8] sm:$0xff] %vm1134_vm2, %v5927_v25 }
 0x171   : > { %5162 = vmatmul.mubr.msk.f32.gmra.mxu0 %vm471_vm0, %v724_v59  ;;  %5190 = vmatmul.mubr.msk.f32.gmra.mxu1 %vm471_vm0, %v724_v59  ;;  %v703_v47 = vmul.f32 %v6214_v32, %v680_v21  ;;  %1137 = vst.msk [vmem:[#allocation3 + $0x10] sm:$0xff] %vm1134_vm2, %v5927_v25  ;;  %1138 = vst.msk [vmem:[#allocation3 + $0x18] sm:$0xff] %vm1134_vm2, %v5927_v25  ;;  %v5928_v32 = vmov 0.0  }
 0x172   : > { %5164 = vmatprep.mubr.msk.f32.mxu0 %vm471_vm0, %v725_v60  ;;  %5192 = vmatprep.mubr.msk.f32.mxu1 %vm471_vm0, %v725_v60  ;;  %1139 = vst.msk [vmem:[#allocation3 + $0x20] sm:$0xff] %vm1134_vm2, %v5927_v25  ;;  %1140 = vst.msk [vmem:[#allocation3 + $0x28] sm:$0xff] %vm1134_vm2, %v5927_v25 }
 0x173   : > { %v726_v44 = vadd.f32 %v6220_v40, %v703_v47  ;;  %1141 = vst.msk [vmem:[#allocation3 + $0x30] sm:$0xff] %vm1134_vm2, %v5927_v25  ;;  %1142 = vst.msk [vmem:[#allocation3 + $0x38] sm:$0xff] %vm1134_vm2, %v5927_v25 }
 0x174   : > { %1143 = vst.msk [vmem:[#allocation3 + $0x40] sm:$0xff] %vm1134_vm2, %v5927_v25  ;;  %1144 = vst.msk [vmem:[#allocation3 + $0x48] sm:$0xff] %vm1134_vm2, %v5927_v25 }
 0x175   : > { %5165 = vmatmul.mubr.msk.f32.gmra.mxu0 %vm471_vm0, %v726_v44  ;;  %5193 = vmatmul.mubr.msk.f32.gmra.mxu1 %vm471_vm0, %v726_v44  ;;  %1145 = vst.msk [vmem:[#allocation3 + $0x50] sm:$0xff] %vm1134_vm2, %v5927_v25  ;;  %1146 = vst.msk [vmem:[#allocation3 + $0x58] sm:$0xff] %vm1134_vm2, %v5927_v25 }
 0x176   : > { %1147 = vst.msk [vmem:[#allocation3 + $0x60] sm:$0xff] %vm1134_vm2, %v5927_v25  ;;  %1148 = vst.msk [vmem:[#allocation3 + $0x68] sm:$0xff] %vm1134_vm2, %v5927_v25 }
 0x177   : > { %1149 = vst.msk [vmem:[#allocation3 + $0x70] sm:$0xff] %vm1134_vm2, %v5927_v25  ;;  %1150 = vst.msk [vmem:[#allocation3 + $0x78] sm:$0xff] %vm1134_vm2, %v5927_v25 }
 0x178   : > { %1151 = vst.msk [vmem:[#allocation3 + $0x80] sm:$0xff] %vm1134_vm2, %v5927_v25  ;;  %1152 = vst.msk [vmem:[#allocation3 + $0x88] sm:$0xff] %vm1134_vm2, %v5927_v25 }
 0x179   : > { %1153 = vst.msk [vmem:[#allocation3 + $0x90] sm:$0xff] %vm1134_vm2, %v5927_v25  ;;  %1154 = vst.msk [vmem:[#allocation3 + $0x98] sm:$0xff] %vm1134_vm2, %v5927_v25 }
 0x17a   : > { %1155 = vst.msk [vmem:[#allocation3 + $0xa0] sm:$0xff] %vm1134_vm2, %v5927_v25  ;;  %1156 = vst.msk [vmem:[#allocation3 + $0xa8] sm:$0xff] %vm1134_vm2, %v5927_v25 }
 0x17b   : > { %1157 = vst.msk [vmem:[#allocation3 + $0xb0] sm:$0xff] %vm1134_vm2, %v5927_v25  ;;  %1158 = vst.msk [vmem:[#allocation3 + $0xb8] sm:$0xff] %vm1134_vm2, %v5927_v25 }
 0x17c   : > { %1159 = vst.msk [vmem:[#allocation3 + $0xc0] sm:$0xff] %vm1134_vm2, %v5927_v25  ;;  %1160 = vst.msk [vmem:[#allocation3 + $0xc8] sm:$0xff] %vm1134_vm2, %v5927_v25 }
 0x17d   : > { %1161 = vst.msk [vmem:[#allocation3 + $0xd0] sm:$0xff] %vm1134_vm2, %v5927_v25  ;;  %1162 = vst.msk [vmem:[#allocation3 + $0xd8] sm:$0xff] %vm1134_vm2, %v5927_v25 }
 0x17e   : > { %1163 = vst.msk [vmem:[#allocation3 + $0xe0] sm:$0xff] %vm1134_vm2, %v5927_v25  ;;  %1164 = vst.msk [vmem:[#allocation3 + $0xe8] sm:$0xff] %vm1134_vm2, %v5927_v25 }
 0x17f   : > { %1165 = vst.msk [vmem:[#allocation3 + $0xf0] sm:$0xff] %vm1134_vm2, %v5927_v25  ;;  %1166 = vst.msk [vmem:[#allocation3 + $0xf8] sm:$0xff] %vm1134_vm2, %v5927_v25 }
 0x180   : > { %1167 = vst.msk [vmem:[#allocation4] sm:$0xff] %vm1134_vm2, %v5928_v32  ;;  %1168 = vst.msk [vmem:[#allocation4 + $0x8] sm:$0xff] %vm1134_vm2, %v5928_v32 }
 0x181   : > { %1169 = vst.msk [vmem:[#allocation4 + $0x10] sm:$0xff] %vm1134_vm2, %v5928_v32  ;;  %1170 = vst.msk [vmem:[#allocation4 + $0x18] sm:$0xff] %vm1134_vm2, %v5928_v32 }
 0x182   : > { %1171 = vst.msk [vmem:[#allocation4 + $0x20] sm:$0xff] %vm1134_vm2, %v5928_v32  ;;  %1172 = vst.msk [vmem:[#allocation4 + $0x28] sm:$0xff] %vm1134_vm2, %v5928_v32 }
 0x183   : > { %1173 = vst.msk [vmem:[#allocation4 + $0x30] sm:$0xff] %vm1134_vm2, %v5928_v32  ;;  %1174 = vst.msk [vmem:[#allocation4 + $0x38] sm:$0xff] %vm1134_vm2, %v5928_v32 }
 0x184   : > { %1175 = vst.msk [vmem:[#allocation4 + $0x40] sm:$0xff] %vm1134_vm2, %v5928_v32  ;;  %1176 = vst.msk [vmem:[#allocation4 + $0x48] sm:$0xff] %vm1134_vm2, %v5928_v32 }
 0x185   : > { %1177 = vst.msk [vmem:[#allocation4 + $0x50] sm:$0xff] %vm1134_vm2, %v5928_v32  ;;  %1178 = vst.msk [vmem:[#allocation4 + $0x58] sm:$0xff] %vm1134_vm2, %v5928_v32 }
 0x186   : > { %1179 = vst.msk [vmem:[#allocation4 + $0x60] sm:$0xff] %vm1134_vm2, %v5928_v32  ;;  %1180 = vst.msk [vmem:[#allocation4 + $0x68] sm:$0xff] %vm1134_vm2, %v5928_v32 }
 0x187   : > { %1181 = vst.msk [vmem:[#allocation4 + $0x70] sm:$0xff] %vm1134_vm2, %v5928_v32  ;;  %1182 = vst.msk [vmem:[#allocation4 + $0x78] sm:$0xff] %vm1134_vm2, %v5928_v32 }
 0x188   : > { %1183 = vst.msk [vmem:[#allocation4 + $0x80] sm:$0xff] %vm1134_vm2, %v5928_v32  ;;  %1184 = vst.msk [vmem:[#allocation4 + $0x88] sm:$0xff] %vm1134_vm2, %v5928_v32 }
 0x189   : > { %1185 = vst.msk [vmem:[#allocation4 + $0x90] sm:$0xff] %vm1134_vm2, %v5928_v32  ;;  %1186 = vst.msk [vmem:[#allocation4 + $0x98] sm:$0xff] %vm1134_vm2, %v5928_v32 }
 0x18a   : > { %1187 = vst.msk [vmem:[#allocation4 + $0xa0] sm:$0xff] %vm1134_vm2, %v5928_v32  ;;  %1188 = vst.msk [vmem:[#allocation4 + $0xa8] sm:$0xff] %vm1134_vm2, %v5928_v32 }
 0x18b   : > { %1189 = vst.msk [vmem:[#allocation4 + $0xb0] sm:$0xff] %vm1134_vm2, %v5928_v32  ;;  %1190 = vst.msk [vmem:[#allocation4 + $0xb8] sm:$0xff] %vm1134_vm2, %v5928_v32 }
 0x18c   : > { %1191 = vst.msk [vmem:[#allocation4 + $0xc0] sm:$0xff] %vm1134_vm2, %v5928_v32  ;;  %1192 = vst.msk [vmem:[#allocation4 + $0xc8] sm:$0xff] %vm1134_vm2, %v5928_v32 }
 0x18d   : > { %1193 = vst.msk [vmem:[#allocation4 + $0xd0] sm:$0xff] %vm1134_vm2, %v5928_v32  ;;  %1194 = vst.msk [vmem:[#allocation4 + $0xd8] sm:$0xff] %vm1134_vm2, %v5928_v32 }
 0x18e   : > { %1195 = vst.msk [vmem:[#allocation4 + $0xe0] sm:$0xff] %vm1134_vm2, %v5928_v32  ;;  %1196 = vst.msk [vmem:[#allocation4 + $0xe8] sm:$0xff] %vm1134_vm2, %v5928_v32 }
 0x18f   : > { %1197 = vst.msk [vmem:[#allocation4 + $0xf0] sm:$0xff] %vm1134_vm2, %v5928_v32  ;;  %1198 = vst.msk [vmem:[#allocation4 + $0xf8] sm:$0xff] %vm1134_vm2, %v5928_v32 }
 0x190   : > { %1199 = vst.msk [vmem:[#allocation5] sm:$0xff] %vm1101_vm1, %v5928_v32  ;;  %1200 = vst.msk [vmem:[#allocation5 + $0x8] sm:$0xff] %vm1101_vm1, %v5928_v32 }
 0x191   : > { %1201 = vst.msk [vmem:[#allocation5 + $0x10] sm:$0xff] %vm1101_vm1, %v5928_v32  ;;  %1202 = vst.msk [vmem:[#allocation5 + $0x18] sm:$0xff] %vm1101_vm1, %v5928_v32 }
 0x192   : > { %1203 = vst.msk [vmem:[#allocation5 + $0x20] sm:$0xff] %vm1101_vm1, %v5928_v32  ;;  %1204 = vst.msk [vmem:[#allocation5 + $0x28] sm:$0xff] %vm1101_vm1, %v5928_v32 }
 0x193   : > { %1205 = vst.msk [vmem:[#allocation5 + $0x30] sm:$0xff] %vm1101_vm1, %v5928_v32  ;;  %1206 = vst.msk [vmem:[#allocation5 + $0x38] sm:$0xff] %vm1101_vm1, %v5928_v32 }
 0x194   : > { %1207 = vst.msk [vmem:[#allocation5 + $0x40] sm:$0xff] %vm1101_vm1, %v5928_v32  ;;  %1208 = vst.msk [vmem:[#allocation5 + $0x48] sm:$0xff] %vm1101_vm1, %v5928_v32 }
 0x195   : > { %1209 = vst.msk [vmem:[#allocation5 + $0x50] sm:$0xff] %vm1101_vm1, %v5928_v32  ;;  %1210 = vst.msk [vmem:[#allocation5 + $0x58] sm:$0xff] %vm1101_vm1, %v5928_v32 }
 0x196   : > { %1211 = vst.msk [vmem:[#allocation5 + $0x60] sm:$0xff] %vm1101_vm1, %v5928_v32  ;;  %1212 = vst.msk [vmem:[#allocation5 + $0x68] sm:$0xff] %vm1101_vm1, %v5928_v32 }
 0x197   : > { %1213 = vst.msk [vmem:[#allocation5 + $0x70] sm:$0xff] %vm1101_vm1, %v5928_v32  ;;  %1214 = vst.msk [vmem:[#allocation5 + $0x78] sm:$0xff] %vm1101_vm1, %v5928_v32 }
 0x198   : > { %1215 = vst.msk [vmem:[#allocation5 + $0x80] sm:$0xff] %vm1101_vm1, %v5928_v32  ;;  %1216 = vst.msk [vmem:[#allocation5 + $0x88] sm:$0xff] %vm1101_vm1, %v5928_v32 }
 0x199   : > { %1217 = vst.msk [vmem:[#allocation5 + $0x90] sm:$0xff] %vm1101_vm1, %v5928_v32  ;;  %1218 = vst.msk [vmem:[#allocation5 + $0x98] sm:$0xff] %vm1101_vm1, %v5928_v32 }
 0x19a   : > { %1219 = vst.msk [vmem:[#allocation5 + $0xa0] sm:$0xff] %vm1101_vm1, %v5928_v32  ;;  %1220 = vst.msk [vmem:[#allocation5 + $0xa8] sm:$0xff] %vm1101_vm1, %v5928_v32 }
 0x19b   : > { %1221 = vst.msk [vmem:[#allocation5 + $0xb0] sm:$0xff] %vm1101_vm1, %v5928_v32  ;;  %1222 = vst.msk [vmem:[#allocation5 + $0xb8] sm:$0xff] %vm1101_vm1, %v5928_v32 }
 0x19c   : > { %1223 = vst.msk [vmem:[#allocation5 + $0xc0] sm:$0xff] %vm1101_vm1, %v5928_v32  ;;  %1224 = vst.msk [vmem:[#allocation5 + $0xc8] sm:$0xff] %vm1101_vm1, %v5928_v32 }
 0x19d   : > { %1225 = vst.msk [vmem:[#allocation5 + $0xd0] sm:$0xff] %vm1101_vm1, %v5928_v32  ;;  %1226 = vst.msk [vmem:[#allocation5 + $0xd8] sm:$0xff] %vm1101_vm1, %v5928_v32 }
 0x19e   : > { %1227 = vst.msk [vmem:[#allocation5 + $0xe0] sm:$0xff] %vm1101_vm1, %v5928_v32  ;;  %1228 = vst.msk [vmem:[#allocation5 + $0xe8] sm:$0xff] %vm1101_vm1, %v5928_v32 }
 0x19f   : > { %1229 = vst.msk [vmem:[#allocation5 + $0xf0] sm:$0xff] %vm1101_vm1, %v5928_v32  ;;  %1230 = vst.msk [vmem:[#allocation5 + $0xf8] sm:$0xff] %vm1101_vm1, %v5928_v32 }
 0x219   : > { %v5145_v40 = vpop.f32.mrf.mxu0  ;;  %v5173_v61 = vpop.f32.mrf.mxu1 }
 0x21a   : > { %v1070_v37 = vmul.f32 0.35355338, %v5145_v40  ;;  %v1086_v62 = vmul.f32 0.35355338, %v5173_v61 }
 0x21b   : > { %v845_v63 = vpop.f32.mrf.mxu0  ;;  %v990_v2 = vpop.f32.mrf.mxu1 }
 0x21c   : > { %1103 = vst.msk [vmem:[#allocation2 + $0x8] sm:$0xff] %vm1101_vm1, %v1070_v37  ;;  %1119 = vst.msk [vmem:[#allocation2 + $0x88] sm:$0xff] %vm1101_vm1, %v1086_v62  ;;  %v1069_v3 = vmul.f32 0.35355338, %v845_v63  ;;  %v1085_v4 = vmul.f32 0.35355338, %v990_v2 }
 0x21d   : > { %v5148_v5 = vpop.f32.mrf.mxu0  ;;  %v5176_v6 = vpop.f32.mrf.mxu1 }
 0x21e   : > { %1102 = vst.msk [vmem:[#allocation2] sm:$0xff] %vm1101_vm1, %v1069_v3  ;;  %1118 = vst.msk [vmem:[#allocation2 + $0x80] sm:$0xff] %vm1101_vm1, %v1085_v4  ;;  %v1072_v7 = vmul.f32 0.35355338, %v5148_v5  ;;  %v1088_v45 = vmul.f32 0.35355338, %v5176_v6 }
 0x21f   : > { %v855_v8 = vpop.f32.mrf.mxu0  ;;  %v1000_v9 = vpop.f32.mrf.mxu1 }
 0x220   : > { %1105 = vst.msk [vmem:[#allocation2 + $0x18] sm:$0xff] %vm1101_vm1, %v1072_v7  ;;  %1121 = vst.msk [vmem:[#allocation2 + $0x98] sm:$0xff] %vm1101_vm1, %v1088_v45  ;;  %v1071_v54 = vmul.f32 0.35355338, %v855_v8  ;;  %v1087_v12 = vmul.f32 0.35355338, %v1000_v9 }
 0x221   : > { %v5151_v13 = vpop.f32.mrf.mxu0  ;;  %v5179_v14 = vpop.f32.mrf.mxu1 }
 0x222   : > { %1104 = vst.msk [vmem:[#allocation2 + $0x10] sm:$0xff] %vm1101_vm1, %v1071_v54  ;;  %1120 = vst.msk [vmem:[#allocation2 + $0x90] sm:$0xff] %vm1101_vm1, %v1087_v12  ;;  %v1074_v15 = vmul.f32 0.35355338, %v5151_v13  ;;  %v1090_v18 = vmul.f32 0.35355338, %v5179_v14 }
 0x223   : > { %v865_v19 = vpop.f32.mrf.mxu0  ;;  %v1010_v22 = vpop.f32.mrf.mxu1 }
 0x224   : > { %1107 = vst.msk [vmem:[#allocation2 + $0x28] sm:$0xff] %vm1101_vm1, %v1074_v15  ;;  %1123 = vst.msk [vmem:[#allocation2 + $0xa8] sm:$0xff] %vm1101_vm1, %v1090_v18  ;;  %v1073_v16 = vmul.f32 0.35355338, %v865_v19  ;;  %v1089_v55 = vmul.f32 0.35355338, %v1010_v22 }
 0x225   : > { %v5154_v26 = vpop.f32.mrf.mxu0  ;;  %v5182_v27 = vpop.f32.mrf.mxu1 }
 0x226   : > { %1106 = vst.msk [vmem:[#allocation2 + $0x20] sm:$0xff] %vm1101_vm1, %v1073_v16  ;;  %1122 = vst.msk [vmem:[#allocation2 + $0xa0] sm:$0xff] %vm1101_vm1, %v1089_v55  ;;  %v1076_v0 = vmul.f32 0.35355338, %v5154_v26  ;;  %v1092_v30 = vmul.f32 0.35355338, %v5182_v27 }
 0x227   : > { %v875_v31 = vpop.f32.mrf.mxu0  ;;  %v1020_v33 = vpop.f32.mrf.mxu1 }
 0x228   : > { %1109 = vst.msk [vmem:[#allocation2 + $0x38] sm:$0xff] %vm1101_vm1, %v1076_v0  ;;  %1125 = vst.msk [vmem:[#allocation2 + $0xb8] sm:$0xff] %vm1101_vm1, %v1092_v30  ;;  %v1075_v34 = vmul.f32 0.35355338, %v875_v31  ;;  %v1091_v20 = vmul.f32 0.35355338, %v1020_v33 }
 0x229   : > { %v5157_v38 = vpop.f32.mrf.mxu0  ;;  %v5185_v39 = vpop.f32.mrf.mxu1 }
 0x22a   : > { %1108 = vst.msk [vmem:[#allocation2 + $0x30] sm:$0xff] %vm1101_vm1, %v1075_v34  ;;  %1124 = vst.msk [vmem:[#allocation2 + $0xb0] sm:$0xff] %vm1101_vm1, %v1091_v20  ;;  %v1078_v1 = vmul.f32 0.35355338, %v5157_v38  ;;  %v1094_v41 = vmul.f32 0.35355338, %v5185_v39 }
 0x22b   : > { %v885_v10 = vpop.f32.mrf.mxu0  ;;  %v1030_v42 = vpop.f32.mrf.mxu1 }
 0x22c   : > { %1111 = vst.msk [vmem:[#allocation2 + $0x48] sm:$0xff] %vm1101_vm1, %v1078_v1  ;;  %1127 = vst.msk [vmem:[#allocation2 + $0xc8] sm:$0xff] %vm1101_vm1, %v1094_v41  ;;  %v1077_v43 = vmul.f32 0.35355338, %v885_v10  ;;  %v1093_v46 = vmul.f32 0.35355338, %v1030_v42 }
 0x22d   : > { %v5160_v24 = vpop.f32.mrf.mxu0  ;;  %v5188_v48 = vpop.f32.mrf.mxu1 }
 0x22e   : > { %1110 = vst.msk [vmem:[#allocation2 + $0x40] sm:$0xff] %vm1101_vm1, %v1077_v43  ;;  %1126 = vst.msk [vmem:[#allocation2 + $0xc0] sm:$0xff] %vm1101_vm1, %v1093_v46  ;;  %v1080_v11 = vmul.f32 0.35355338, %v5160_v24  ;;  %v1096_v49 = vmul.f32 0.35355338, %v5188_v48 }
 0x22f   : > { %v895_v23 = vpop.f32.mrf.mxu0  ;;  %v1040_v50 = vpop.f32.mrf.mxu1 }
 0x230   : > { %1113 = vst.msk [vmem:[#allocation2 + $0x58] sm:$0xff] %vm1101_vm1, %v1080_v11  ;;  %1129 = vst.msk [vmem:[#allocation2 + $0xd8] sm:$0xff] %vm1101_vm1, %v1096_v49  ;;  %v1079_v36 = vmul.f32 0.35355338, %v895_v23  ;;  %v1095_v51 = vmul.f32 0.35355338, %v1040_v50 }
 0x231   : > { %v5163_v52 = vpop.f32.mrf.mxu0  ;;  %v5191_v28 = vpop.f32.mrf.mxu1 }
 0x232   : > { %1112 = vst.msk [vmem:[#allocation2 + $0x50] sm:$0xff] %vm1101_vm1, %v1079_v36  ;;  %1128 = vst.msk [vmem:[#allocation2 + $0xd0] sm:$0xff] %vm1101_vm1, %v1095_v51  ;;  %v1082_v17 = vmul.f32 0.35355338, %v5163_v52  ;;  %v1098_v29 = vmul.f32 0.35355338, %v5191_v28 }
 0x233   : > { %v905_v35 = vpop.f32.mrf.mxu0  ;;  %v1050_v53 = vpop.f32.mrf.mxu1 }
 0x234   : > { %1115 = vst.msk [vmem:[#allocation2 + $0x68] sm:$0xff] %vm1101_vm1, %v1082_v17  ;;  %1131 = vst.msk [vmem:[#allocation2 + $0xe8] sm:$0xff] %vm1101_vm1, %v1098_v29  ;;  %v1081_v56 = vmul.f32 0.35355338, %v905_v35  ;;  %v1097_v57 = vmul.f32 0.35355338, %v1050_v53 }
 0x235   : > { %v5166_v58 = vpop.f32.mrf.mxu0  ;;  %v5194_v59 = vpop.f32.mrf.mxu1 }
 0x236   : > { %1114 = vst.msk [vmem:[#allocation2 + $0x60] sm:$0xff] %vm1101_vm1, %v1081_v56  ;;  %1130 = vst.msk [vmem:[#allocation2 + $0xe0] sm:$0xff] %vm1101_vm1, %v1097_v57  ;;  %v1084_v21 = vmul.f32 0.35355338, %v5166_v58  ;;  %v1100_v60 = vmul.f32 0.35355338, %v5194_v59 }
 0x237   : > { %v915_v47 = vpop.f32.mrf.mxu0  ;;  %v1060_v44 = vpop.f32.mrf.mxu1 }
 0x238   : > { %1117 = vst.msk [vmem:[#allocation2 + $0x78] sm:$0xff] %vm1101_vm1, %v1084_v21  ;;  %1133 = vst.msk [vmem:[#allocation2 + $0xf8] sm:$0xff] %vm1101_vm1, %v1100_v60  ;;  %v1083_v25 = vmul.f32 0.35355338, %v915_v47  ;;  %v1099_v32 = vmul.f32 0.35355338, %v1060_v44 }
 0x23a   : > { %1116 = vst.msk [vmem:[#allocation2 + $0x70] sm:$0xff] %vm1101_vm1, %v1083_v25  ;;  %1132 = vst.msk [vmem:[#allocation2 + $0xf0] sm:$0xff] %vm1101_vm1, %v1099_v32 }
 0x23b PF: > { %v1264_v40 = vld [vmem:[%s7771_s4 + $0x8] sm:$0xff]  ;;  %v1266_v61 = vld [vmem:[%s7771_s4 + $0x18] sm:$0xff]  ;;  %v1263_v37 = vld [vmem:[%s7771_s4] sm:$0xff]  ;;  %vm1267_vm3 = vcmask 130048   ;;  %vm1980_vm4 = vcmask 64512   ;;  %vm3103_vm5 = vcmask 7168  }
 0x23c   : > { %5195 = vmatprep.subr.mxu0 %v1264_v40  ;;  %5223 = vmatprep.subr.mxu1 %v1266_v61  ;;  %v1265_v62 = vld [vmem:[%s7771_s4 + $0x10] sm:$0xff]  ;;  %v1231_v63 = vld [vmem:[%s6039_s11] sm:$0xff]  ;;  %v1232_v2 = vld [vmem:[%s6039_s11 + $0x8] sm:$0xff]  ;;  %p4834_p10 = scmp.ne.s32.totalorder %s5901_s30, 1 }
 0x23d   : > { %5196 = vmatpush3.msra.mxu0 %v1264_v40  ;;  %5224 = vmatpush3.msra.mxu1 %v1266_v61  ;;  %v1233_v3 = vld [vmem:[%s6039_s11 + $0x10] sm:$0xff]  ;;  %v1607_v4 = vld [vmem:[%s7772_s5 + $0x8] sm:$0xff]  ;;  %v1234_v5 = vld [vmem:[%s6039_s11 + $0x18] sm:$0xff] }
 0x23e   : > { %5197 = vmatprep.subr.mxu0 %v1263_v37  ;;  %5225 = vmatprep.subr.mxu1 %v1265_v62  ;;  %v1235_v6 = vld [vmem:[%s6039_s11 + $0x20] sm:$0xff]  ;;  %v1609_v7 = vld [vmem:[%s7772_s5 + $0x18] sm:$0xff]  ;;  %v1608_v8 = vld [vmem:[%s7772_s5 + $0x10] sm:$0xff] }
 0x23f   : > { %5198 = vmatpush3.msra.mxu0 %v1263_v37  ;;  %5199 = vmatprep.mubr.msk.f32.mxu0 %vm1267_vm3, %v1231_v63  ;;  %v1606_v45 = vld [vmem:[%s7772_s5] sm:$0xff]  ;;  %v1236_v9 = vld [vmem:[%s6039_s11 + $0x28] sm:$0xff]  ;;  %v1237_v54 = vld [vmem:[%s6039_s11 + $0x30] sm:$0xff] }
 0x240   : > { %5226 = vmatpush3.msra.mxu1 %v1265_v62  ;;  %5227 = vmatprep.mubr.msk.f32.mxu1 %vm1267_vm3, %v1231_v63  ;;  %v1238_v12 = vld [vmem:[%s6039_s11 + $0x38] sm:$0xff]  ;;  %v1239_v13 = vld [vmem:[%s6039_s11 + $0x40] sm:$0xff]  ;;  %v1240_v14 = vld [vmem:[%s6039_s11 + $0x48] sm:$0xff] }
 0x241   : > { %5200 = vmatmul.mubr.msk.f32.vlgmr.msra.gmra.mxu0 %vm1267_vm3, %v1232_v2  ;;  %5228 = vmatmul.mubr.msk.f32.vlgmr.msra.gmra.mxu1 %vm1267_vm3, %v1232_v2  ;;  %v1241_v15 = vld [vmem:[%s6039_s11 + $0x50] sm:$0xff]  ;;  %v1242_v18 = vld [vmem:[%s6039_s11 + $0x58] sm:$0xff]  ;;  %v1243_v19 = vld [vmem:[%s6039_s11 + $0x60] sm:$0xff] }
 0x242   : > { %5202 = vmatprep.mubr.msk.f32.mxu0 %vm1267_vm3, %v1233_v3  ;;  %5230 = vmatprep.mubr.msk.f32.mxu1 %vm1267_vm3, %v1233_v3  ;;  %v1244_v22 = vld [vmem:[%s6039_s11 + $0x68] sm:$0xff]  ;;  %v1245_v16 = vld [vmem:[%s6039_s11 + $0x70] sm:$0xff]  ;;  %v1246_v55 = vld [vmem:[%s6039_s11 + $0x78] sm:$0xff] }
 0x243   : > { %5251 = vmatprep.subr.mxu0 %v1607_v4  ;;  %5279 = vmatprep.subr.mxu1 %v1609_v7  ;;  %v1247_v26 = vld [vmem:[%s6044_s14] sm:$0xff]  ;;  %v1248_v27 = vld [vmem:[%s6044_s14 + $0x8] sm:$0xff]  ;;  %v1249_v0 = vld [vmem:[%s6044_s14 + $0x10] sm:$0xff] }
 0x244   : > { %5252 = vmatpush3.msra.mxu0 %v1607_v4  ;;  %5280 = vmatpush3.msra.mxu1 %v1609_v7  ;;  %v1250_v30 = vld [vmem:[%s6044_s14 + $0x18] sm:$0xff]  ;;  %v1251_v31 = vld [vmem:[%s6044_s14 + $0x20] sm:$0xff]  ;;  %v1252_v33 = vld [vmem:[%s6044_s14 + $0x28] sm:$0xff] }
 0x245   : > { %5203 = vmatmul.mubr.msk.f32.gmra.mxu0 %vm1267_vm3, %v1234_v5  ;;  %5231 = vmatmul.mubr.msk.f32.gmra.mxu1 %vm1267_vm3, %v1234_v5  ;;  %v1253_v34 = vld [vmem:[%s6044_s14 + $0x30] sm:$0xff]  ;;  %v1254_v20 = vld [vmem:[%s6044_s14 + $0x38] sm:$0xff]  ;;  %v1255_v38 = vld [vmem:[%s6044_s14 + $0x40] sm:$0xff] }
 0x246   : > { %5205 = vmatprep.mubr.msk.f32.mxu0 %vm1267_vm3, %v1235_v6  ;;  %5233 = vmatprep.mubr.msk.f32.mxu1 %vm1267_vm3, %v1235_v6  ;;  %v1256_v39 = vld [vmem:[%s6044_s14 + $0x48] sm:$0xff]  ;;  %v1257_v1 = vld [vmem:[%s6044_s14 + $0x50] sm:$0xff]  ;;  %v1258_v41 = vld [vmem:[%s6044_s14 + $0x58] sm:$0xff] }
 0x247   : > { %5253 = vmatprep.subr.mxu0 %v1606_v45  ;;  %5281 = vmatprep.subr.mxu1 %v1608_v8  ;;  %v1259_v10 = vld [vmem:[%s6044_s14 + $0x60] sm:$0xff]  ;;  %v1260_v42 = vld [vmem:[%s6044_s14 + $0x68] sm:$0xff]  ;;  %v1261_v43 = vld [vmem:[%s6044_s14 + $0x70] sm:$0xff] }
 0x248   : > { %5254 = vmatpush3.msra.mxu0 %v1606_v45  ;;  %5282 = vmatpush3.msra.mxu1 %v1608_v8  ;;  %v1262_v46 = vld [vmem:[%s6044_s14 + $0x78] sm:$0xff]  ;;  %v1948_v24 = vld [vmem:[#allocation2] sm:$0xff] }
 0x249   : > { %5206 = vmatmul.mubr.msk.f32.gmra.mxu0 %vm1267_vm3, %v1236_v9  ;;  %5234 = vmatmul.mubr.msk.f32.gmra.mxu1 %vm1267_vm3, %v1236_v9  ;;  %v1964_v48 = vld [vmem:[#allocation2 + $0x80] sm:$0xff] }
 0x24a   : > { %5208 = vmatprep.mubr.msk.f32.mxu0 %vm1267_vm3, %v1237_v54  ;;  %5236 = vmatprep.mubr.msk.f32.mxu1 %vm1267_vm3, %v1237_v54 }
 0x24d   : > { %5209 = vmatmul.mubr.msk.f32.gmra.mxu0 %vm1267_vm3, %v1238_v12  ;;  %5237 = vmatmul.mubr.msk.f32.gmra.mxu1 %vm1267_vm3, %v1238_v12 }
 0x24e   : > { %5211 = vmatprep.mubr.msk.f32.mxu0 %vm1267_vm3, %v1239_v13  ;;  %5239 = vmatprep.mubr.msk.f32.mxu1 %vm1267_vm3, %v1239_v13 }
 0x251   : > { %5212 = vmatmul.mubr.msk.f32.gmra.mxu0 %vm1267_vm3, %v1240_v14  ;;  %5240 = vmatmul.mubr.msk.f32.gmra.mxu1 %vm1267_vm3, %v1240_v14 }
 0x252   : > { %5214 = vmatprep.mubr.msk.f32.mxu0 %vm1267_vm3, %v1241_v15  ;;  %5242 = vmatprep.mubr.msk.f32.mxu1 %vm1267_vm3, %v1241_v15 }
 0x255   : > { %5215 = vmatmul.mubr.msk.f32.gmra.mxu0 %vm1267_vm3, %v1242_v18  ;;  %5243 = vmatmul.mubr.msk.f32.gmra.mxu1 %vm1267_vm3, %v1242_v18 }
 0x256   : > { %5217 = vmatprep.mubr.msk.f32.mxu0 %vm1267_vm3, %v1243_v19  ;;  %5245 = vmatprep.mubr.msk.f32.mxu1 %vm1267_vm3, %v1243_v19 }
 0x259   : > { %5218 = vmatmul.mubr.msk.f32.gmra.mxu0 %vm1267_vm3, %v1244_v22  ;;  %5246 = vmatmul.mubr.msk.f32.gmra.mxu1 %vm1267_vm3, %v1244_v22 }
 0x25a   : > { %5220 = vmatprep.mubr.msk.f32.mxu0 %vm1267_vm3, %v1245_v16  ;;  %5248 = vmatprep.mubr.msk.f32.mxu1 %vm1267_vm3, %v1245_v16 }
 0x25d   : > { %5221 = vmatmul.mubr.msk.f32.gmra.mxu0 %vm1267_vm3, %v1246_v55  ;;  %5249 = vmatmul.mubr.msk.f32.gmra.mxu1 %vm1267_vm3, %v1246_v55 }
 0x25e   : > { %5255 = vmatprep.mubr.msk.f32.mxu0 %vm1267_vm3, %v1247_v26  ;;  %5283 = vmatprep.mubr.msk.f32.mxu1 %vm1267_vm3, %v1247_v26 }
 0x261   : > { %5256 = vmatmul.mubr.msk.f32.vlgmr.msra.gmra.mxu0 %vm1267_vm3, %v1248_v27  ;;  %5284 = vmatmul.mubr.msk.f32.vlgmr.msra.gmra.mxu1 %vm1267_vm3, %v1248_v27 }
 0x262   : > { %5258 = vmatprep.mubr.msk.f32.mxu0 %vm1267_vm3, %v1249_v0  ;;  %5286 = vmatprep.mubr.msk.f32.mxu1 %vm1267_vm3, %v1249_v0 }
 0x265   : > { %5259 = vmatmul.mubr.msk.f32.gmra.mxu0 %vm1267_vm3, %v1250_v30  ;;  %5287 = vmatmul.mubr.msk.f32.gmra.mxu1 %vm1267_vm3, %v1250_v30 }
 0x266   : > { %5261 = vmatprep.mubr.msk.f32.mxu0 %vm1267_vm3, %v1251_v31  ;;  %5289 = vmatprep.mubr.msk.f32.mxu1 %vm1267_vm3, %v1251_v31 }
 0x269   : > { %5262 = vmatmul.mubr.msk.f32.gmra.mxu0 %vm1267_vm3, %v1252_v33  ;;  %5290 = vmatmul.mubr.msk.f32.gmra.mxu1 %vm1267_vm3, %v1252_v33 }
 0x26a   : > { %5264 = vmatprep.mubr.msk.f32.mxu0 %vm1267_vm3, %v1253_v34  ;;  %5292 = vmatprep.mubr.msk.f32.mxu1 %vm1267_vm3, %v1253_v34 }
 0x26d   : > { %5265 = vmatmul.mubr.msk.f32.gmra.mxu0 %vm1267_vm3, %v1254_v20  ;;  %5293 = vmatmul.mubr.msk.f32.gmra.mxu1 %vm1267_vm3, %v1254_v20 }
 0x26e   : > { %5267 = vmatprep.mubr.msk.f32.mxu0 %vm1267_vm3, %v1255_v38  ;;  %5295 = vmatprep.mubr.msk.f32.mxu1 %vm1267_vm3, %v1255_v38 }
 0x271   : > { %5268 = vmatmul.mubr.msk.f32.gmra.mxu0 %vm1267_vm3, %v1256_v39  ;;  %5296 = vmatmul.mubr.msk.f32.gmra.mxu1 %vm1267_vm3, %v1256_v39 }
 0x272   : > { %5270 = vmatprep.mubr.msk.f32.mxu0 %vm1267_vm3, %v1257_v1  ;;  %5298 = vmatprep.mubr.msk.f32.mxu1 %vm1267_vm3, %v1257_v1 }
 0x275   : > { %5271 = vmatmul.mubr.msk.f32.gmra.mxu0 %vm1267_vm3, %v1258_v41  ;;  %5299 = vmatmul.mubr.msk.f32.gmra.mxu1 %vm1267_vm3, %v1258_v41 }
 0x276   : > { %5273 = vmatprep.mubr.msk.f32.mxu0 %vm1267_vm3, %v1259_v10  ;;  %5301 = vmatprep.mubr.msk.f32.mxu1 %vm1267_vm3, %v1259_v10 }
 0x279   : > { %5274 = vmatmul.mubr.msk.f32.gmra.mxu0 %vm1267_vm3, %v1260_v42  ;;  %5302 = vmatmul.mubr.msk.f32.gmra.mxu1 %vm1267_vm3, %v1260_v42 }
 0x27a   : > { %5276 = vmatprep.mubr.msk.f32.mxu0 %vm1267_vm3, %v1261_v43  ;;  %5304 = vmatprep.mubr.msk.f32.mxu1 %vm1267_vm3, %v1261_v43 }
 0x27d   : > { %5277 = vmatmul.mubr.msk.f32.gmra.mxu0 %vm1267_vm3, %v1262_v46  ;;  %5305 = vmatmul.mubr.msk.f32.gmra.mxu1 %vm1267_vm3, %v1262_v46 }
 0x27e   : > { %5339 = vmatprep.mubr.msk.f32.mxu0 %vm1980_vm4, %v1948_v24  ;;  %5395 = vmatprep.mubr.msk.f32.mxu1 %vm1980_vm4, %v1964_v48  ;;  %v1949_v24 = vld [vmem:[#allocation2 + $0x8] sm:$0xff] }
 0x27f   : > { %v1965_v48 = vld [vmem:[#allocation2 + $0x88] sm:$0xff] }
 0x301   : > { %v6615_v11 = vpop.f32.mrf.mxu0  ;;  %v6617_v49 = vpop.f32.mrf.mxu1 }
 0x303   : > { %v6619_v23 = vpop.f32.mrf.mxu0  ;;  %v6621_v50 = vpop.f32.mrf.mxu1 }
 0x305   : > { %v6623_v36 = vpop.f32.mrf.mxu0  ;;  %v6625_v51 = vpop.f32.mrf.mxu1 }
 0x307   : > { %v6627_v52 = vpop.f32.mrf.mxu0  ;;  %v6629_v28 = vpop.f32.mrf.mxu1 }
 0x309   : > { %v6631_v17 = vpop.f32.mrf.mxu0  ;;  %v6633_v29 = vpop.f32.mrf.mxu1 }
 0x30b   : > { %v6635_v35 = vpop.f32.mrf.mxu0  ;;  %v6637_v53 = vpop.f32.mrf.mxu1 }
 0x30d   : > { %v6639_v56 = vpop.f32.mrf.mxu0  ;;  %v6641_v57 = vpop.f32.mrf.mxu1 }
 0x30f   : > { %v6643_v58 = vpop.f32.mrf.mxu0  ;;  %v6645_v59 = vpop.f32.mrf.mxu1 }
 0x311   : > { %v5213_v21 = vpop.f32.mrf.mxu0  ;;  %v5241_v60 = vpop.f32.mrf.mxu1 }
 0x313   : > { %v1422_v47 = vpop.f32.mrf.mxu0  ;;  %v1567_v44 = vpop.f32.mrf.mxu1 }
 0x315   : > { %v5216_v25 = vpop.f32.mrf.mxu0  ;;  %v5244_v32 = vpop.f32.mrf.mxu1 }
 0x317   : > { %v1432_v40 = vpop.f32.mrf.mxu0  ;;  %v1577_v61 = vpop.f32.mrf.mxu1 }
 0x319   : > { %v5219_v37 = vpop.f32.mrf.mxu0  ;;  %v5247_v62 = vpop.f32.mrf.mxu1 }
 0x31b   : > { %v1442_v63 = vpop.f32.mrf.mxu0  ;;  %v1587_v2 = vpop.f32.mrf.mxu1 }
 0x31d   : > { %v5222_v3 = vpop.f32.mrf.mxu0  ;;  %v5250_v4 = vpop.f32.mrf.mxu1 }
 0x31e   : > { %5307 = vmatprep.subr.msk.mxu0 %vm1980_vm4, %v5222_v3  ;;  %5363 = vmatprep.subr.msk.mxu1 %vm1980_vm4, %v5250_v4 }
 0x31f   : > { %v1452_v5 = vpop.f32.mrf.mxu0  ;;  %5308 = vmatpush3.xpose.msk.msra.mxu0 %vm1980_vm4, %v5222_v3  ;;  %5364 = vmatpush3.xpose.msk.msra.mxu1 %vm1980_vm4, %v5250_v4  ;;  %v1597_v6 = vpop.f32.mrf.mxu1  ;;  %v1963_v3 = vld [vmem:[#allocation2 + $0x78] sm:$0xff] }
 0x320   : > { %5309 = vmatprep.subr.msk.mxu0 %vm1980_vm4, %v1452_v5  ;;  %5365 = vmatprep.subr.msk.mxu1 %vm1980_vm4, %v1597_v6  ;;  %v1979_v4 = vld [vmem:[#allocation2 + $0xf8] sm:$0xff] }
 0x321   : > { %v6653_v7 = vpop.f32.mrf.mxu0  ;;  %v6655_v45 = vpop.f32.mrf.mxu1 }
 0x323   : > { %5310 = vmatpush3.xpose.msk.msra.mxu0 %vm1980_vm4, %v1452_v5  ;;  %5366 = vmatpush3.xpose.msk.msra.mxu1 %vm1980_vm4, %v1597_v6  ;;  %v6661_v8 = vpop.f32.mrf.mxu0  ;;  %v6663_v9 = vpop.f32.mrf.mxu1 }
 0x324   : > { %5311 = vmatprep.subr.msk.mxu0 %vm1980_vm4, %v5219_v37  ;;  %5367 = vmatprep.subr.msk.mxu1 %vm1980_vm4, %v5247_v62 }
 0x325   : > { %v6669_v54 = vpop.f32.mrf.mxu0  ;;  %v6671_v12 = vpop.f32.mrf.mxu1 }
 0x327   : > { %5312 = vmatpush3.xpose.msk.msra.mxu0 %vm1980_vm4, %v5219_v37  ;;  %5368 = vmatpush3.xpose.msk.msra.mxu1 %vm1980_vm4, %v5247_v62  ;;  %v6677_v13 = vpop.f32.mrf.mxu0  ;;  %v6679_v14 = vpop.f32.mrf.mxu1  ;;  %v1961_v37 = vld [vmem:[#allocation2 + $0x68] sm:$0xff] }
 0x328   : > { %5313 = vmatprep.subr.msk.mxu0 %vm1980_vm4, %v1442_v63  ;;  %5369 = vmatprep.subr.msk.mxu1 %vm1980_vm4, %v1587_v2  ;;  %v1977_v62 = vld [vmem:[#allocation2 + $0xe8] sm:$0xff] }
 0x329   : > { %v6685_v15 = vpop.f32.mrf.mxu0  ;;  %v6687_v18 = vpop.f32.mrf.mxu1 }
 0x32b   : > { %5314 = vmatpush3.xpose.msk.msra.mxu0 %vm1980_vm4, %v1442_v63  ;;  %5370 = vmatpush3.xpose.msk.msra.mxu1 %vm1980_vm4, %v1587_v2  ;;  %v6693_v19 = vpop.f32.mrf.mxu0  ;;  %v6695_v22 = vpop.f32.mrf.mxu1  ;;  %v1962_v63 = vld [vmem:[#allocation2 + $0x70] sm:$0xff] }
 0x32c   : > { %5315 = vmatprep.subr.msk.mxu0 %vm1980_vm4, %v5216_v25  ;;  %5371 = vmatprep.subr.msk.mxu1 %vm1980_vm4, %v5244_v32  ;;  %v1978_v2 = vld [vmem:[#allocation2 + $0xf0] sm:$0xff] }
 0x32d   : > { %v6701_v16 = vpop.f32.mrf.mxu0  ;;  %v6703_v55 = vpop.f32.mrf.mxu1 }
 0x32f   : > { %5316 = vmatpush3.xpose.msk.msra.mxu0 %vm1980_vm4, %v5216_v25  ;;  %5372 = vmatpush3.xpose.msk.msra.mxu1 %vm1980_vm4, %v5244_v32  ;;  %v6711_v26 = vpop.f32.mrf.mxu0  ;;  %v6713_v27 = vpop.f32.mrf.mxu1  ;;  %v1959_v25 = vld [vmem:[#allocation2 + $0x58] sm:$0xff] }
 0x330   : > { %5317 = vmatprep.subr.msk.mxu0 %vm1980_vm4, %v1432_v40  ;;  %5373 = vmatprep.subr.msk.mxu1 %vm1980_vm4, %v1577_v61  ;;  %v1975_v32 = vld [vmem:[#allocation2 + $0xd8] sm:$0xff] }
 0x331   : > { %v6723_v0 = vpop.f32.mrf.mxu0  ;;  %v6725_v30 = vpop.f32.mrf.mxu1 }
 0x333   : > { %5318 = vmatpush3.xpose.msk.msra.mxu0 %vm1980_vm4, %v1432_v40  ;;  %5374 = vmatpush3.xpose.msk.msra.mxu1 %vm1980_vm4, %v1577_v61  ;;  %v6735_v31 = vpop.f32.mrf.mxu0  ;;  %v6737_v33 = vpop.f32.mrf.mxu1  ;;  %v1960_v40 = vld [vmem:[#allocation2 + $0x60] sm:$0xff] }
 0x334   : > { %5319 = vmatprep.subr.msk.mxu0 %vm1980_vm4, %v5213_v21  ;;  %5375 = vmatprep.subr.msk.mxu1 %vm1980_vm4, %v5241_v60  ;;  %v1976_v61 = vld [vmem:[#allocation2 + $0xe0] sm:$0xff] }
 0x335   : > { %v6747_v34 = vpop.f32.mrf.mxu0  ;;  %v6749_v20 = vpop.f32.mrf.mxu1 }
 0x337   : > { %5320 = vmatpush3.xpose.msk.msra.mxu0 %vm1980_vm4, %v5213_v21  ;;  %5376 = vmatpush3.xpose.msk.msra.mxu1 %vm1980_vm4, %v5241_v60  ;;  %v6759_v38 = vpop.f32.mrf.mxu0  ;;  %v6761_v39 = vpop.f32.mrf.mxu1  ;;  %v1957_v21 = vld [vmem:[#allocation2 + $0x48] sm:$0xff] }
 0x338   : > { %5321 = vmatprep.subr.msk.mxu0 %vm1980_vm4, %v1422_v47  ;;  %5377 = vmatprep.subr.msk.mxu1 %vm1980_vm4, %v1567_v44  ;;  %v1973_v60 = vld [vmem:[#allocation2 + $0xc8] sm:$0xff] }
 0x339   : > { %v5275_v1 = vpop.f32.mrf.mxu0  ;;  %v5303_v41 = vpop.f32.mrf.mxu1 }
 0x33b   : > { %5322 = vmatpush3.xpose.msk.msra.mxu0 %vm1980_vm4, %v1422_v47  ;;  %5378 = vmatpush3.xpose.msk.msra.mxu1 %vm1980_vm4, %v1567_v44  ;;  %v1784_v10 = vpop.f32.mrf.mxu0  ;;  %v1929_v42 = vpop.f32.mrf.mxu1  ;;  %v1958_v47 = vld [vmem:[#allocation2 + $0x50] sm:$0xff] }
 0x33c   : > { %5323 = vmatprep.subr.msk.mxu0 %vm1980_vm4, %v6639_v56  ;;  %5379 = vmatprep.subr.msk.mxu1 %vm1980_vm4, %v6641_v57  ;;  %v1974_v44 = vld [vmem:[#allocation2 + $0xd0] sm:$0xff] }
 0x33d   : > { %v5278_v43 = vpop.f32.mrf.mxu0  ;;  %v5306_v46 = vpop.f32.mrf.mxu1 }
 0x33f   : > { %5324 = vmatpush3.xpose.msk.msra.mxu0 %vm1980_vm4, %v6639_v56  ;;  %5380 = vmatpush3.xpose.msk.msra.mxu1 %vm1980_vm4, %v6641_v57  ;;  %v1955_v56 = vld [vmem:[#allocation2 + $0x38] sm:$0xff] }
 0x340   : > { %5325 = vmatprep.subr.msk.mxu0 %vm1980_vm4, %v6643_v58  ;;  %5381 = vmatprep.subr.msk.mxu1 %vm1980_vm4, %v6645_v59  ;;  %v1971_v57 = vld [vmem:[#allocation2 + $0xb8] sm:$0xff] }
 0x343   : > { %5326 = vmatpush3.xpose.msk.msra.mxu0 %vm1980_vm4, %v6643_v58  ;;  %5382 = vmatpush3.xpose.msk.msra.mxu1 %vm1980_vm4, %v6645_v59  ;;  %v1956_v58 = vld [vmem:[#allocation2 + $0x40] sm:$0xff] }
 0x344   : > { %5327 = vmatprep.subr.msk.mxu0 %vm1980_vm4, %v6631_v17  ;;  %5383 = vmatprep.subr.msk.mxu1 %vm1980_vm4, %v6633_v29  ;;  %v1972_v59 = vld [vmem:[#allocation2 + $0xc0] sm:$0xff] }
 0x347   : > { %5328 = vmatpush3.xpose.msk.msra.mxu0 %vm1980_vm4, %v6631_v17  ;;  %5384 = vmatpush3.xpose.msk.msra.mxu1 %vm1980_vm4, %v6633_v29  ;;  %v1953_v17 = vld [vmem:[#allocation2 + $0x28] sm:$0xff] }
 0x348   : > { %5329 = vmatprep.subr.msk.mxu0 %vm1980_vm4, %v6635_v35  ;;  %5385 = vmatprep.subr.msk.mxu1 %vm1980_vm4, %v6637_v53  ;;  %v1969_v29 = vld [vmem:[#allocation2 + $0xa8] sm:$0xff] }
 0x34b   : > { %5330 = vmatpush3.xpose.msk.msra.mxu0 %vm1980_vm4, %v6635_v35  ;;  %5386 = vmatpush3.xpose.msk.msra.mxu1 %vm1980_vm4, %v6637_v53  ;;  %v1954_v35 = vld [vmem:[#allocation2 + $0x30] sm:$0xff] }
 0x34c   : > { %5331 = vmatprep.subr.msk.mxu0 %vm1980_vm4, %v6623_v36  ;;  %5387 = vmatprep.subr.msk.mxu1 %vm1980_vm4, %v6625_v51  ;;  %v1970_v53 = vld [vmem:[#allocation2 + $0xb0] sm:$0xff] }
 0x34f   : > { %5332 = vmatpush3.xpose.msk.msra.mxu0 %vm1980_vm4, %v6623_v36  ;;  %5388 = vmatpush3.xpose.msk.msra.mxu1 %vm1980_vm4, %v6625_v51  ;;  %v1966_v36 = vld [vmem:[#allocation2 + $0x90] sm:$0xff]  ;;  %v1939_v51 = vpop.f32.mrf.mxu1 }
 0x350   : > { %5333 = vmatprep.subr.msk.mxu0 %vm1980_vm4, %v6627_v52  ;;  %5389 = vmatprep.subr.msk.mxu1 %vm1980_vm4, %v6629_v28 }
 0x353   : > { %5334 = vmatpush3.xpose.msk.msra.mxu0 %vm1980_vm4, %v6627_v52  ;;  %5390 = vmatpush3.xpose.msk.msra.mxu1 %vm1980_vm4, %v6629_v28  ;;  %v1951_v52 = vld [vmem:[#allocation2 + $0x18] sm:$0xff]  ;;  %v1952_v28 = vld [vmem:[#allocation2 + $0x20] sm:$0xff] }
 0x354   : > { %5335 = vmatprep.subr.msk.mxu0 %vm1980_vm4, %v6615_v11  ;;  %5391 = vmatprep.subr.msk.mxu1 %vm1980_vm4, %v6617_v49 }
 0x357   : > { %5336 = vmatpush3.xpose.msk.msra.mxu0 %vm1980_vm4, %v6615_v11  ;;  %5392 = vmatpush3.xpose.msk.msra.mxu1 %vm1980_vm4, %v6617_v49  ;;  %v1950_v11 = vld [vmem:[#allocation2 + $0x10] sm:$0xff]  ;;  %v1794_v49 = vpop.f32.mrf.mxu0 }
 0x358   : > { %5337 = vmatprep.subr.msk.mxu0 %vm1980_vm4, %v6619_v23  ;;  %5393 = vmatprep.subr.msk.mxu1 %vm1980_vm4, %v6621_v50 }
 0x35b   : > { %5338 = vmatpush3.xpose.msk.msra.mxu0 %vm1980_vm4, %v6619_v23  ;;  %5394 = vmatpush3.xpose.msk.msra.mxu1 %vm1980_vm4, %v6621_v50  ;;  %v1967_v23 = vld [vmem:[#allocation2 + $0x98] sm:$0xff]  ;;  %v1968_v50 = vld [vmem:[#allocation2 + $0xa0] sm:$0xff] }
 0x35c   : > { %5419 = vmatprep.subr.mxu0 %v5278_v43  ;;  %5475 = vmatprep.subr.mxu1 %v5306_v46 }
 0x35e   : > { %5340 = vmatmul.mubr.msk.f32.vlgmr.msra.gmra.mxu0 %vm1980_vm4, %v1949_v24  ;;  %5396 = vmatmul.mubr.msk.f32.vlgmr.msra.gmra.mxu1 %vm1980_vm4, %v1965_v48  ;;  %v6965_v48 = vld [vmem:[#allocation3 + $0x88] sm:$0xff] }
 0x35f   : > { %5342 = vmatprep.mubr.msk.f32.mxu0 %vm1980_vm4, %v1950_v11  ;;  %5398 = vmatprep.mubr.msk.f32.mxu1 %vm1980_vm4, %v1966_v36  ;;  %v6967_v11 = vld [vmem:[#allocation3 + $0x8] sm:$0xff] }
 0x360   : > { %5420 = vmatpush3.msra.mxu0 %v5278_v43  ;;  %5476 = vmatpush3.msra.mxu1 %v5306_v46 }
 0x361   : > { %5421 = vmatprep.subr.mxu0 %v1794_v49  ;;  %5477 = vmatprep.subr.mxu1 %v1939_v51 }
 0x362   : > { %5343 = vmatmul.mubr.msk.f32.gmra.mxu0 %vm1980_vm4, %v1951_v52  ;;  %5399 = vmatmul.mubr.msk.f32.gmra.mxu1 %vm1980_vm4, %v1967_v23  ;;  %v6975_v23 = vld [vmem:[#allocation3] sm:$0xff] }
 0x363   : > { %5345 = vmatprep.mubr.msk.f32.mxu0 %vm1980_vm4, %v1952_v28  ;;  %5401 = vmatprep.mubr.msk.f32.mxu1 %vm1980_vm4, %v1968_v50  ;;  %v6977_v28 = vld [vmem:[#allocation3 + $0x18] sm:$0xff] }
 0x364   : > { %5422 = vmatpush3.msra.mxu0 %v1794_v49  ;;  %5478 = vmatpush3.msra.mxu1 %v1939_v51 }
 0x365   : > { %5423 = vmatprep.subr.mxu0 %v5275_v1  ;;  %5479 = vmatprep.subr.mxu1 %v5303_v41 }
 0x366   : > { %5346 = vmatmul.mubr.msk.f32.gmra.mxu0 %vm1980_vm4, %v1953_v17  ;;  %5402 = vmatmul.mubr.msk.f32.gmra.mxu1 %vm1980_vm4, %v1969_v29 }
 0x367   : > { %5348 = vmatprep.mubr.msk.f32.mxu0 %vm1980_vm4, %v1954_v35  ;;  %5404 = vmatprep.mubr.msk.f32.mxu1 %vm1980_vm4, %v1970_v53  ;;  %v6991_v53 = vld [vmem:[#allocation3 + $0x80] sm:$0xff] }
 0x368   : > { %5424 = vmatpush3.msra.mxu0 %v5275_v1  ;;  %5480 = vmatpush3.msra.mxu1 %v5303_v41 }
 0x369   : > { %5425 = vmatprep.subr.mxu0 %v1784_v10  ;;  %5481 = vmatprep.subr.mxu1 %v1929_v42 }
 0x36a   : > { %5349 = vmatmul.mubr.msk.f32.gmra.mxu0 %vm1980_vm4, %v1955_v56  ;;  %5405 = vmatmul.mubr.msk.f32.gmra.mxu1 %vm1980_vm4, %v1971_v57  ;;  %v6993_v56 = vld [vmem:[#allocation3 + $0x98] sm:$0xff] }
 0x36b   : > { %5351 = vmatprep.mubr.msk.f32.mxu0 %vm1980_vm4, %v1956_v58  ;;  %5407 = vmatprep.mubr.msk.f32.mxu1 %vm1980_vm4, %v1972_v59 }
 0x36c   : > { %5426 = vmatpush3.msra.mxu0 %v1784_v10  ;;  %5482 = vmatpush3.msra.mxu1 %v1929_v42 }
 0x36d   : > { %5427 = vmatprep.subr.mxu0 %v6747_v34  ;;  %5483 = vmatprep.subr.mxu1 %v6749_v20 }
 0x36e   : > { %5352 = vmatmul.mubr.msk.f32.gmra.mxu0 %vm1980_vm4, %v1957_v21  ;;  %5408 = vmatmul.mubr.msk.f32.gmra.mxu1 %vm1980_vm4, %v1973_v60  ;;  %v7006_v60 = vld [vmem:[#allocation3 + $0x90] sm:$0xff] }
 0x36f   : > { %5354 = vmatprep.mubr.msk.f32.mxu0 %vm1980_vm4, %v1958_v47  ;;  %5410 = vmatprep.mubr.msk.f32.mxu1 %vm1980_vm4, %v1974_v44  ;;  %v7008_v47 = vld [vmem:[#allocation3 + $0x10] sm:$0xff] }
 0x370   : > { %5428 = vmatpush3.msra.mxu0 %v6747_v34  ;;  %5484 = vmatpush3.msra.mxu1 %v6749_v20  ;;  %v7074_v44 = vld [vmem:[#allocation3 + $0xb0] sm:$0xff] }
 0x371   : > { %5429 = vmatprep.subr.mxu0 %v6759_v38  ;;  %5485 = vmatprep.subr.mxu1 %v6761_v39 }
 0x372   : > { %5355 = vmatmul.mubr.msk.f32.gmra.mxu0 %vm1980_vm4, %v1959_v25  ;;  %5411 = vmatmul.mubr.msk.f32.gmra.mxu1 %vm1980_vm4, %v1975_v32 }
 0x373   : > { %5357 = vmatprep.mubr.msk.f32.mxu0 %vm1980_vm4, %v1960_v40  ;;  %5413 = vmatprep.mubr.msk.f32.mxu1 %vm1980_vm4, %v1976_v61 }
 0x374   : > { %5430 = vmatpush3.msra.mxu0 %v6759_v38  ;;  %5486 = vmatpush3.msra.mxu1 %v6761_v39 }
 0x375   : > { %5431 = vmatprep.subr.mxu0 %v6723_v0  ;;  %5487 = vmatprep.subr.mxu1 %v6725_v30 }
 0x376   : > { %5358 = vmatmul.mubr.msk.f32.gmra.mxu0 %vm1980_vm4, %v1961_v37  ;;  %5414 = vmatmul.mubr.msk.f32.gmra.mxu1 %vm1980_vm4, %v1977_v62  ;;  %v7024_v37 = vld [vmem:[#allocation3 + $0x28] sm:$0xff]  ;;  %v7026_v62 = vld [vmem:[#allocation3 + $0x20] sm:$0xff] }
 0x377   : > { %5360 = vmatprep.mubr.msk.f32.mxu0 %vm1980_vm4, %v1962_v63  ;;  %5416 = vmatprep.mubr.msk.f32.mxu1 %vm1980_vm4, %v1978_v2  ;;  %v7072_v63 = vld [vmem:[#allocation3 + $0xb8] sm:$0xff] }
 0x378   : > { %5432 = vmatpush3.msra.mxu0 %v6723_v0  ;;  %5488 = vmatpush3.msra.mxu1 %v6725_v30 }
 0x379   : > { %5433 = vmatprep.subr.mxu0 %v6735_v31  ;;  %5489 = vmatprep.subr.mxu1 %v6737_v33 }
 0x37a   : > { %5361 = vmatmul.mubr.msk.f32.gmra.mxu0 %vm1980_vm4, %v1963_v3  ;;  %5417 = vmatmul.mubr.msk.f32.gmra.mxu1 %vm1980_vm4, %v1979_v4 }
 0x37b   : > { %5434 = vmatpush3.msra.mxu0 %v6735_v31  ;;  %5490 = vmatpush3.msra.mxu1 %v6737_v33 }
 0x37c   : > { %5435 = vmatprep.subr.mxu0 %v6701_v16  ;;  %5491 = vmatprep.subr.mxu1 %v6703_v55 }
 0x37d   : > { %5436 = vmatpush3.msra.mxu0 %v6701_v16  ;;  %5492 = vmatpush3.msra.mxu1 %v6703_v55 }
 0x37e   : > { %5437 = vmatprep.subr.mxu0 %v6711_v26  ;;  %5493 = vmatprep.subr.mxu1 %v6713_v27 }
 0x37f   : > { %5438 = vmatpush3.msra.mxu0 %v6711_v26  ;;  %5494 = vmatpush3.msra.mxu1 %v6713_v27 }
 0x380   : > { %5439 = vmatprep.subr.mxu0 %v6685_v15  ;;  %5495 = vmatprep.subr.mxu1 %v6687_v18 }
 0x381   : > { %5440 = vmatpush3.msra.mxu0 %v6685_v15  ;;  %5496 = vmatpush3.msra.mxu1 %v6687_v18  ;;  %v5929_v18 = vmov 0  }
 0x382   : > { %5441 = vmatprep.subr.mxu0 %v6693_v19  ;;  %5497 = vmatprep.subr.mxu1 %v6695_v22 }
 0x383   : > { %5442 = vmatpush3.msra.mxu0 %v6693_v19  ;;  %5498 = vmatpush3.msra.mxu1 %v6695_v22 }
 0x384   : > { %5443 = vmatprep.subr.mxu0 %v6669_v54  ;;  %5499 = vmatprep.subr.mxu1 %v6671_v12 }
 0x385   : > { %5444 = vmatpush3.msra.mxu0 %v6669_v54  ;;  %5500 = vmatpush3.msra.mxu1 %v6671_v12 }
 0x386   : > { %5445 = vmatprep.subr.mxu0 %v6677_v13  ;;  %5501 = vmatprep.subr.mxu1 %v6679_v14 }
 0x387   : > { %5446 = vmatpush3.msra.mxu0 %v6677_v13  ;;  %5502 = vmatpush3.msra.mxu1 %v6679_v14 }
 0x388   : > { %5447 = vmatprep.subr.mxu0 %v6653_v7  ;;  %5503 = vmatprep.subr.mxu1 %v6655_v45 }
 0x389   : > { %5448 = vmatpush3.msra.mxu0 %v6653_v7  ;;  %5504 = vmatpush3.msra.mxu1 %v6655_v45 }
 0x38a   : > { %5449 = vmatprep.subr.mxu0 %v6661_v8  ;;  %5505 = vmatprep.subr.mxu1 %v6663_v9 }
 0x38b   : > { %5450 = vmatpush3.msra.mxu0 %v6661_v8  ;;  %5506 = vmatpush3.msra.mxu1 %v6663_v9 }
 0x38c   : > { %5676 = vset.pattern.permute.xlu0 %v5929_v18  ;;  %5675 = vset.pattern.permute.xlu1 %v5929_v18 }
 0x41e   : > { %v6869_v5 = vpop.f32.mrf.mxu0  ;;  %v6871_v6 = vpop.f32.mrf.mxu1 }
 0x41f   : > { %7816 = vst [vmem:[#allocation10_spill] sm:$0xff] %v6869_v5  ;;  %7817 = vst [vmem:[#allocation11_spill] sm:$0xff] %v6871_v6  ;;  %2529 = vmax.xlane.f32.xlu1 %v6871_v6  ;;  %2497 = vmax.xlane.f32.xlu0 %v6869_v5  ;;  %v7206_v5 = vld [vmem:[#allocation3 + $0xf8] sm:$0xff] }
 0x420   : > { %v6875_v54 = vpop.f32.mrf.mxu0  ;;  %v6879_v45 = vpop.f32.mrf.mxu1 }
 0x421   : > { %7818 = vst [vmem:[#allocation12_spill] sm:$0xff] %v6875_v54  ;;  %7820 = vst [vmem:[#allocation14_spill] sm:$0xff] %v6879_v45 }
 0x422   : > { %v6877_v7 = vpop.f32.mrf.mxu0  ;;  %v6883_v8 = vpop.f32.mrf.mxu1 }
 0x423   : > { %7819 = vst [vmem:[#allocation13_spill] sm:$0xff] %v6877_v7  ;;  %2495 = vmax.xlane.f32.xlu0 %v6875_v54  ;;  %2501 = vmax.xlane.f32.xlu1 %v6877_v7  ;;  %7821 = vst [vmem:[#allocation15_spill] sm:$0xff] %v6883_v8  ;;  %v7186_v7 = vld [vmem:[#allocation3 + $0x70] sm:$0xff] }
 0x424   : > { %v6885_v9 = vpop.f32.mrf.mxu0  ;;  %v6889_v12 = vpop.f32.mrf.mxu1  ;;  %7849 = vst [vmem:[#allocation43_spill] sm:$0xff] %v7186_v7  ;;  %v7204_v54 = vld [vmem:[#allocation3 + $0xf0] sm:$0xff] }
 0x425   : > { %7822 = vst [vmem:[#allocation16_spill] sm:$0xff] %v6885_v9  ;;  %7823 = vst [vmem:[#allocation17_spill] sm:$0xff] %v6889_v12 }
 0x426   : > { %v6891_v13 = vpop.f32.mrf.mxu0  ;;  %v6897_v15 = vpop.f32.mrf.mxu1 }
 0x427   : > { %2527 = vmax.xlane.f32.xlu0 %v6879_v45  ;;  %2533 = vmax.xlane.f32.xlu1 %v6883_v8  ;;  %7824 = vst [vmem:[#allocation18_spill] sm:$0xff] %v6891_v13  ;;  %7826 = vst [vmem:[#allocation20_spill] sm:$0xff] %v6897_v15  ;;  %v7188_v45 = vld [vmem:[#allocation3 + $0x78] sm:$0xff] }
 0x428   : > { %v6895_v14 = vpop.f32.mrf.mxu0  ;;  %v6901_v19 = vpop.f32.mrf.mxu1 }
 0x429   : > { %7825 = vst [vmem:[#allocation19_spill] sm:$0xff] %v6895_v14  ;;  %7827 = vst [vmem:[#allocation21_spill] sm:$0xff] %v6901_v19 }
 0x42a   : > { %v6903_v22 = vpop.f32.mrf.mxu0  ;;  %v6909_v55 = vpop.f32.mrf.mxu1 }
 0x42b   : > { %2531 = vmax.xlane.f32.xlu0 %v6889_v12  ;;  %2499 = vmax.xlane.f32.xlu1 %v6885_v9  ;;  %7828 = vst [vmem:[#allocation22_spill] sm:$0xff] %v6903_v22  ;;  %7830 = vst [vmem:[#allocation24_spill] sm:$0xff] %v6909_v55  ;;  %v7171_v12 = vld [vmem:[#allocation3 + $0xe0] sm:$0xff] }
 0x42c   : > { %v6907_v16 = vpop.f32.mrf.mxu0  ;;  %v6913_v26 = vpop.f32.mrf.mxu1  ;;  %7848 = vst [vmem:[#allocation42_spill] sm:$0xff] %v7171_v12 }
 0x42d   : > { %7829 = vst [vmem:[#allocation23_spill] sm:$0xff] %v6907_v16  ;;  %7831 = vst [vmem:[#allocation25_spill] sm:$0xff] %v6913_v26 }
 0x42e   : > { %v6915_v27 = vpop.f32.mrf.mxu0  ;;  %v6921_v30 = vpop.f32.mrf.mxu1 }
 0x42f   : > { %2505 = vmax.xlane.f32.xlu1 %v6891_v13  ;;  %2503 = vmax.xlane.f32.xlu0 %v6895_v14  ;;  %7832 = vst [vmem:[#allocation26_spill] sm:$0xff] %v6915_v27  ;;  %7834 = vst [vmem:[#allocation28_spill] sm:$0xff] %v6921_v30  ;;  %v7169_v13 = vld [vmem:[#allocation3 + $0xe8] sm:$0xff] }
 0x430   : > { %v6919_v0 = vpop.f32.mrf.mxu0  ;;  %v6925_v31 = vpop.f32.mrf.mxu1 }
 0x431   : > { %7833 = vst [vmem:[#allocation27_spill] sm:$0xff] %v6919_v0  ;;  %7835 = vst [vmem:[#allocation29_spill] sm:$0xff] %v6925_v31 }
 0x432   : > { %v6927_v33 = vpop.f32.mrf.mxu0  ;;  %v6933_v20 = vpop.f32.mrf.mxu1 }
 0x433   : > { %2537 = vmax.xlane.f32.xlu1 %v6897_v15  ;;  %2535 = vmax.xlane.f32.xlu0 %v6901_v19  ;;  %7836 = vst [vmem:[#allocation30_spill] sm:$0xff] %v6927_v33  ;;  %7838 = vst [vmem:[#allocation32_spill] sm:$0xff] %v6933_v20 }
 0x434   : > { %v6931_v34 = vpop.f32.mrf.mxu0  ;;  %v6937_v38 = vpop.f32.mrf.mxu1 }
 0x435   : > { %7837 = vst [vmem:[#allocation31_spill] sm:$0xff] %v6931_v34  ;;  %7839 = vst [vmem:[#allocation33_spill] sm:$0xff] %v6937_v38 }
 0x436   : > { %v6939_v39 = vpop.f32.mrf.mxu0  ;;  %v6945_v41 = vpop.f32.mrf.mxu1 }
 0x437   : > { %2509 = vmax.xlane.f32.xlu1 %v6903_v22  ;;  %2507 = vmax.xlane.f32.xlu0 %v6907_v16  ;;  %7840 = vst [vmem:[#allocation34_spill] sm:$0xff] %v6939_v39  ;;  %7842 = vst [vmem:[#allocation36_spill] sm:$0xff] %v6945_v41  ;;  %v7151_v16 = vld [vmem:[#allocation3 + $0x68] sm:$0xff]  ;;  %v7153_v22 = vld [vmem:[#allocation3 + $0x60] sm:$0xff] }
 0x438   : > { %v6943_v1 = vpop.f32.mrf.mxu0  ;;  %v6949_v10 = vpop.f32.mrf.mxu1 }
 0x439   : > { %7841 = vst [vmem:[#allocation35_spill] sm:$0xff] %v6943_v1  ;;  %7843 = vst [vmem:[#allocation37_spill] sm:$0xff] %v6949_v10 }
 0x43a   : > { %v6951_v42 = vpop.f32.mrf.mxu0  ;;  %v6957_v46 = vpop.f32.mrf.mxu1 }
 0x43b   : > { %2541 = vmax.xlane.f32.xlu1 %v6909_v55  ;;  %2539 = vmax.xlane.f32.xlu0 %v6913_v26  ;;  %7844 = vst [vmem:[#allocation38_spill] sm:$0xff] %v6951_v42  ;;  %7846 = vst [vmem:[#allocation40_spill] sm:$0xff] %v6957_v46 }
 0x43c   : > { %v6955_v43 = vpop.f32.mrf.mxu0  ;;  %v6961_v24 = vpop.f32.mrf.mxu1 }
 0x43d   : > { %7845 = vst [vmem:[#allocation39_spill] sm:$0xff] %v6955_v43  ;;  %7847 = vst [vmem:[#allocation41_spill] sm:$0xff] %v6961_v24 }
 0x43f   : > { %2513 = vmax.xlane.f32.xlu1 %v6915_v27  ;;  %2511 = vmax.xlane.f32.xlu0 %v6919_v0  ;;  %v7135_v0 = vld [vmem:[#allocation3 + $0xd8] sm:$0xff]  ;;  %v7137_v27 = vld [vmem:[#allocation3 + $0xd0] sm:$0xff] }
 0x443   : > { %2545 = vmax.xlane.f32.xlu1 %v6921_v30  ;;  %2543 = vmax.xlane.f32.xlu0 %v6925_v31 }
 0x447   : > { %2517 = vmax.xlane.f32.xlu1 %v6927_v33  ;;  %2515 = vmax.xlane.f32.xlu0 %v6931_v34  ;;  %v7119_v34 = vld [vmem:[#allocation3 + $0x58] sm:$0xff]  ;;  %v7121_v33 = vld [vmem:[#allocation3 + $0x50] sm:$0xff] }
 0x44b   : > { %2549 = vmax.xlane.f32.xlu1 %v6933_v20  ;;  %2547 = vmax.xlane.f32.xlu0 %v6937_v38  ;;  %v7105_v38 = vld [vmem:[#allocation3 + $0xc0] sm:$0xff] }
 0x44f   : > { %2521 = vmax.xlane.f32.xlu1 %v6939_v39  ;;  %2519 = vmax.xlane.f32.xlu0 %v6943_v1  ;;  %v7087_v1 = vld [vmem:[#allocation3 + $0x48] sm:$0xff] }
 0x453   : > { %2553 = vmax.xlane.f32.xlu1 %v6945_v41  ;;  %2551 = vmax.xlane.f32.xlu0 %v6949_v10  ;;  %v7103_v41 = vld [vmem:[#allocation3 + $0xc8] sm:$0xff] }
 0x457   : > { %2523 = vmax.xlane.f32.xlu0 %v6955_v43  ;;  %2525 = vmax.xlane.f32.xlu1 %v6951_v42 }
 0x45b   : > { %2555 = vmax.xlane.f32.xlu0 %v6961_v24  ;;  %2557 = vmax.xlane.f32.xlu1 %v6957_v46  ;;  %v7089_v46 = vld [vmem:[#allocation3 + $0x40] sm:$0xff] }
 0x4a8   : > { %v2530_v36 = vpop.xlane.xlu1 %2529  ;;  %v2498_v49 = vpop.xlane.xlu0 %2497 }
 0x4a9   : > { %v6970_v51 = vmax.f32 %v6965_v48, %v2530_v36  ;;  %v6973_v52 = vmax.f32 %v6967_v11, %v2498_v49  ;;  %v7041_v36 = vld [vmem:[#allocation3 + $0xa8] sm:$0xff]  ;;  %v7043_v49 = vld [vmem:[#allocation3 + $0xa0] sm:$0xff] }
 0x4ab   : > { %3731 = vst.msk [vmem:[#allocation3 + $0x88] sm:$0xff] %vm3103_vm5, %v6970_v51  ;;  %3715 = vst.msk [vmem:[#allocation3 + $0x8] sm:$0xff] %vm3103_vm5, %v6973_v52  ;;  %2694 = vperm.xlu1 %5675, %v6973_v52   ;;  %2774 = vperm.xlu0 %5676, %v6970_v51  }
 0x4ac   : > { %v2496_v50 = vpop.xlane.xlu0 %2495  ;;  %v2502_v17 = vpop.xlane.xlu1 %2501 }
 0x4ad   : > { %v6986_v29 = vmax.f32 %v6975_v23, %v2496_v50  ;;  %v6989_v35 = vmax.f32 %v6977_v28, %v2502_v17 }
 0x4af   : > { %3714 = vst.msk [vmem:[#allocation3] sm:$0xff] %vm3103_vm5, %v6986_v29  ;;  %3717 = vst.msk [vmem:[#allocation3 + $0x18] sm:$0xff] %vm3103_vm5, %v6989_v35  ;;  %2689 = vperm.xlu0 %5676, %v6986_v29  }
 0x4b0   : > { %v2528_v57 = vpop.xlane.xlu0 %2527  ;;  %v2534_v58 = vpop.xlane.xlu1 %2533 }
 0x4b1   : > { %v7001_v59 = vmax.f32 %v6991_v53, %v2528_v57  ;;  %v7004_v21 = vmax.f32 %v6993_v56, %v2534_v58 }
 0x4b3   : > { %3730 = vst.msk [vmem:[#allocation3 + $0x80] sm:$0xff] %vm3103_vm5, %v7001_v59  ;;  %3733 = vst.msk [vmem:[#allocation3 + $0x98] sm:$0xff] %vm3103_vm5, %v7004_v21  ;;  %2769 = vperm.xlu1 %5675, %v7001_v59   ;;  %2784 = vperm.xlu0 %5676, %v7004_v21  }
 0x4b4   : > { %v2532_v25 = vpop.xlane.xlu0 %2531  ;;  %v2500_v32 = vpop.xlane.xlu1 %2499 }
 0x4b5   : > { %v7019_v40 = vmax.f32 %v7006_v60, %v2532_v25  ;;  %v7022_v61 = vmax.f32 %v7008_v47, %v2500_v32  ;;  %v7056_v25 = vld [vmem:[#allocation3 + $0x38] sm:$0xff]  ;;  %v7058_v32 = vld [vmem:[#allocation3 + $0x30] sm:$0xff] }
 0x4b7   : > { %3732 = vst.msk [vmem:[#allocation3 + $0x90] sm:$0xff] %vm3103_vm5, %v7019_v40  ;;  %3716 = vst.msk [vmem:[#allocation3 + $0x10] sm:$0xff] %vm3103_vm5, %v7022_v61  ;;  %2704 = vperm.xlu1 %5675, %v6989_v35  }
 0x4b8   : > { %v2506_v2 = vpop.xlane.xlu1 %2505  ;;  %v2504_v3 = vpop.xlane.xlu0 %2503 }
 0x4b9   : > { %v7036_v4 = vmax.f32 %v7024_v37, %v2506_v2  ;;  %v7039_v18 = vmax.f32 %v7026_v62, %v2504_v3 }
 0x4bb   : > { %3719 = vst.msk [vmem:[#allocation3 + $0x28] sm:$0xff] %vm3103_vm5, %v7036_v4  ;;  %3718 = vst.msk [vmem:[#allocation3 + $0x20] sm:$0xff] %vm3103_vm5, %v7039_v18  ;;  %2699 = vperm.xlu1 %5675, %v7022_v61  }
 0x4bc   : > { %v2538_v50 = vpop.xlane.xlu1 %2537  ;;  %v2536_v17 = vpop.xlane.xlu0 %2535 }
 0x4bd   : > { %v7051_v57 = vmax.f32 %v7041_v36, %v2538_v50  ;;  %v7054_v58 = vmax.f32 %v7043_v49, %v2536_v17 }
 0x4bf   : > { %3735 = vst.msk [vmem:[#allocation3 + $0xa8] sm:$0xff] %vm3103_vm5, %v7051_v57  ;;  %3734 = vst.msk [vmem:[#allocation3 + $0xa0] sm:$0xff] %vm3103_vm5, %v7054_v58  ;;  %2779 = vperm.xlu1 %5675, %v7019_v40   ;;  %2794 = vperm.xlu0 %5676, %v7051_v57  }
 0x4c0   : > { %v2510_v2 = vpop.xlane.xlu1 %2509  ;;  %v2508_v3 = vpop.xlane.xlu0 %2507 }
 0x4c1   : > { %v7067_v50 = vmax.f32 %v7056_v25, %v2510_v2  ;;  %v7070_v17 = vmax.f32 %v7058_v32, %v2508_v3 }
 0x4c3   : > { %3721 = vst.msk [vmem:[#allocation3 + $0x38] sm:$0xff] %vm3103_vm5, %v7067_v50  ;;  %3720 = vst.msk [vmem:[#allocation3 + $0x30] sm:$0xff] %vm3103_vm5, %v7070_v17  ;;  %2714 = vperm.xlu1 %5675, %v7036_v4  }
 0x4c4   : > { %v2542_v42 = vpop.xlane.xlu1 %2541  ;;  %v2540_v43 = vpop.xlane.xlu0 %2539 }
 0x4c5   : > { %v7082_v2 = vmax.f32 %v7072_v63, %v2542_v42  ;;  %v7085_v3 = vmax.f32 %v7074_v44, %v2540_v43 }
 0x4c7   : > { %3737 = vst.msk [vmem:[#allocation3 + $0xb8] sm:$0xff] %vm3103_vm5, %v7082_v2  ;;  %3736 = vst.msk [vmem:[#allocation3 + $0xb0] sm:$0xff] %vm3103_vm5, %v7085_v3  ;;  %2709 = vperm.xlu1 %5675, %v7039_v18   ;;  %2804 = vperm.xlu0 %5676, %v7082_v2  }
 0x4c8   : > { %v2514_v39 = vpop.xlane.xlu1 %2513  ;;  %v2512_v42 = vpop.xlane.xlu0 %2511 }
 0x4c9   : > { %v7098_v24 = vmax.f32 %v7087_v1, %v2514_v39  ;;  %v7101_v43 = vmax.f32 %v7089_v46, %v2512_v42 }
 0x4cb   : > { %3723 = vst.msk [vmem:[#allocation3 + $0x48] sm:$0xff] %vm3103_vm5, %v7098_v24  ;;  %3722 = vst.msk [vmem:[#allocation3 + $0x40] sm:$0xff] %vm3103_vm5, %v7101_v43  ;;  %2789 = vperm.xlu1 %5675, %v7054_v58   ;;  %2734 = vperm.xlu0 %5676, %v7098_v24  }
 0x4cc   : > { %v2546_v10 = vpop.xlane.xlu1 %2545  ;;  %v2544_v39 = vpop.xlane.xlu0 %2543 }
 0x4cd   : > { %v7114_v20 = vmax.f32 %v7103_v41, %v2546_v10  ;;  %v7117_v42 = vmax.f32 %v7105_v38, %v2544_v39 }
 0x4cf   : > { %3739 = vst.msk [vmem:[#allocation3 + $0xc8] sm:$0xff] %vm3103_vm5, %v7114_v20  ;;  %3738 = vst.msk [vmem:[#allocation3 + $0xc0] sm:$0xff] %vm3103_vm5, %v7117_v42  ;;  %2724 = vperm.xlu1 %5675, %v7067_v50   ;;  %2814 = vperm.xlu0 %5676, %v7114_v20  }
 0x4d0   : > { %v2518_v31 = vpop.xlane.xlu1 %2517  ;;  %v2516_v10 = vpop.xlane.xlu0 %2515 }
 0x4d1   : > { %v7130_v30 = vmax.f32 %v7119_v34, %v2518_v31  ;;  %v7133_v39 = vmax.f32 %v7121_v33, %v2516_v10 }
 0x4d3   : > { %3725 = vst.msk [vmem:[#allocation3 + $0x58] sm:$0xff] %vm3103_vm5, %v7130_v30  ;;  %3724 = vst.msk [vmem:[#allocation3 + $0x50] sm:$0xff] %vm3103_vm5, %v7133_v39  ;;  %2719 = vperm.xlu1 %5675, %v7070_v17   ;;  %2744 = vperm.xlu0 %5676, %v7130_v30  }
 0x4d4   : > { %v2550_v26 = vpop.xlane.xlu1 %2549  ;;  %v2548_v31 = vpop.xlane.xlu0 %2547 }
 0x4d5   : > { %v7146_v55 = vmax.f32 %v7135_v0, %v2550_v26  ;;  %v7149_v10 = vmax.f32 %v7137_v27, %v2548_v31  ;;  %v2591_v31 = vsub.f32 %v6975_v23, %v6986_v29  ;;  %v2594_v23 = vsub.f32 %v6977_v28, %v6989_v35 }
 0x4d7   : > { %3741 = vst.msk [vmem:[#allocation3 + $0xd8] sm:$0xff] %vm3103_vm5, %v7146_v55  ;;  %3740 = vst.msk [vmem:[#allocation3 + $0xd0] sm:$0xff] %vm3103_vm5, %v7149_v10  ;;  %2799 = vperm.xlu1 %5675, %v7085_v3   ;;  %2824 = vperm.xlu0 %5676, %v7146_v55   ;;  %v2623_v8 = vmul.f32 1.442695, %v2591_v31  ;;  %v2629_v28 = vmul.f32 1.442695, %v2594_v23 }
 0x4d8   : > { %v2522_v19 = vpop.xlane.xlu1 %2521  ;;  %v2520_v26 = vpop.xlane.xlu0 %2519 }
 0x4d9   : > { %v7164_v15 = vmax.f32 %v7151_v16, %v2522_v19  ;;  %v7167_v14 = vmax.f32 %v7153_v22, %v2520_v26  ;;  %5677 = vpow2.f32 %v2623_v8  ;;  %v2608_v8 = vsub.f32 %v6965_v48, %v6970_v51 }
 0x4da   : > { %5679 = vpow2.f32 %v2629_v28  ;;  %v2610_v51 = vsub.f32 %v6993_v56, %v7004_v21  ;;  %v2593_v28 = vsub.f32 %v7008_v47, %v7022_v61  ;;  %v2598_v61 = vsub.f32 %v7056_v25, %v7067_v50 }
 0x4db   : > { %3727 = vst.msk [vmem:[#allocation3 + $0x68] sm:$0xff] %vm3103_vm5, %v7164_v15  ;;  %3726 = vst.msk [vmem:[#allocation3 + $0x60] sm:$0xff] %vm3103_vm5, %v7167_v14  ;;  %2729 = vperm.xlu1 %5675, %v7101_v43   ;;  %v7851_v25 = vsub.f32 %v7006_v60, %v7019_v40  ;;  %v2597_v60 = vsub.f32 %v7058_v32, %v7070_v17  ;;  %v2602_v17 = vsub.f32 %v7119_v34, %v7130_v30 }
 0x4dc   : > { %v2554_v19 = vpop.xlane.xlu1 %2553  ;;  %v2552_v29 = vpop.xlane.xlu0 %2551  ;;  %v2615_v34 = vsub.f32 %v7105_v38, %v7117_v42 }
 0x4dd   : > { %v7181_v26 = vmax.f32 %v7169_v13, %v2554_v19  ;;  %v7184_v9 = vmax.f32 %v7171_v12, %v2552_v29  ;;  %v2596_v19 = vsub.f32 %v7024_v37, %v7036_v4  ;;  %v2592_v37 = vsub.f32 %v6967_v11, %v6973_v52 }
 0x4de   : > { %v2657_v11 = vmul.f32 1.442695, %v2608_v8  ;;  %v2612_v8 = vsub.f32 %v7041_v36, %v7051_v57  ;;  %v2637_v36 = vmul.f32 1.442695, %v2598_v61  ;;  %v2614_v57 = vsub.f32 %v7072_v63, %v7082_v2 }
 0x4df   : > { %3743 = vst.msk [vmem:[#allocation3 + $0xe8] sm:$0xff] %vm3103_vm5, %v7181_v26  ;;  %3742 = vst.msk [vmem:[#allocation3 + $0xe0] sm:$0xff] %vm3103_vm5, %v7184_v9  ;;  %2809 = vperm.xlu1 %5675, %v7117_v42   ;;  %2834 = vperm.xlu0 %5676, %v7181_v26   ;;  %v2625_v52 = vmul.f32 1.442695, %v2592_v37  ;;  %v2659_v50 = vmul.f32 1.442695, %v7851_v25  ;;  %v2600_v63 = vsub.f32 %v7087_v1, %v7098_v24 }
 0x4e0   : > { %v2524_v35 = vpop.xlane.xlu0 %2523  ;;  %v2526_v31 = vpop.xlane.xlu1 %2525  ;;  %v2665_v47 = vmul.f32 1.442695, %v2612_v8  ;;  %v2635_v1 = vmul.f32 1.442695, %v2597_v60  ;;  %v2613_v24 = vsub.f32 %v7074_v44, %v7085_v3  ;;  %v2645_v44 = vmul.f32 1.442695, %v2602_v17 }
 0x4e1   : > { %v7199_v29 = vmax.f32 %v7186_v7, %v2524_v35  ;;  %v7202_v6 = vmax.f32 %v7188_v45, %v2526_v31  ;;  %v2633_v35 = vmul.f32 1.442695, %v2596_v19  ;;  %v2661_v19 = vmul.f32 1.442695, %v2610_v51 }
 0x4e2   : > { %v2618_v3 = vsub.f32 %v7135_v0, %v7146_v55  ;;  %v2671_v55 = vmul.f32 1.442695, %v2615_v34  ;;  %v2601_v0 = vsub.f32 %v7121_v33, %v7133_v39  ;;  %v2620_v42 = vsub.f32 %v7169_v13, %v7181_v26 }
 0x4e3   : > { %3728 = vst.msk [vmem:[#allocation3 + $0x70] sm:$0xff] %vm3103_vm5, %v7199_v29  ;;  %2739 = vperm.xlu1 %5675, %v7133_v39   ;;  %2829 = vperm.xlu0 %5676, %v7184_v9   ;;  %3729 = vst.msk [vmem:[#allocation3 + $0x78] sm:$0xff] %vm3103_vm5, %v7202_v6  ;;  %5681 = vpow2.f32 %v2633_v35  ;;  %v2606_v39 = vsub.f32 %v7188_v45, %v7202_v6 }
 0x4e4   : > { %v2556_v4 = vpop.xlane.xlu0 %2555  ;;  %v2558_v23 = vpop.xlane.xlu1 %2557  ;;  %5683 = vpow2.f32 %v2657_v11  ;;  %v2669_v11 = vmul.f32 1.442695, %v2614_v57  ;;  %v2681_v33 = vmul.f32 1.442695, %v2620_v42  ;;  %v7852_v57 = vld [vmem:[#allocation42_spill] sm:$0xff] }
 0x4e5   : > { %v7219_v31 = vmax.f32 %v7204_v54, %v2556_v4  ;;  %v7222_v7 = vmax.f32 %v7206_v5, %v2558_v23  ;;  %v2595_v4 = vsub.f32 %v7026_v62, %v7039_v18  ;;  %5685 = vpow2.f32 %v2625_v52 }
 0x4e6   : > { %v2627_v23 = vmul.f32 1.442695, %v2593_v28  ;;  %v7244_v56 = vpop.eup %5677  ;;  %5687 = vpow2.f32 %v2661_v19  ;;  %v7850_v62 = vsub.f32 %v6991_v53, %v7001_v59  ;;  %v2611_v53 = vsub.f32 %v7043_v49, %v7054_v58 }
 0x4e7   : > { %v2621_v12 = vsub.f32 %v7204_v54, %v7219_v31  ;;  %3744 = vst.msk [vmem:[#allocation3 + $0xf0] sm:$0xff] %vm3103_vm5, %v7219_v31  ;;  %2819 = vperm.xlu1 %5675, %v7149_v10   ;;  %2839 = vperm.xlu0 %5676, %v7219_v31   ;;  %v2622_v48 = vsub.f32 %v7206_v5, %v7222_v7  ;;  %3745 = vst.msk [vmem:[#allocation3 + $0xf8] sm:$0xff] %vm3103_vm5, %v7222_v7  ;;  %v2631_v21 = vmul.f32 1.442695, %v2595_v4  ;;  %v7250_v37 = vpop.eup %5679 }
 0x4e8   : > { %5689 = vpow2.f32 %v2627_v23  ;;  %v2655_v18 = vmul.f32 1.442695, %v7850_v62  ;;  %v2663_v51 = vmul.f32 1.442695, %v2611_v53  ;;  %v2641_v49 = vmul.f32 1.442695, %v2600_v63 }
 0x4e9   : > { %5691 = vpow2.f32 %v2631_v21  ;;  %v2616_v58 = vsub.f32 %v7103_v41, %v7114_v20  ;;  %v2667_v20 = vmul.f32 1.442695, %v2613_v24  ;;  %v2599_v41 = vsub.f32 %v7089_v46, %v7101_v43  ;;  %v7853_v53 = vld [vmem:[#allocation43_spill] sm:$0xff]  ;;  %v7854_v24 = vld [vmem:[#allocation10_spill] sm:$0xff] }
 0x4ea   : > { %5693 = vpow2.f32 %v2665_v47  ;;  %v2677_v46 = vmul.f32 1.442695, %v2618_v3  ;;  %v2604_v43 = vsub.f32 %v7151_v16, %v7164_v15  ;;  %v2617_v16 = vsub.f32 %v7137_v27, %v7149_v10 }
 0x4eb   : > { %2754 = vperm.xlu1 %5675, %v7164_v15   ;;  %2844 = vperm.xlu0 %5676, %v7222_v7   ;;  %5695 = vpow2.f32 %v2655_v18  ;;  %v2673_v32 = vmul.f32 1.442695, %v2616_v58  ;;  %v2639_v30 = vmul.f32 1.442695, %v2599_v41  ;;  %v2643_v15 = vmul.f32 1.442695, %v2601_v0 }
 0x4ec   : > { %5697 = vpow2.f32 %v2637_v36  ;;  %v2649_v38 = vmul.f32 1.442695, %v2604_v43  ;;  %v2675_v13 = vmul.f32 1.442695, %v2617_v16  ;;  %v2603_v27 = vsub.f32 %v7153_v22, %v7167_v14  ;;  %v7855_v41 = vld [vmem:[#allocation12_spill] sm:$0xff]  ;;  %v7857_v0 = vld [vmem:[#allocation14_spill] sm:$0xff] }
 0x4ed   : > { %5699 = vpow2.f32 %v2659_v50  ;;  %v2653_v10 = vmul.f32 1.442695, %v2606_v39  ;;  %v2619_v25 = vsub.f32 %v7852_v57, %v7184_v9  ;;  %v7858_v39 = vld [vmem:[#allocation13_spill] sm:$0xff] }
 0x4ee   : > { %5701 = vpow2.f32 %v2669_v11  ;;  %v2647_v45 = vmul.f32 1.442695, %v2603_v27  ;;  %v2605_v11 = vsub.f32 %v7853_v53, %v7199_v29 }
 0x4ef   : > { %2749 = vperm.xlu1 %5675, %v7167_v14   ;;  %3170 = vperm.xlu0 %5676, %v7244_v56   ;;  %5703 = vpow2.f32 %v2663_v51  ;;  %v2679_v22 = vmul.f32 1.442695, %v2619_v25  ;;  %v7860_v25 = vld [vmem:[#allocation15_spill] sm:$0xff] }
 0x4f0   : > { %v7259_v35 = vpop.eup %5681  ;;  %5705 = vpow2.f32 %v2641_v49  ;;  %v2651_v51 = vmul.f32 1.442695, %v2605_v11 }
 0x4f1   : > { %v7268_v59 = vpop.eup %5683  ;;  %5707 = vpow2.f32 %v2635_v1 }
 0x4f2   : > { %v7272_v2 = vpop.eup %5685  ;;  %5709 = vpow2.f32 %v2673_v32 }
 0x4f3   : > { %2759 = vperm.xlu1 %5675, %v7199_v29   ;;  %3185 = vperm.xlu0 %5676, %v7250_v37   ;;  %v7278_v40 = vpop.eup %5687  ;;  %5711 = vpow2.f32 %v2667_v20 }
 0x4f4   : > { %5713 = vpow2.f32 %v2645_v44 }
 0x4f5   : > { %v7282_v52 = vpop.eup %5689  ;;  %5715 = vpow2.f32 %v2639_v30  ;;  %v7856_v30 = vld [vmem:[#allocation11_spill] sm:$0xff] }
 0x4f6   : > { %v7288_v28 = vpop.eup %5691  ;;  %5717 = vpow2.f32 %v2677_v46 }
 0x4f7   : > { %2764 = vperm.xlu1 %5675, %v7202_v6   ;;  %3195 = vperm.xlu0 %5676, %v7259_v35   ;;  %v7292_v19 = vpop.eup %5693  ;;  %5719 = vpow2.f32 %v2671_v55 }
 0x4f8   : > { %v7298_v4 = vpop.eup %5695  ;;  %5721 = vpow2.f32 %v2649_v38 }
 0x4f9   : > { %v7302_v23 = vpop.eup %5697  ;;  %5723 = vpow2.f32 %v2643_v15 }
 0x4fa   : > { %v7308_v8 = vpop.eup %5699  ;;  %5725 = vpow2.f32 %v2681_v33 }
 0x4fb   : > { %3175 = vperm.xlu1 %5675, %v7272_v2   ;;  %3255 = vperm.xlu0 %5676, %v7268_v59   ;;  %v7312_v21 = vpop.eup %5701  ;;  %5727 = vpow2.f32 %v2675_v13 }
 0x4fc   : > { %v7318_v47 = vpop.eup %5703  ;;  %5729 = vpow2.f32 %v2653_v10 }
 0x4fd   : > { %v7322_v61 = vpop.eup %5705  ;;  %5731 = vpow2.f32 %v2647_v45  ;;  %v7859_v45 = vld [vmem:[#allocation16_spill] sm:$0xff] }
 0x4fe   : > { %v7328_v62 = vpop.eup %5707  ;;  %5733 = vpow2.f32 %v2679_v22 }
 0x4ff   : > { %3180 = vperm.xlu1 %5675, %v7282_v52   ;;  %3265 = vperm.xlu0 %5676, %v7278_v40   ;;  %v7332_v18 = vpop.eup %5709  ;;  %5735 = vpow2.f32 %v2651_v51 }
 0x500   : > { %v7336_v26 = vpop.eup %5711 }
 0x501   : > { %v7340_v36 = vpop.eup %5713 }
 0x502   : > { %v7344_v6 = vpop.eup %5715 }
 0x503   : > { %3190 = vperm.xlu1 %5675, %v7288_v28   ;;  %3275 = vperm.xlu0 %5676, %v7292_v19   ;;  %v7348_v50 = vpop.eup %5717 }
 0x504   : > { %v7352_v14 = vpop.eup %5719 }
 0x505   : > { %v7356_v63 = vpop.eup %5721 }
 0x506   : > { %v7360_v9 = vpop.eup %5723 }
 0x507   : > { %3250 = vperm.xlu1 %5675, %v7298_v4   ;;  %3205 = vperm.xlu0 %5676, %v7302_v23   ;;  %v7362_v60 = vpop.eup %5725 }
 0x508   : > { %v7366_v49 = vpop.eup %5727 }
 0x509   : > { %v7368_v29 = vpop.eup %5729 }
 0x50a   : > { %v7373_v17 = vpop.eup %5731 }
 0x50b   : > { %3260 = vperm.xlu1 %5675, %v7308_v8   ;;  %3285 = vperm.xlu0 %5676, %v7312_v21   ;;  %v7378_v43 = vpop.eup %5733 }
 0x50c   : > { %v7382_v16 = vpop.eup %5735 }
 0x50f   : > { %3270 = vperm.xlu1 %5675, %v7318_v47   ;;  %3215 = vperm.xlu0 %5676, %v7322_v61  }
 0x513   : > { %3200 = vperm.xlu1 %5675, %v7328_v62   ;;  %3295 = vperm.xlu0 %5676, %v7332_v18  }
 0x517   : > { %3280 = vperm.xlu1 %5675, %v7336_v26   ;;  %3225 = vperm.xlu0 %5676, %v7340_v36  }
 0x51b   : > { %3210 = vperm.xlu1 %5675, %v7344_v6   ;;  %3305 = vperm.xlu0 %5676, %v7348_v50  }
 0x51f   : > { %3290 = vperm.xlu1 %5675, %v7352_v14   ;;  %3235 = vperm.xlu0 %5676, %v7356_v63  }
 0x523   : > { %3220 = vperm.xlu1 %5675, %v7360_v9   ;;  %3315 = vperm.xlu0 %5676, %v7362_v60  }
 0x526   : > { %v2695_v58 = vpop.permute.xlu1 %2694  ;;  %v2775_v1 = vpop.permute.xlu0 %2774 }
 0x527   : > { %3300 = vperm.xlu1 %5675, %v7366_v49   ;;  %3245 = vperm.xlu0 %5676, %v7368_v29   ;;  %v2848_v32 = vsub.f32 %v7854_v24, %v2695_v58  ;;  %v2864_v34 = vsub.f32 %v7856_v30, %v2775_v1  ;;  %v7861_v58 = vld [vmem:[#allocation17_spill] sm:$0xff] }
 0x529   : > { %v2881_v3 = vmul.f32 1.442695, %v2848_v32  ;;  %v2913_v42 = vmul.f32 1.442695, %v2864_v34  ;;  %v7862_v34 = vld [vmem:[#allocation18_spill] sm:$0xff] }
 0x52a   : > { %v2690_v20 = vpop.permute.xlu0 %2689 }
 0x52b   : > { %v2847_v44 = vsub.f32 %v7855_v41, %v2690_v20  ;;  %3230 = vperm.xlu1 %5675, %v7373_v17  }
 0x52d   : > { %v2879_v46 = vmul.f32 1.442695, %v2847_v44 }
 0x52e   : > { %v2770_v55 = vpop.permute.xlu1 %2769  ;;  %v2785_v27 = vpop.permute.xlu0 %2784 }
 0x52f   : > { %5737 = vpow2.f32 %v2879_v46  ;;  %v2863_v38 = vsub.f32 %v7857_v0, %v2770_v55  ;;  %3310 = vperm.xlu1 %5675, %v7378_v43   ;;  %v2866_v22 = vsub.f32 %v7860_v25, %v2785_v27 }
 0x530   : > { %5739 = vpow2.f32 %v2881_v3 }
 0x531   : > { %v2911_v15 = vmul.f32 1.442695, %v2863_v38  ;;  %v2917_v32 = vmul.f32 1.442695, %v2866_v22 }
 0x532   : > { %v2705_v33 = vpop.permute.xlu1 %2704 }
 0x533   : > { %5741 = vpow2.f32 %v2911_v15  ;;  %3240 = vperm.xlu1 %5675, %v7382_v16   ;;  %v2850_v13 = vsub.f32 %v7858_v39, %v2705_v33  ;;  %v7864_v33 = vld [vmem:[#allocation20_spill] sm:$0xff] }
 0x534   : > { %5743 = vpow2.f32 %v2913_v42  ;;  %v7863_v42 = vld [vmem:[#allocation19_spill] sm:$0xff] }
 0x535   : > { %v2885_v53 = vmul.f32 1.442695, %v2850_v13 }
 0x536   : > { %v2700_v10 = vpop.permute.xlu1 %2699 }
 0x537   : > { %v2849_v57 = vsub.f32 %v7859_v45, %v2700_v10 }
 0x539   : > { %v2883_v11 = vmul.f32 1.442695, %v2849_v57  ;;  %v7865_v57 = vld [vmem:[#allocation21_spill] sm:$0xff] }
 0x53a   : > { %v2780_v51 = vpop.permute.xlu1 %2779  ;;  %v2795_v44 = vpop.permute.xlu0 %2794 }
 0x53b   : > { %5745 = vpow2.f32 %v2883_v11  ;;  %v2865_v1 = vsub.f32 %v7861_v58, %v2780_v51  ;;  %v2868_v39 = vsub.f32 %v7864_v33, %v2795_v44 }
 0x53c   : > { %v7389_v24 = vpop.eup %5737  ;;  %5747 = vpow2.f32 %v2885_v53 }
 0x53d   : > { %v5740_v20 = vpop.eup %5739  ;;  %v2915_v41 = vmul.f32 1.442695, %v2865_v1  ;;  %5451 = vmatprep.mubr.f32.mxu0 %v7389_v24  ;;  %v2921_v53 = vmul.f32 1.442695, %v2868_v39 }
 0x53e   : > { %v2715_v3 = vpop.permute.xlu1 %2714  ;;  %5452 = vmatmul.mubr.f32.vlgmr.msra.gmra.mxu0 %v5740_v20 }
 0x53f   : > { %5749 = vpow2.f32 %v2915_v41  ;;  %v2852_v46 = vsub.f32 %v7862_v34, %v2715_v3  ;;  %v7866_v41 = vld [vmem:[#allocation22_spill] sm:$0xff]  ;;  %v7867_v34 = vld [vmem:[#allocation23_spill] sm:$0xff] }
 0x540   : > { %v5742_v30 = vpop.eup %5741  ;;  %5751 = vpow2.f32 %v2917_v32 }
 0x541   : > { %v5744_v55 = vpop.eup %5743  ;;  %5507 = vmatprep.mubr.f32.mxu1 %v5742_v30  ;;  %v2889_v13 = vmul.f32 1.442695, %v2852_v46 }
 0x542   : > { %v2710_v0 = vpop.permute.xlu1 %2709  ;;  %5508 = vmatmul.mubr.f32.vlgmr.msra.gmra.mxu1 %v5744_v55  ;;  %v2805_v38 = vpop.permute.xlu0 %2804 }
 0x543   : > { %v2851_v15 = vsub.f32 %v7863_v42, %v2710_v0  ;;  %v7868_v0 = vld [vmem:[#allocation24_spill] sm:$0xff] }
 0x544   : > { %v2870_v42 = vsub.f32 %v7868_v0, %v2805_v38  ;;  %v7871_v38 = vld [vmem:[#allocation27_spill] sm:$0xff] }
 0x545   : > { %v2887_v27 = vmul.f32 1.442695, %v2851_v15 }
 0x546   : > { %v2790_v10 = vpop.permute.xlu1 %2789  ;;  %3009 = vadd.xlane.f32.xlu0 %v5740_v20  ;;  %v2735_v45 = vpop.permute.xlu0 %2734 }
 0x547   : > { %5753 = vpow2.f32 %v2887_v27  ;;  %v2867_v25 = vsub.f32 %v7865_v57, %v2790_v10  ;;  %v2925_v57 = vmul.f32 1.442695, %v2870_v42 }
 0x548   : > { %v5746_v22 = vpop.eup %5745  ;;  %5755 = vpow2.f32 %v2889_v13  ;;  %v7869_v13 = vld [vmem:[#allocation25_spill] sm:$0xff] }
 0x549   : > { %v5748_v11 = vpop.eup %5747  ;;  %v2919_v51 = vmul.f32 1.442695, %v2867_v25  ;;  %5454 = vmatprep.mubr.f32.mxu0 %v5746_v22  ;;  %v7870_v25 = vld [vmem:[#allocation26_spill] sm:$0xff] }
 0x54a   : > { %v2725_v58 = vpop.permute.xlu1 %2724  ;;  %3039 = vadd.xlane.f32.xlu0 %v5742_v30  ;;  %5455 = vmatmul.mubr.f32.gmra.mxu0 %v5748_v11  ;;  %v2815_v1 = vpop.permute.xlu0 %2814 }
 0x54b   : > { %5757 = vpow2.f32 %v2919_v51  ;;  %v2854_v44 = vsub.f32 %v7866_v41, %v2725_v58 }
 0x54c   : > { %v5750_v32 = vpop.eup %5749  ;;  %5759 = vpow2.f32 %v2921_v53  ;;  %v2856_v53 = vsub.f32 %v7870_v25, %v2735_v45  ;;  %v7875_v25 = vld [vmem:[#allocation31_spill] sm:$0xff] }
 0x54d   : > { %v7397_v20 = vpop.eup %5751  ;;  %5510 = vmatprep.mubr.f32.mxu1 %v5750_v32  ;;  %v2893_v15 = vmul.f32 1.442695, %v2854_v44 }
 0x54e   : > { %v2720_v3 = vpop.permute.xlu1 %2719  ;;  %3011 = vadd.xlane.f32.xlu0 %v5746_v22  ;;  %5511 = vmatmul.mubr.f32.gmra.mxu1 %v7397_v20  ;;  %v2745_v30 = vpop.permute.xlu0 %2744 }
 0x54f   : > { %v2853_v46 = vsub.f32 %v7867_v34, %v2720_v3  ;;  %v2897_v3 = vmul.f32 1.442695, %v2856_v53  ;;  %v7872_v34 = vld [vmem:[#allocation28_spill] sm:$0xff] }
 0x551   : > { %v2891_v33 = vmul.f32 1.442695, %v2853_v46  ;;  %v2872_v46 = vsub.f32 %v7872_v34, %v2815_v1 }
 0x552   : > { %v2800_v39 = vpop.permute.xlu1 %2799  ;;  %3043 = vadd.xlane.f32.xlu0 %v5750_v32  ;;  %v2825_v58 = vpop.permute.xlu0 %2824 }
 0x553   : > { %5761 = vpow2.f32 %v2891_v33  ;;  %v2869_v27 = vsub.f32 %v7869_v13, %v2800_v39  ;;  %v7873_v33 = vld [vmem:[#allocation29_spill] sm:$0xff]  ;;  %v7874_v13 = vld [vmem:[#allocation30_spill] sm:$0xff] }
 0x554   : > { %v5754_v10 = vpop.eup %5753  ;;  %5763 = vpow2.f32 %v2893_v15 }
 0x555   : > { %v7404_v22 = vpop.eup %5755  ;;  %v2923_v51 = vmul.f32 1.442695, %v2869_v27  ;;  %5457 = vmatprep.mubr.f32.mxu0 %v5754_v10  ;;  %v2858_v27 = vsub.f32 %v7874_v13, %v2745_v30 }
 0x556   : > { %v2730_v41 = vpop.permute.xlu1 %2729  ;;  %3015 = vadd.xlane.f32.xlu0 %v5754_v10  ;;  %5458 = vmatmul.mubr.f32.gmra.mxu0 %v7404_v22 }
 0x557   : > { %5765 = vpow2.f32 %v2923_v51  ;;  %v2855_v32 = vsub.f32 %v7871_v38, %v2730_v41  ;;  %3041 = vadd.xlane.f32.xlu1 %v5744_v55  ;;  %v2929_v55 = vmul.f32 1.442695, %v2872_v46  ;;  %v2901_v41 = vmul.f32 1.442695, %v2858_v27  ;;  %v7876_v38 = vld [vmem:[#allocation32_spill] sm:$0xff]  ;;  %v7878_v46 = vld [vmem:[#allocation33_spill] sm:$0xff] }
 0x558   : > { %v5758_v44 = vpop.eup %5757  ;;  %5767 = vpow2.f32 %v2925_v57 }
 0x559   : > { %v7409_v45 = vpop.eup %5759  ;;  %v2895_v0 = vmul.f32 1.442695, %v2855_v32  ;;  %5513 = vmatprep.mubr.f32.mxu1 %v5758_v44  ;;  %v2874_v32 = vsub.f32 %v7876_v38, %v2825_v58  ;;  %v7882_v38 = vld [vmem:[#allocation40_spill] sm:$0xff] }
 0x55a   : > { %v2810_v42 = vpop.permute.xlu1 %2809  ;;  %3047 = vadd.xlane.f32.xlu0 %v5758_v44  ;;  %5514 = vmatmul.mubr.f32.gmra.mxu1 %v7409_v45  ;;  %v2835_v15 = vpop.permute.xlu0 %2834 }
 0x55b   : > { %5769 = vpow2.f32 %v2895_v0  ;;  %v2871_v39 = vsub.f32 %v7873_v33, %v2810_v42  ;;  %3007 = vadd.xlane.f32.xlu1 %v7389_v24  ;;  %v7877_v0 = vld [vmem:[#allocation37_spill] sm:$0xff]  ;;  %v2933_v33 = vmul.f32 1.442695, %v2874_v32 }
 0x55c   : > { %5771 = vpow2.f32 %v2897_v3 }
 0x55d   : > { %v2927_v10 = vmul.f32 1.442695, %v2871_v39  ;;  %v7879_v39 = vld [vmem:[#allocation36_spill] sm:$0xff] }
 0x55e   : > { %v2740_v1 = vpop.permute.xlu1 %2739  ;;  %v2830_v57 = vpop.permute.xlu0 %2829 }
 0x55f   : > { %5773 = vpow2.f32 %v2927_v10  ;;  %v2857_v53 = vsub.f32 %v7875_v25, %v2740_v1  ;;  %3013 = vadd.xlane.f32.xlu1 %v5748_v11  ;;  %v2875_v24 = vsub.f32 %v7877_v0, %v2830_v57  ;;  %v7880_v10 = vld [vmem:[#allocation41_spill] sm:$0xff] }
 0x560   : > { %v5762_v51 = vpop.eup %5761  ;;  %5775 = vpow2.f32 %v2929_v55  ;;  %v2876_v55 = vsub.f32 %v7879_v39, %v2835_v15  ;;  %v7884_v39 = vld [vmem:[#allocation39_spill] sm:$0xff] }
 0x561   : > { %v5764_v44 = vpop.eup %5763  ;;  %v2899_v34 = vmul.f32 1.442695, %v2857_v53  ;;  %3019 = vadd.xlane.f32.xlu0 %v5762_v51  ;;  %5460 = vmatprep.mubr.f32.mxu0 %v5762_v51  ;;  %v2935_v13 = vmul.f32 1.442695, %v2875_v24  ;;  %v7881_v53 = vld [vmem:[#allocation34_spill] sm:$0xff] }
 0x562   : > { %v2820_v3 = vpop.permute.xlu1 %2819  ;;  %5461 = vmatmul.mubr.f32.gmra.mxu0 %v5764_v44  ;;  %v2840_v30 = vpop.permute.xlu0 %2839 }
 0x563   : > { %5777 = vpow2.f32 %v2899_v34  ;;  %v2873_v42 = vsub.f32 %v7878_v46, %v2820_v3  ;;  %3045 = vadd.xlane.f32.xlu1 %v7397_v20  ;;  %v2877_v1 = vsub.f32 %v7880_v10, %v2840_v30  ;;  %v7883_v3 = vld [vmem:[#allocation35_spill] sm:$0xff] }
 0x564   : > { %v5766_v11 = vpop.eup %5765  ;;  %5779 = vpow2.f32 %v2901_v41  ;;  %v2937_v41 = vmul.f32 1.442695, %v2876_v55 }
 0x565   : > { %v5768_v58 = vpop.eup %5767  ;;  %v2931_v27 = vmul.f32 1.442695, %v2873_v42  ;;  %3051 = vadd.xlane.f32.xlu0 %v5766_v11  ;;  %5516 = vmatprep.mubr.f32.mxu1 %v5766_v11  ;;  %v2939_v34 = vmul.f32 1.442695, %v2877_v1  ;;  %v7885_v1 = vld [vmem:[#allocation38_spill] sm:$0xff] }
 0x566   : > { %v2755_v57 = vpop.permute.xlu1 %2754  ;;  %5517 = vmatmul.mubr.f32.gmra.mxu1 %v5768_v58  ;;  %v2845_v25 = vpop.permute.xlu0 %2844 }
 0x567   : > { %5781 = vpow2.f32 %v2931_v27  ;;  %v2860_v51 = vsub.f32 %v7881_v53, %v2755_v57  ;;  %3017 = vadd.xlane.f32.xlu1 %v7404_v22  ;;  %v2878_v15 = vsub.f32 %v7882_v38, %v2845_v25 }
 0x568   : > { %v5770_v20 = vpop.eup %5769  ;;  %5783 = vpow2.f32 %v2933_v33 }
 0x569   : > { %v5772_v32 = vpop.eup %5771  ;;  %5785 = vpow2.f32 %v2935_v13  ;;  %3023 = vadd.xlane.f32.xlu0 %v5770_v20  ;;  %5463 = vmatprep.mubr.f32.mxu0 %v5770_v20  ;;  %v2905_v0 = vmul.f32 1.442695, %v2860_v51  ;;  %v2941_v22 = vmul.f32 1.442695, %v2878_v15 }
 0x56a   : > { %v2750_v24 = vpop.permute.xlu1 %2749  ;;  %5464 = vmatmul.mubr.f32.gmra.mxu0 %v5772_v32  ;;  %5787 = vpow2.f32 %v2937_v41 }
 0x56b   : > { %v2859_v30 = vsub.f32 %v7883_v3, %v2750_v24  ;;  %3049 = vadd.xlane.f32.xlu1 %v7409_v45  ;;  %5789 = vpow2.f32 %v2939_v34 }
 0x56c   : > { %v5774_v46 = vpop.eup %5773  ;;  %5791 = vpow2.f32 %v2905_v0 }
 0x56d   : > { %v5776_v42 = vpop.eup %5775  ;;  %v2903_v11 = vmul.f32 1.442695, %v2859_v30  ;;  %3055 = vadd.xlane.f32.xlu0 %v5774_v46  ;;  %5519 = vmatprep.mubr.f32.mxu1 %v5774_v46 }
 0x56e   : > { %v2760_v33 = vpop.permute.xlu1 %2759  ;;  %5520 = vmatmul.mubr.f32.gmra.mxu1 %v5776_v42 }
 0x56f   : > { %5793 = vpow2.f32 %v2903_v11  ;;  %v2861_v55 = vsub.f32 %v7884_v39, %v2760_v33  ;;  %3021 = vadd.xlane.f32.xlu1 %v5764_v44  ;;  %v7429_v44 = vpop.permute.xlu0 %3170  ;;  %v2683_v33 = vmul.f32 1.442695, %v2621_v12 }
 0x570   : > { %v5778_v13 = vpop.eup %5777  ;;  %5795 = vpow2.f32 %v2941_v22  ;;  %v2685_v22 = vmul.f32 1.442695, %v2622_v48 }
 0x571   : > { %v5780_v27 = vpop.eup %5779  ;;  %v2907_v10 = vmul.f32 1.442695, %v2861_v55  ;;  %3027 = vadd.xlane.f32.xlu0 %v5778_v13  ;;  %5466 = vmatprep.mubr.f32.mxu0 %v5778_v13 }
 0x572   : > { %v2765_v45 = vpop.permute.xlu1 %2764  ;;  %5467 = vmatmul.mubr.f32.gmra.mxu0 %v5780_v27 }
 0x573   : > { %5797 = vpow2.f32 %v2907_v10  ;;  %v2862_v57 = vsub.f32 %v7885_v1, %v2765_v45  ;;  %3053 = vadd.xlane.f32.xlu1 %v5768_v58  ;;  %v7431_v0 = vpop.permute.xlu0 %3185 }
 0x574   : > { %v5782_v25 = vpop.eup %5781 }
 0x575   : > { %v5784_v53 = vpop.eup %5783  ;;  %v2909_v51 = vmul.f32 1.442695, %v2862_v57  ;;  %3059 = vadd.xlane.f32.xlu0 %v5782_v25  ;;  %5522 = vmatprep.mubr.f32.mxu1 %v5782_v25 }
 0x576   : > { %v5786_v20 = vpop.eup %5785  ;;  %5523 = vmatmul.mubr.f32.gmra.mxu1 %v5784_v53  ;;  %v7435_v30 = vpop.permute.xlu1 %3175 }
 0x577   : > { %5799 = vpow2.f32 %v2909_v51  ;;  %3025 = vadd.xlane.f32.xlu1 %v5772_v32  ;;  %5525 = vmatprep.mubr.f32.mxu1 %v5786_v20  ;;  %v5788_v41 = vpop.eup %5787  ;;  %v7433_v32 = vpop.permute.xlu0 %3195 }
 0x578   : > { %v5790_v38 = vpop.eup %5789  ;;  %5801 = vpow2.f32 %v2685_v22  ;;  %v2959_v22 = vld [vmem:[#allocation4 + $0x80] sm:$0xff] }
 0x579   : > { %v5792_v15 = vpop.eup %5791  ;;  %5803 = vpow2.f32 %v2683_v33 }
 0x57a   : > { %5526 = vmatmul.mubr.f32.gmra.mxu1 %v5788_v41 }
 0x57b   : > { %3057 = vadd.xlane.f32.xlu1 %v5776_v42  ;;  %5528 = vmatprep.mubr.f32.mxu1 %v5790_v38  ;;  %v7437_v46 = vpop.permute.xlu0 %3255  ;;  %v7442_v42 = vpop.permute.xlu1 %3180 }
 0x57c   : > { %v5794_v34 = vpop.eup %5793 }
 0x57d   : > { %v5796_v58 = vpop.eup %5795  ;;  %3031 = vadd.xlane.f32.xlu0 %v5794_v34  ;;  %5469 = vmatprep.mubr.f32.mxu0 %v5794_v34 }
 0x57e   : > { %5470 = vmatmul.mubr.f32.gmra.mxu0 %v5792_v15  ;;  %5529 = vmatmul.mubr.f32.gmra.mxu1 %v5796_v58 }
 0x57f   : > { %3029 = vadd.xlane.f32.xlu1 %v5780_v27  ;;  %v7444_v11 = vpop.permute.xlu0 %3265  ;;  %v7449_v39 = vpop.permute.xlu1 %3190 }
 0x580   : > { %v5798_v24 = vpop.eup %5797 }
 0x581   : > { %5472 = vmatprep.mubr.f32.mxu0 %v5798_v24  ;;  %3063 = vadd.xlane.f32.xlu0 %v5786_v20 }
 0x583   : > { %3061 = vadd.xlane.f32.xlu1 %v5784_v53  ;;  %v7451_v55 = vpop.permute.xlu0 %3275  ;;  %v7453_v13 = vpop.permute.xlu1 %3250 }
 0x584   : > { %v5800_v3 = vpop.eup %5799 }
 0x585   : > { %5473 = vmatmul.mubr.f32.gmra.mxu0 %v5800_v3  ;;  %3035 = vadd.xlane.f32.xlu0 %v5798_v24  ;;  %v7457_v7 = vpop.eup %5801 }
 0x586   : > { %v7464_v54 = vpop.eup %5803 }
 0x587   : > { %3033 = vadd.xlane.f32.xlu1 %v5792_v15  ;;  %v7455_v5 = vpop.permute.xlu0 %3205  ;;  %v7460_v48 = vpop.permute.xlu1 %3260 }
 0x589   : > { %3067 = vadd.xlane.f32.xlu0 %v5790_v38 }
 0x58b   : > { %3065 = vadd.xlane.f32.xlu1 %v5788_v41  ;;  %v7462_v27 = vpop.permute.xlu0 %3285  ;;  %v7467_v12 = vpop.permute.xlu1 %3270 }
 0x58f   : > { %3037 = vadd.xlane.f32.xlu1 %v5800_v3  ;;  %v7469_v31 = vpop.permute.xlu0 %3215  ;;  %v7471_v10 = vpop.permute.xlu1 %3200 }
 0x593   : > { %3069 = vadd.xlane.f32.xlu1 %v5796_v58  ;;  %v7473_v45 = vpop.permute.xlu0 %3295  ;;  %v7475_v1 = vpop.permute.xlu1 %3280  ;;  %v2944_v58 = vld [vmem:[#allocation4 + $0x8] sm:$0xff] }
 0x594   : > { %v2976_v24 = vmul.f32 %v7272_v2, %v2944_v58  ;;  %v2961_v2 = vld [vmem:[#allocation4 + $0x90] sm:$0xff] }
 0x597   : > { %v7477_v57 = vpop.permute.xlu0 %3225  ;;  %v7479_v25 = vpop.permute.xlu1 %3210 }
 0x598   : > { %7886 = vst [vmem:[#allocation42_spill] sm:$0xff] %v7477_v57 }
 0x59b   : > { %v7481_v53 = vpop.permute.xlu0 %3305  ;;  %v7483_v51 = vpop.permute.xlu1 %3290 }
 0x59c   : > { %7887 = vst [vmem:[#allocation43_spill] sm:$0xff] %v7481_v53  ;;  %7888 = vst [vmem:[#allocation10_spill] sm:$0xff] %v7483_v51 }
 0x59f   : > { %3325 = vperm.xlu0 %5676, %v7457_v7   ;;  %v7485_v20 = vpop.permute.xlu0 %3235  ;;  %v7487_v41 = vpop.permute.xlu1 %3220 }
 0x5a0   : > { %7889 = vst [vmem:[#allocation12_spill] sm:$0xff] %v7485_v20  ;;  %7890 = vst [vmem:[#allocation11_spill] sm:$0xff] %v7487_v41  ;;  %v2991_v20 = vmul.f32 %v7298_v4, %v2959_v22  ;;  %v2945_v41 = vld [vmem:[#allocation4 + $0x10] sm:$0xff]  ;;  %v2960_v22 = vld [vmem:[#allocation4 + $0x88] sm:$0xff] }
 0x5a3   : > { %v7489_v38 = vpop.permute.xlu0 %3315  ;;  %v7491_v15 = vpop.permute.xlu1 %3300 }
 0x5a4   : > { %3320 = vperm.xlu1 %5675, %v7464_v54   ;;  %7891 = vst [vmem:[#allocation14_spill] sm:$0xff] %v7489_v38  ;;  %7892 = vst [vmem:[#allocation13_spill] sm:$0xff] %v7491_v15 }
 0x5a7   : > { %v7493_v34 = vpop.permute.xlu0 %3245  ;;  %v7496_v33 = vpop.permute.xlu1 %3230 }
 0x5a8   : > { %7893 = vst [vmem:[#allocation16_spill] sm:$0xff] %v7493_v34  ;;  %7894 = vst [vmem:[#allocation15_spill] sm:$0xff] %v7496_v33  ;;  %v2977_v34 = vmul.f32 %v7282_v52, %v2945_v41  ;;  %v2992_v52 = vmul.f32 %v7268_v59, %v2960_v22  ;;  %v2949_v59 = vld [vmem:[#allocation4 + $0x30] sm:$0xff] }
 0x5ab   : > { %v7500_v38 = vpop.permute.xlu1 %3310 }
 0x5af   : > { %v7506_v33 = vpop.permute.xlu1 %3240 }
 0x5cf   : > { %v3010_v3 = vpop.xlane.xlu0 %3009 }
 0x5d0   : > { %v3072_v53 = vadd.f32 %v3010_v3, %v2976_v24  ;;  %v2993_v24 = vmul.f32 %v7308_v8, %v2961_v2 }
 0x5d2   : > { %3105 = vst.msk [vmem:[#allocation4 + $0x8] sm:$0xff] %vm3103_vm5, %v3072_v53  ;;  %v2947_v53 = vld [vmem:[#allocation4 + $0x20] sm:$0xff] }
 0x5d3   : > { %v3040_v57 = vpop.xlane.xlu0 %3039 }
 0x5d4   : > { %v3087_v51 = vadd.f32 %v3040_v57, %v2991_v20  ;;  %v2979_v57 = vmul.f32 %v7288_v28, %v2947_v53  ;;  %v2963_v20 = vld [vmem:[#allocation4 + $0xa0] sm:$0xff]  ;;  %v2946_v28 = vld [vmem:[#allocation4 + $0x18] sm:$0xff] }
 0x5d5   : > { %v2995_v8 = vmul.f32 %v7318_v47, %v2963_v20  ;;  %v2978_v22 = vmul.f32 %v7250_v37, %v2946_v28  ;;  %v2981_v47 = vmul.f32 %v7328_v62, %v2949_v59  ;;  %v2964_v28 = vld [vmem:[#allocation4 + $0xa8] sm:$0xff] }
 0x5d6   : > { %3120 = vst.msk [vmem:[#allocation4 + $0x80] sm:$0xff] %vm3103_vm5, %v3087_v51 }
 0x5d7   : > { %v3012_v15 = vpop.xlane.xlu0 %3011 }
 0x5d8   : > { %v3073_v58 = vadd.f32 %v3012_v15, %v2977_v34  ;;  %v2943_v34 = vld [vmem:[#allocation4] sm:$0xff] }
 0x5da   : > { %3106 = vst.msk [vmem:[#allocation4 + $0x10] sm:$0xff] %vm3103_vm5, %v3073_v58 }
 0x5db   : > { %v3044_v3 = vpop.xlane.xlu0 %3043 }
 0x5dc   : > { %v3089_v4 = vadd.f32 %v3044_v3, %v2993_v24  ;;  %v2975_v24 = vmul.f32 %v7244_v56, %v2943_v34 }
 0x5de   : > { %3122 = vst.msk [vmem:[#allocation4 + $0x90] sm:$0xff] %vm3103_vm5, %v3089_v4 }
 0x5df   : > { %v3016_v51 = vpop.xlane.xlu0 %3015 }
 0x5e0   : > { %v3075_v41 = vadd.f32 %v3016_v51, %v2979_v57  ;;  %v3042_v15 = vpop.xlane.xlu1 %3041  ;;  %v2962_v51 = vld [vmem:[#allocation4 + $0x98] sm:$0xff] }
 0x5e1   : > { %v3088_v58 = vadd.f32 %v3042_v15, %v2992_v52  ;;  %v2994_v15 = vmul.f32 %v7278_v40, %v2962_v51 }
 0x5e2   : > { %3108 = vst.msk [vmem:[#allocation4 + $0x20] sm:$0xff] %vm3103_vm5, %v3075_v41  ;;  %v2965_v41 = vld [vmem:[#allocation4 + $0xb0] sm:$0xff] }
 0x5e3   : > { %3121 = vst.msk [vmem:[#allocation4 + $0x88] sm:$0xff] %vm3103_vm5, %v3088_v58  ;;  %v3048_v2 = vpop.xlane.xlu0 %3047  ;;  %v2948_v58 = vld [vmem:[#allocation4 + $0x28] sm:$0xff] }
 0x5e4   : > { %v3091_v3 = vadd.f32 %v3048_v2, %v2995_v8  ;;  %v3008_v4 = vpop.xlane.xlu1 %3007  ;;  %v2997_v2 = vmul.f32 %v7336_v26, %v2965_v41  ;;  %v2980_v62 = vmul.f32 %v7259_v35, %v2948_v58  ;;  %v2996_v26 = vmul.f32 %v7292_v19, %v2964_v28  ;;  %v2953_v41 = vld [vmem:[#allocation4 + $0x50] sm:$0xff] }
 0x5e5   : > { %v3071_v53 = vadd.f32 %v3008_v4, %v2975_v24  ;;  %v2951_v24 = vld [vmem:[#allocation4 + $0x40] sm:$0xff]  ;;  %v2985_v19 = vmul.f32 %v7360_v9, %v2953_v41 }
 0x5e6   : > { %3124 = vst.msk [vmem:[#allocation4 + $0xa0] sm:$0xff] %vm3103_vm5, %v3091_v3  ;;  %v2983_v40 = vmul.f32 %v7344_v6, %v2951_v24 }
 0x5e7   : > { %3104 = vst.msk [vmem:[#allocation4] sm:$0xff] %vm3103_vm5, %v3071_v53 }
 0x5e8   : > { %v3014_v57 = vpop.xlane.xlu1 %3013 }
 0x5e9   : > { %v3074_v52 = vadd.f32 %v3014_v57, %v2978_v22  ;;  %v2967_v22 = vld [vmem:[#allocation4 + $0xc0] sm:$0xff] }
 0x5ea   : > { %v3020_v20 = vpop.xlane.xlu0 %3019  ;;  %v2999_v35 = vmul.f32 %v7352_v14, %v2967_v22 }
 0x5eb   : > { %3107 = vst.msk [vmem:[#allocation4 + $0x18] sm:$0xff] %vm3103_vm5, %v3074_v52  ;;  %v3077_v56 = vadd.f32 %v3020_v20, %v2981_v47  ;;  %v2950_v52 = vld [vmem:[#allocation4 + $0x38] sm:$0xff] }
 0x5ec   : > { %v3046_v34 = vpop.xlane.xlu1 %3045  ;;  %v2982_v6 = vmul.f32 %v7302_v23, %v2950_v52 }
 0x5ed   : > { %3110 = vst.msk [vmem:[#allocation4 + $0x30] sm:$0xff] %vm3103_vm5, %v3077_v56  ;;  %v3090_v8 = vadd.f32 %v3046_v34, %v2994_v15  ;;  %v2966_v34 = vld [vmem:[#allocation4 + $0xb8] sm:$0xff] }
 0x5ee   : > { %v3052_v37 = vpop.xlane.xlu0 %3051  ;;  %v2998_v24 = vmul.f32 %v7312_v21, %v2966_v34 }
 0x5ef   : > { %3123 = vst.msk [vmem:[#allocation4 + $0x98] sm:$0xff] %vm3103_vm5, %v3090_v8  ;;  %v3093_v3 = vadd.f32 %v3052_v37, %v2997_v2  ;;  %v3137_v8 = vld [vmem:[#allocation5 + $0x8] sm:$0xff]  ;;  %v2969_v37 = vld [vmem:[#allocation4 + $0xd0] sm:$0xff] }
 0x5f0   : > { %v3018_v4 = vpop.xlane.xlu1 %3017  ;;  %v3329_v23 = vmul.f32 %v7435_v30, %v3137_v8  ;;  %v2968_v30 = vld [vmem:[#allocation4 + $0xc8] sm:$0xff] }
 0x5f1   : > { %3126 = vst.msk [vmem:[#allocation4 + $0xb0] sm:$0xff] %vm3103_vm5, %v3093_v3  ;;  %v3076_v53 = vadd.f32 %v3018_v4, %v2980_v62  ;;  %v3136_v3 = vld [vmem:[#allocation5] sm:$0xff]  ;;  %v2952_v4 = vld [vmem:[#allocation4 + $0x48] sm:$0xff] }
 0x5f2   : > { %v3024_v59 = vpop.xlane.xlu0 %3023  ;;  %v3328_v22 = vmul.f32 %v7429_v44, %v3136_v3  ;;  %v2984_v21 = vmul.f32 %v7322_v61, %v2952_v4  ;;  %v2955_v44 = vld [vmem:[#allocation4 + $0x60] sm:$0xff] }
 0x5f3   : > { %3109 = vst.msk [vmem:[#allocation4 + $0x28] sm:$0xff] %vm3103_vm5, %v3076_v53  ;;  %v3079_v57 = vadd.f32 %v3024_v59, %v2983_v40  ;;  %v3001_v53 = vmul.f32 %v7366_v49, %v2969_v37  ;;  %v3153_v40 = vld [vmem:[#allocation5 + $0x88] sm:$0xff]  ;;  %v2987_v8 = vmul.f32 %v7373_v17, %v2955_v44 }
 0x5f4   : > { %v3050_v51 = vpop.xlane.xlu1 %3049 }
 0x5f5   : > { %3112 = vst.msk [vmem:[#allocation4 + $0x40] sm:$0xff] %vm3103_vm5, %v3079_v57  ;;  %v3092_v47 = vadd.f32 %v3050_v51, %v2996_v26  ;;  %v3152_v51 = vld [vmem:[#allocation5 + $0x80] sm:$0xff] }
 0x5f6   : > { %v3056_v20 = vpop.xlane.xlu0 %3055 }
 0x5f7   : > { %3125 = vst.msk [vmem:[#allocation4 + $0xa8] sm:$0xff] %vm3103_vm5, %v3092_v47  ;;  %v3095_v56 = vadd.f32 %v3056_v20, %v2999_v35  ;;  %v3345_v35 = vmul.f32 %v7437_v46, %v3153_v40  ;;  %v2954_v46 = vld [vmem:[#allocation4 + $0x58] sm:$0xff] }
 0x5f8   : > { %v3022_v15 = vpop.xlane.xlu1 %3021 }
 0x5f9   : > { %3128 = vst.msk [vmem:[#allocation4 + $0xc0] sm:$0xff] %vm3103_vm5, %v3095_v56  ;;  %v3078_v58 = vadd.f32 %v3022_v15, %v2982_v6  ;;  %v3344_v56 = vmul.f32 %v7453_v13, %v3152_v51  ;;  %v3000_v6 = vmul.f32 %v7332_v18, %v2968_v30  ;;  %v3138_v18 = vld [vmem:[#allocation5 + $0x10] sm:$0xff]  ;;  %v2956_v51 = vld [vmem:[#allocation4 + $0x68] sm:$0xff] }
 0x5fa   : > { %v3028_v2 = vpop.xlane.xlu0 %3027 }
 0x5fb   : > { %3111 = vst.msk [vmem:[#allocation4 + $0x38] sm:$0xff] %vm3103_vm5, %v3078_v58  ;;  %v3081_v14 = vadd.f32 %v3028_v2, %v2985_v19  ;;  %v3139_v2 = vld [vmem:[#allocation5 + $0x18] sm:$0xff] }
 0x5fc   : > { %v3054_v62 = vpop.xlane.xlu1 %3053  ;;  %v3331_v4 = vmul.f32 %v7431_v0, %v3139_v2 }
 0x5fd   : > { %3114 = vst.msk [vmem:[#allocation4 + $0x50] sm:$0xff] %vm3103_vm5, %v3081_v14  ;;  %v3094_v28 = vadd.f32 %v3054_v62, %v2998_v24  ;;  %v2971_v14 = vld [vmem:[#allocation4 + $0xe0] sm:$0xff]  ;;  %v2986_v24 = vmul.f32 %v7340_v36, %v2954_v46  ;;  %v2970_v62 = vld [vmem:[#allocation4 + $0xd8] sm:$0xff] }
 0x5fe   : > { %v5453_v9 = vpop.f32.mrf.mxu0  ;;  %v3060_v59 = vpop.xlane.xlu0 %3059  ;;  %v3003_v17 = vmul.f32 %v7378_v43, %v2971_v14  ;;  %v3157_v14 = vld [vmem:[#allocation5 + $0xa8] sm:$0xff] }
 0x5ff   : > { %3127 = vst.msk [vmem:[#allocation4 + $0xb8] sm:$0xff] %vm3103_vm5, %v3094_v28  ;;  %v3651_v57 = vadd.f32 %v5453_v9, %v3329_v23  ;;  %v3097_v26 = vadd.f32 %v3060_v59, %v3001_v53  ;;  %v3155_v28 = vld [vmem:[#allocation5 + $0x98] sm:$0xff]  ;;  %v2957_v9 = vld [vmem:[#allocation4 + $0x70] sm:$0xff]  ;;  %v3330_v59 = vmul.f32 %v7442_v42, %v3138_v18 }
 0x600   : > { %v3426_v52 = vpop.f32.mrf.mxu0  ;;  %v3026_v47 = vpop.xlane.xlu1 %3025  ;;  %v2989_v42 = vmul.f32 %v7382_v16, %v2957_v9 }
 0x601   : > { %3683 = vst.msk [vmem:[#allocation5 + $0x8] sm:$0xff] %vm1980_vm4, %v3651_v57  ;;  %v3650_v49 = vadd.f32 %v3426_v52, %v3328_v22  ;;  %v3080_v20 = vadd.f32 %v3026_v47, %v2984_v21  ;;  %v3002_v57 = vmul.f32 %v7348_v50, %v2970_v62  ;;  %v3347_v52 = vmul.f32 %v7444_v11, %v3155_v28 }
 0x602   : > { %3130 = vst.msk [vmem:[#allocation4 + $0xd0] sm:$0xff] %vm3103_vm5, %v3097_v26  ;;  %v5509_v41 = vpop.f32.mrf.mxu1  ;;  %v3154_v26 = vld [vmem:[#allocation5 + $0x90] sm:$0xff]  ;;  %v2988_v11 = vmul.f32 %v7356_v63, %v2956_v51 }
 0x603   : > { %3682 = vst.msk [vmem:[#allocation5] sm:$0xff] %vm1980_vm4, %v3650_v49  ;;  %v3667_v61 = vadd.f32 %v5509_v41, %v3345_v35  ;;  %v2973_v49 = vld [vmem:[#allocation4 + $0xf0] sm:$0xff] }
 0x604   : > { %3113 = vst.msk [vmem:[#allocation4 + $0x48] sm:$0xff] %vm3103_vm5, %v3080_v20  ;;  %v3571_v15 = vpop.f32.mrf.mxu1  ;;  %v3058_v34 = vpop.xlane.xlu1 %3057  ;;  %v3346_v20 = vmul.f32 %v7460_v48, %v3154_v26  ;;  %v3141_v48 = vld [vmem:[#allocation5 + $0x28] sm:$0xff] }
 0x605   : > { %3699 = vst.msk [vmem:[#allocation5 + $0x88] sm:$0xff] %vm1980_vm4, %v3667_v61  ;;  %v3666_v58 = vadd.f32 %v3571_v15, %v3344_v56  ;;  %v3096_v19 = vadd.f32 %v3058_v34, %v3000_v6  ;;  %v2972_v61 = vld [vmem:[#allocation4 + $0xe8] sm:$0xff]  ;;  %v3005_v15 = vmul.f32 %v7464_v54, %v2973_v49  ;;  %v3333_v2 = vmul.f32 %v7433_v32, %v3141_v48 }
 0x606   : > { %v3032_v37 = vpop.xlane.xlu0 %3031  ;;  %v3004_v63 = vmul.f32 %v7362_v60, %v2972_v61 }
 0x607   : > { %3698 = vst.msk [vmem:[#allocation5 + $0x80] sm:$0xff] %vm1980_vm4, %v3666_v58  ;;  %v3083_v13 = vadd.f32 %v3032_v37, %v2987_v8  ;;  %v3140_v58 = vld [vmem:[#allocation5 + $0x20] sm:$0xff]  ;;  %v2958_v8 = vld [vmem:[#allocation4 + $0x78] sm:$0xff] }
 0x608   : > { %3129 = vst.msk [vmem:[#allocation4 + $0xc8] sm:$0xff] %vm3103_vm5, %v3096_v19  ;;  %v3030_v3 = vpop.xlane.xlu1 %3029  ;;  %v3332_v54 = vmul.f32 %v7449_v39, %v3140_v58  ;;  %v2990_v18 = vmul.f32 %v7368_v29, %v2958_v8 }
 0x609   : > { %3116 = vst.msk [vmem:[#allocation4 + $0x60] sm:$0xff] %vm3103_vm5, %v3083_v13  ;;  %v3082_v23 = vadd.f32 %v3030_v3, %v2986_v24  ;;  %v3156_v3 = vld [vmem:[#allocation5 + $0xa0] sm:$0xff] }
 0x60a   : > { %v5456_v53 = vpop.f32.mrf.mxu0  ;;  %v3064_v40 = vpop.xlane.xlu0 %3063 }
 0x60b   : > { %3115 = vst.msk [vmem:[#allocation4 + $0x58] sm:$0xff] %vm3103_vm5, %v3082_v23  ;;  %v3653_v22 = vadd.f32 %v5456_v53, %v3331_v4  ;;  %v3099_v36 = vadd.f32 %v3064_v40, %v3003_v17  ;;  %v2974_v4 = vld [vmem:[#allocation4 + $0xf8] sm:$0xff]  ;;  %v3349_v23 = vmul.f32 %v7451_v55, %v3157_v14  ;;  %v3348_v53 = vmul.f32 %v7467_v12, %v3156_v3  ;;  %v3162_v14 = vld [vmem:[#allocation5 + $0xd0] sm:$0xff]  ;;  %v3165_v3 = vld [vmem:[#allocation5 + $0xe8] sm:$0xff] }
 0x60c   : > { %v3436_v21 = vpop.f32.mrf.mxu0  ;;  %v3062_v0 = vpop.xlane.xlu1 %3061  ;;  %v3006_v29 = vmul.f32 %v7457_v7, %v2974_v4  ;;  %v3158_v7 = vld [vmem:[#allocation5 + $0xb0] sm:$0xff] }
 0x60d   : > { %3685 = vst.msk [vmem:[#allocation5 + $0x18] sm:$0xff] %vm1980_vm4, %v3653_v22  ;;  %v3652_v43 = vadd.f32 %v3436_v21, %v3330_v59  ;;  %v3098_v47 = vadd.f32 %v3062_v0, %v3002_v57  ;;  %v3143_v22 = vld [vmem:[#allocation5 + $0x38] sm:$0xff] }
 0x60e   : > { %3132 = vst.msk [vmem:[#allocation4 + $0xe0] sm:$0xff] %vm3103_vm5, %v3099_v36  ;;  %v5512_v30 = vpop.f32.mrf.mxu1  ;;  %v3036_v35 = vpop.xlane.xlu0 %3035  ;;  %v3142_v36 = vld [vmem:[#allocation5 + $0x30] sm:$0xff]  ;;  %v3335_v12 = vmul.f32 %v7455_v5, %v3143_v22  ;;  %v3159_v57 = vld [vmem:[#allocation5 + $0xb8] sm:$0xff]  ;;  %v3144_v5 = vld [vmem:[#allocation5 + $0x40] sm:$0xff] }
 0x60f   : > { %3684 = vst.msk [vmem:[#allocation5 + $0x10] sm:$0xff] %vm1980_vm4, %v3652_v43  ;;  %v3669_v50 = vadd.f32 %v5512_v30, %v3347_v52  ;;  %v3085_v41 = vadd.f32 %v3036_v35, %v2989_v42  ;;  %v3334_v21 = vmul.f32 %v7471_v10, %v3142_v36  ;;  %v3351_v52 = vmul.f32 %v7462_v27, %v3159_v57  ;;  %v3148_v36 = vld [vmem:[#allocation5 + $0x60] sm:$0xff] }
 0x610   : > { %3131 = vst.msk [vmem:[#allocation4 + $0xd8] sm:$0xff] %vm3103_vm5, %v3098_v47  ;;  %v3581_v44 = vpop.f32.mrf.mxu1  ;;  %v3034_v56 = vpop.xlane.xlu1 %3033  ;;  %v3145_v47 = vld [vmem:[#allocation5 + $0x48] sm:$0xff]  ;;  %v3350_v30 = vmul.f32 %v7475_v1, %v3158_v7  ;;  %v3336_v27 = vmul.f32 %v7479_v25, %v3144_v5  ;;  %v7896_v25 = vld [vmem:[#allocation42_spill] sm:$0xff] }
 0x611   : > { %3701 = vst.msk [vmem:[#allocation5 + $0x98] sm:$0xff] %vm1980_vm4, %v3669_v50  ;;  %v3668_v16 = vadd.f32 %v3581_v44, %v3346_v20  ;;  %v3084_v6 = vadd.f32 %v3034_v56, %v2988_v11  ;;  %v3337_v20 = vmul.f32 %v7469_v31, %v3145_v47  ;;  %v3161_v50 = vld [vmem:[#allocation5 + $0xc8] sm:$0xff]  ;;  %v3160_v44 = vld [vmem:[#allocation5 + $0xc0] sm:$0xff] }
 0x612   : > { %3118 = vst.msk [vmem:[#allocation4 + $0x70] sm:$0xff] %vm3103_vm5, %v3085_v41  ;;  %v3068_v34 = vpop.xlane.xlu0 %3067  ;;  %v3353_v1 = vmul.f32 %v7473_v45, %v3161_v50  ;;  %v7895_v31 = vld [vmem:[#allocation10_spill] sm:$0xff]  ;;  %v7897_v45 = vld [vmem:[#allocation11_spill] sm:$0xff] }
 0x613   : > { %3700 = vst.msk [vmem:[#allocation5 + $0x90] sm:$0xff] %vm1980_vm4, %v3668_v16  ;;  %v3101_v46 = vadd.f32 %v3068_v34, %v3005_v15  ;;  %v3147_v16 = vld [vmem:[#allocation5 + $0x58] sm:$0xff]  ;;  %v3352_v15 = vmul.f32 %v7895_v31, %v3160_v44  ;;  %v3146_v34 = vld [vmem:[#allocation5 + $0x50] sm:$0xff]  ;;  %v7902_v47 = vld [vmem:[#allocation15_spill] sm:$0xff] }
 0x614   : > { %3117 = vst.msk [vmem:[#allocation4 + $0x68] sm:$0xff] %vm3103_vm5, %v3084_v6  ;;  %v3066_v19 = vpop.xlane.xlu1 %3065 }
 0x615   : > { %3134 = vst.msk [vmem:[#allocation4 + $0xf0] sm:$0xff] %vm3103_vm5, %v3101_v46  ;;  %v3100_v37 = vadd.f32 %v3066_v19, %v3004_v63  ;;  %v3339_v63 = vmul.f32 %v7896_v25, %v3147_v16  ;;  %v3163_v19 = vld [vmem:[#allocation5 + $0xd8] sm:$0xff] }
 0x616   : > { %v5459_v13 = vpop.f32.mrf.mxu0 }
 0x617   : > { %3133 = vst.msk [vmem:[#allocation4 + $0xe8] sm:$0xff] %vm3103_vm5, %v3100_v37  ;;  %v3655_v24 = vadd.f32 %v5459_v13, %v3333_v2  ;;  %v3338_v2 = vmul.f32 %v7897_v45, %v3146_v34 }
 0x618   : > { %v3446_v62 = vpop.f32.mrf.mxu0  ;;  %v3038_v60 = vpop.xlane.xlu1 %3037 }
 0x619   : > { %3687 = vst.msk [vmem:[#allocation5 + $0x28] sm:$0xff] %vm1980_vm4, %v3655_v24  ;;  %v3654_v32 = vadd.f32 %v3446_v62, %v3332_v54  ;;  %v3086_v17 = vadd.f32 %v3038_v60, %v2990_v18  ;;  %v7898_v54 = vld [vmem:[#allocation43_spill] sm:$0xff]  ;;  %v7899_v60 = vld [vmem:[#allocation13_spill] sm:$0xff] }
 0x61a   : > { %v5515_v28 = vpop.f32.mrf.mxu1  ;;  %v3355_v24 = vmul.f32 %v7898_v54, %v3163_v19  ;;  %v3354_v4 = vmul.f32 %v7899_v60, %v3162_v14 }
 0x61b   : > { %3686 = vst.msk [vmem:[#allocation5 + $0x20] sm:$0xff] %vm1980_vm4, %v3654_v32  ;;  %v3671_v39 = vadd.f32 %v5515_v28, %v3349_v23  ;;  %v3164_v32 = vld [vmem:[#allocation5 + $0xe0] sm:$0xff] }
 0x61c   : > { %3119 = vst.msk [vmem:[#allocation4 + $0x78] sm:$0xff] %vm3103_vm5, %v3086_v17  ;;  %v3591_v40 = vpop.f32.mrf.mxu1  ;;  %v3070_v9 = vpop.xlane.xlu1 %3069  ;;  %v7900_v28 = vld [vmem:[#allocation14_spill] sm:$0xff] }
 0x61d   : > { %3703 = vst.msk [vmem:[#allocation5 + $0xa8] sm:$0xff] %vm1980_vm4, %v3671_v39  ;;  %v3670_v59 = vadd.f32 %v3591_v40, %v3348_v53  ;;  %v3102_v55 = vadd.f32 %v3070_v9, %v3006_v29  ;;  %v3357_v53 = vmul.f32 %v7900_v28, %v3165_v3  ;;  %v3149_v29 = vld [vmem:[#allocation5 + $0x68] sm:$0xff]  ;;  %v3167_v40 = vld [vmem:[#allocation5 + $0xf8] sm:$0xff]  ;;  %v3326_v9 = vpop.permute.xlu0 %3325 }
 0x61e   : > { %v3359_v7 = vmul.f32 %v3326_v9, %v3167_v40 }
 0x61f   : > { %3702 = vst.msk [vmem:[#allocation5 + $0xa0] sm:$0xff] %vm1980_vm4, %v3670_v59 }
 0x620   : > { %3135 = vst.msk [vmem:[#allocation4 + $0xf8] sm:$0xff] %vm3103_vm5, %v3102_v55  ;;  %v3356_v55 = vmul.f32 %v7500_v38, %v3164_v32  ;;  %v3321_v57 = vpop.permute.xlu1 %3320 }
 0x622   : > { %v5462_v26 = vpop.f32.mrf.mxu0 }
 0x623   : > { %v3657_v0 = vadd.f32 %v5462_v26, %v3335_v12  ;;  %v3166_v12 = vld [vmem:[#allocation5 + $0xf0] sm:$0xff] }
 0x624   : > { %v3456_v51 = vpop.f32.mrf.mxu0 }
 0x625   : > { %3689 = vst.msk [vmem:[#allocation5 + $0x38] sm:$0xff] %vm1980_vm4, %v3657_v0  ;;  %v3656_v43 = vadd.f32 %v3456_v51, %v3334_v21  ;;  %v7901_v21 = vld [vmem:[#allocation12_spill] sm:$0xff] }
 0x626   : > { %v5518_v42 = vpop.f32.mrf.mxu1  ;;  %v3341_v0 = vmul.f32 %v7901_v21, %v3149_v29 }
 0x627   : > { %3688 = vst.msk [vmem:[#allocation5 + $0x30] sm:$0xff] %vm1980_vm4, %v3656_v43  ;;  %v3673_v35 = vadd.f32 %v5518_v42, %v3351_v52  ;;  %v3340_v42 = vmul.f32 %v7902_v47, %v3148_v36 }
 0x628   : > { %v3601_v49 = vpop.f32.mrf.mxu1 }
 0x629   : > { %3705 = vst.msk [vmem:[#allocation5 + $0xb8] sm:$0xff] %vm1980_vm4, %v3673_v35  ;;  %v3672_v10 = vadd.f32 %v3601_v49, %v3350_v30  ;;  %v3358_v30 = vmul.f32 %v3321_v57, %v3166_v12 }
 0x62a   : > { %v5465_v41 = vpop.f32.mrf.mxu0 }
 0x62b   : > { %3704 = vst.msk [vmem:[#allocation5 + $0xb0] sm:$0xff] %vm1980_vm4, %v3672_v10  ;;  %v3659_v11 = vadd.f32 %v5465_v41, %v3337_v20  ;;  %v3151_v20 = vld [vmem:[#allocation5 + $0x78] sm:$0xff]  ;;  %v3150_v41 = vld [vmem:[#allocation5 + $0x70] sm:$0xff] }
 0x62c   : > { %v3466_v56 = vpop.f32.mrf.mxu0 }
 0x62d   : > { %3691 = vst.msk [vmem:[#allocation5 + $0x48] sm:$0xff] %vm1980_vm4, %v3659_v11  ;;  %v3658_v61 = vadd.f32 %v3466_v56, %v3336_v27  ;;  %v7903_v27 = vld [vmem:[#allocation16_spill] sm:$0xff]  ;;  %v3342_v56 = vmul.f32 %v7506_v33, %v3150_v41 }
 0x62e   : > { %v5521_v6 = vpop.f32.mrf.mxu1  ;;  %v3343_v11 = vmul.f32 %v7903_v27, %v3151_v20 }
 0x62f   : > { %3690 = vst.msk [vmem:[#allocation5 + $0x40] sm:$0xff] %vm1980_vm4, %v3658_v61  ;;  %v3675_v48 = vadd.f32 %v5521_v6, %v3353_v1 }
 0x630   : > { %v3611_v46 = vpop.f32.mrf.mxu1 }
 0x631   : > { %3707 = vst.msk [vmem:[#allocation5 + $0xc8] sm:$0xff] %vm1980_vm4, %v3675_v48  ;;  %v3674_v58 = vadd.f32 %v3611_v46, %v3352_v15 }
 0x632   : > { %v5468_v8 = vpop.f32.mrf.mxu0 }
 0x633   : > { %3706 = vst.msk [vmem:[#allocation5 + $0xc0] sm:$0xff] %vm1980_vm4, %v3674_v58  ;;  %v3661_v37 = vadd.f32 %v5468_v8, %v3339_v63 }
 0x634   : > { %v3476_v13 = vpop.f32.mrf.mxu0 }
 0x635   : > { %3693 = vst.msk [vmem:[#allocation5 + $0x58] sm:$0xff] %vm1980_vm4, %v3661_v37  ;;  %v3660_v18 = vadd.f32 %v3476_v13, %v3338_v2 }
 0x636   : > { %v5524_v62 = vpop.f32.mrf.mxu1 }
 0x637   : > { %3692 = vst.msk [vmem:[#allocation5 + $0x50] sm:$0xff] %vm1980_vm4, %v3660_v18  ;;  %v3677_v23 = vadd.f32 %v5524_v62, %v3355_v24 }
 0x638   : > { %v3621_v17 = vpop.f32.mrf.mxu1 }
 0x639   : > { %3709 = vst.msk [vmem:[#allocation5 + $0xd8] sm:$0xff] %vm1980_vm4, %v3677_v23  ;;  %v3676_v39 = vadd.f32 %v3621_v17, %v3354_v4 }
 0x63a   : > { %v5527_v59 = vpop.f32.mrf.mxu1 }
 0x63b   : > { %3708 = vst.msk [vmem:[#allocation5 + $0xd0] sm:$0xff] %vm1980_vm4, %v3676_v39  ;;  %v3679_v22 = vadd.f32 %v5527_v59, %v3357_v53 }
 0x63c   : > { %v3631_v26 = vpop.f32.mrf.mxu1 }
 0x63d   : > { %3711 = vst.msk [vmem:[#allocation5 + $0xe8] sm:$0xff] %vm1980_vm4, %v3679_v22  ;;  %v3678_v51 = vadd.f32 %v3631_v26, %v3356_v55 }
 0x63e   : > { %v5471_v52 = vpop.f32.mrf.mxu0  ;;  %v5530_v43 = vpop.f32.mrf.mxu1 }
 0x63f   : > { %3710 = vst.msk [vmem:[#allocation5 + $0xe0] sm:$0xff] %vm1980_vm4, %v3678_v51  ;;  %v3663_v38 = vadd.f32 %v5471_v52, %v3341_v0  ;;  %v3681_v35 = vadd.f32 %v5530_v43, %v3359_v7 }
 0x640   : > { %v3486_v5 = vpop.f32.mrf.mxu0  ;;  %v3641_v49 = vpop.f32.mrf.mxu1 }
 0x641   : > { %3695 = vst.msk [vmem:[#allocation5 + $0x68] sm:$0xff] %vm1980_vm4, %v3663_v38  ;;  %3713 = vst.msk [vmem:[#allocation5 + $0xf8] sm:$0xff] %vm1980_vm4, %v3681_v35  ;;  %v3662_v10 = vadd.f32 %v3486_v5, %v3340_v42  ;;  %v3680_v50 = vadd.f32 %v3641_v49, %v3358_v30 }
 0x643   : > { %3694 = vst.msk [vmem:[#allocation5 + $0x60] sm:$0xff] %vm1980_vm4, %v3662_v10  ;;  %3712 = vst.msk [vmem:[#allocation5 + $0xf0] sm:$0xff] %vm1980_vm4, %v3680_v50 }
 0x645   : > { %v5474_v44 = vpop.f32.mrf.mxu0 }
 0x646   : > { %v3665_v1 = vadd.f32 %v5474_v44, %v3343_v11  ;;  %3749 = sbr.rel (%p4834_p10) target bundleno = 2014 (0x7de), region = 64 }
 0x647   : > { %v3496_v61 = vpop.f32.mrf.mxu0 }
 0x648   : > { %3697 = vst.msk [vmem:[#allocation5 + $0x78] sm:$0xff] %vm1980_vm4, %v3665_v1  ;;  %v3664_v16 = vadd.f32 %v3496_v61, %v3342_v56 }
 0x64a   : > { %3696 = vst.msk [vmem:[#allocation5 + $0x70] sm:$0xff] %vm1980_vm4, %v3664_v16 }
 0x64b   : > { %v3751_v6 = vld [vmem:[#allocation4 + $0x8] sm:$0xff]  ;;  %v3750_v31 = vld [vmem:[#allocation4] sm:$0xff]  ;;  %v5930_v48 = vmov 0   ;;  %v3768_v33 = vld [vmem:[#allocation4 + $0x90] sm:$0xff] }
 0x64c   : > { %v3767_v15 = vld [vmem:[#allocation4 + $0x88] sm:$0xff]  ;;  %5806 = vset.pattern.permute.xlu1 %v5930_v48  ;;  %5805 = vset.pattern.permute.xlu0 %v5930_v48  ;;  %5807 = vrcp.f32 %v3751_v6  ;;  %v3766_v34 = vld [vmem:[#allocation4 + $0x80] sm:$0xff]  ;;  %v3752_v46 = vld [vmem:[#allocation4 + $0x10] sm:$0xff] }
 0x64d   : > { %5809 = vrcp.f32 %v3750_v31  ;;  %v3769_v25 = vld [vmem:[#allocation4 + $0x98] sm:$0xff]  ;;  %v4038_v58 = vld [vmem:[%s7773_s6] sm:$0xff]  ;;  %v4039_v37 = vld [vmem:[%s7773_s6 + $0x8] sm:$0xff] }
 0x64e   : > { %5811 = vrcp.f32 %v3767_v15  ;;  %v3753_v63 = vld [vmem:[#allocation4 + $0x18] sm:$0xff]  ;;  %v3770_v19 = vld [vmem:[#allocation4 + $0xa0] sm:$0xff]  ;;  %5531 = vmatprep.subr.mxu0 %v4038_v58  ;;  %v3771_v13 = vld [vmem:[#allocation4 + $0xa8] sm:$0xff]  ;;  %5557 = vmatprep.subr.mxu1 %v4039_v37 }
 0x64f   : > { %5813 = vrcp.f32 %v3766_v34  ;;  %v3754_v8 = vld [vmem:[#allocation4 + $0x20] sm:$0xff]  ;;  %5532 = vmatpush3.msra.mxu0 %v4038_v58  ;;  %v3755_v24 = vld [vmem:[#allocation4 + $0x28] sm:$0xff]  ;;  %5558 = vmatpush3.msra.mxu1 %v4039_v37  ;;  %v3772_v3 = vld [vmem:[#allocation4 + $0xb0] sm:$0xff] }
 0x650   : > { %5815 = vrcp.f32 %v3768_v33  ;;  %v3756_v60 = vld [vmem:[#allocation4 + $0x30] sm:$0xff]  ;;  %v3773_v23 = vld [vmem:[#allocation4 + $0xb8] sm:$0xff]  ;;  %v3774_v53 = vld [vmem:[#allocation4 + $0xc0] sm:$0xff] }
 0x651   : > { %5817 = vrcp.f32 %v3752_v46  ;;  %v3757_v17 = vld [vmem:[#allocation4 + $0x38] sm:$0xff]  ;;  %v3758_v29 = vld [vmem:[#allocation4 + $0x40] sm:$0xff]  ;;  %v3775_v9 = vld [vmem:[#allocation4 + $0xc8] sm:$0xff] }
 0x652   : > { %5819 = vrcp.f32 %v3769_v25  ;;  %v3759_v55 = vld [vmem:[#allocation4 + $0x48] sm:$0xff]  ;;  %v3776_v36 = vld [vmem:[#allocation4 + $0xd0] sm:$0xff]  ;;  %v3777_v21 = vld [vmem:[#allocation4 + $0xd8] sm:$0xff] }
 0x653   : > { %5821 = vrcp.f32 %v3753_v63  ;;  %v3760_v57 = vld [vmem:[#allocation4 + $0x50] sm:$0xff]  ;;  %v3761_v7 = vld [vmem:[#allocation4 + $0x58] sm:$0xff]  ;;  %v3778_v52 = vld [vmem:[#allocation4 + $0xe0] sm:$0xff] }
 0x654   : > { %5823 = vrcp.f32 %v3770_v19  ;;  %v3762_v47 = vld [vmem:[#allocation4 + $0x60] sm:$0xff]  ;;  %v3779_v30 = vld [vmem:[#allocation4 + $0xe8] sm:$0xff]  ;;  %v3780_v49 = vld [vmem:[#allocation4 + $0xf0] sm:$0xff] }
 0x655   : > { %5825 = vrcp.f32 %v3754_v8  ;;  %v3763_v35 = vld [vmem:[#allocation4 + $0x68] sm:$0xff]  ;;  %v3764_v10 = vld [vmem:[#allocation4 + $0x70] sm:$0xff]  ;;  %v3781_v41 = vld [vmem:[#allocation4 + $0xf8] sm:$0xff] }
 0x656   : > { %5827 = vrcp.f32 %v3771_v13  ;;  %v3765_v11 = vld [vmem:[#allocation4 + $0x78] sm:$0xff]  ;;  %v3815_v48 = vld [vmem:[#allocation5 + $0x8] sm:$0xff]  ;;  %v3814_v34 = vld [vmem:[#allocation5] sm:$0xff] }
 0x657   : > { %5829 = vrcp.f32 %v3755_v24  ;;  %v3831_v58 = vld [vmem:[#allocation5 + $0x88] sm:$0xff]  ;;  %v3830_v19 = vld [vmem:[#allocation5 + $0x80] sm:$0xff]  ;;  %v3816_v13 = vld [vmem:[#allocation5 + $0x10] sm:$0xff] }
 0x658   : > { %5831 = vrcp.f32 %v3772_v3 }
 0x659   : > { %v5808_v45 = vpop.eup %5807  ;;  %5833 = vrcp.f32 %v3756_v60  ;;  %v3817_v60 = vld [vmem:[#allocation5 + $0x18] sm:$0xff] }
 0x65a   : > { %v5810_v2 = vpop.eup %5809  ;;  %3853 = vperm.xlu1 %5806, %v5808_v45   ;;  %5835 = vrcp.f32 %v3773_v23 }
 0x65b   : > { %v5812_v14 = vpop.eup %5811  ;;  %3848 = vperm.xlu0 %5805, %v5810_v2   ;;  %5837 = vrcp.f32 %v3757_v17 }
 0x65c   : > { %v5814_v54 = vpop.eup %5813  ;;  %5839 = vrcp.f32 %v3774_v53  ;;  %v3818_v53 = vld [vmem:[#allocation5 + $0x20] sm:$0xff] }
 0x65d   : > { %v5816_v18 = vpop.eup %5815  ;;  %5841 = vrcp.f32 %v3758_v29 }
 0x65e   : > { %3933 = vperm.xlu1 %5806, %v5812_v14   ;;  %v5818_v62 = vpop.eup %5817  ;;  %5843 = vrcp.f32 %v3775_v9  ;;  %v3832_v14 = vld [vmem:[#allocation5 + $0x90] sm:$0xff] }
 0x65f   : > { %3928 = vperm.xlu0 %5805, %v5814_v54   ;;  %v5820_v4 = vpop.eup %5819  ;;  %5845 = vrcp.f32 %v3759_v55  ;;  %v3819_v55 = vld [vmem:[#allocation5 + $0x28] sm:$0xff] }
 0x660   : > { %v5822_v32 = vpop.eup %5821  ;;  %5847 = vrcp.f32 %v3776_v36 }
 0x661   : > { %v5824_v28 = vpop.eup %5823  ;;  %5849 = vrcp.f32 %v3760_v57 }
 0x662   : > { %3938 = vperm.xlu1 %5806, %v5816_v18   ;;  %v5826_v39 = vpop.eup %5825  ;;  %5851 = vrcp.f32 %v3777_v21  ;;  %v3820_v21 = vld [vmem:[#allocation5 + $0x30] sm:$0xff] }
 0x663   : > { %3858 = vperm.xlu0 %5805, %v5818_v62   ;;  %v5828_v40 = vpop.eup %5827  ;;  %5853 = vrcp.f32 %v3761_v7  ;;  %v3833_v62 = vld [vmem:[#allocation5 + $0x98] sm:$0xff] }
 0x664   : > { %v5830_v59 = vpop.eup %5829  ;;  %5855 = vrcp.f32 %v3778_v52 }
 0x665   : > { %v5832_v22 = vpop.eup %5831  ;;  %5857 = vrcp.f32 %v3762_v47  ;;  %v3821_v47 = vld [vmem:[#allocation5 + $0x38] sm:$0xff] }
 0x666   : > { %3943 = vperm.xlu1 %5806, %v5820_v4   ;;  %v5834_v12 = vpop.eup %5833  ;;  %5859 = vrcp.f32 %v3779_v30 }
 0x667   : > { %3863 = vperm.xlu0 %5805, %v5822_v32   ;;  %v5836_v26 = vpop.eup %5835  ;;  %5861 = vrcp.f32 %v3763_v35 }
 0x668   : > { %v5838_v0 = vpop.eup %5837  ;;  %5863 = vrcp.f32 %v3780_v49  ;;  %v3822_v49 = vld [vmem:[#allocation5 + $0x40] sm:$0xff] }
 0x669   : > { %v5840_v51 = vpop.eup %5839  ;;  %5865 = vrcp.f32 %v3764_v10 }
 0x66a   : > { %3948 = vperm.xlu1 %5806, %v5824_v28   ;;  %v5842_v43 = vpop.eup %5841  ;;  %5867 = vrcp.f32 %v3781_v41  ;;  %v3834_v28 = vld [vmem:[#allocation5 + $0xa0] sm:$0xff] }
 0x66b   : > { %3868 = vperm.xlu0 %5805, %v5826_v39   ;;  %v5844_v42 = vpop.eup %5843  ;;  %5869 = vrcp.f32 %v3765_v11  ;;  %v3823_v11 = vld [vmem:[#allocation5 + $0x48] sm:$0xff] }
 0x66c   : > { %v5846_v38 = vpop.eup %5845 }
 0x66d   : > { %v5848_v5 = vpop.eup %5847 }
 0x66e   : > { %3953 = vperm.xlu1 %5806, %v5828_v40   ;;  %v5850_v20 = vpop.eup %5849 }
 0x66f   : > { %3873 = vperm.xlu0 %5805, %v5830_v59   ;;  %v5852_v50 = vpop.eup %5851  ;;  %v3835_v59 = vld [vmem:[#allocation5 + $0xa8] sm:$0xff] }
 0x670   : > { %v5854_v27 = vpop.eup %5853 }
 0x671   : > { %v5856_v44 = vpop.eup %5855 }
 0x672   : > { %3958 = vperm.xlu1 %5806, %v5832_v22   ;;  %v5858_v56 = vpop.eup %5857 }
 0x673   : > { %3878 = vperm.xlu0 %5805, %v5834_v12   ;;  %v5860_v1 = vpop.eup %5859 }
 0x674   : > { %v5862_v61 = vpop.eup %5861 }
 0x675   : > { %v5864_v16 = vpop.eup %5863 }
 0x676   : > { %3963 = vperm.xlu1 %5806, %v5836_v26   ;;  %v5866_v6 = vpop.eup %5865  ;;  %v3836_v26 = vld [vmem:[#allocation5 + $0xb0] sm:$0xff] }
 0x677   : > { %3883 = vperm.xlu0 %5805, %v5838_v0   ;;  %v5868_v31 = vpop.eup %5867 }
 0x678   : > { %v5870_v15 = vpop.eup %5869 }
 0x67a   : > { %3968 = vperm.xlu1 %5806, %v5840_v51  }
 0x67b   : > { %3888 = vperm.xlu0 %5805, %v5842_v43   ;;  %v3837_v43 = vld [vmem:[#allocation5 + $0xb8] sm:$0xff] }
 0x67e   : > { %3973 = vperm.xlu1 %5806, %v5844_v42  }
 0x67f   : > { %3893 = vperm.xlu0 %5805, %v5846_v38  }
 0x682   : > { %3978 = vperm.xlu1 %5806, %v5848_v5   ;;  %v3838_v5 = vld [vmem:[#allocation5 + $0xc0] sm:$0xff] }
 0x683   : > { %3898 = vperm.xlu0 %5805, %v5850_v20  }
 0x686   : > { %3983 = vperm.xlu1 %5806, %v5852_v50  }
 0x687   : > { %3903 = vperm.xlu0 %5805, %v5854_v27   ;;  %v3839_v27 = vld [vmem:[#allocation5 + $0xc8] sm:$0xff] }
 0x68a   : > { %3988 = vperm.xlu1 %5806, %v5856_v44  }
 0x68b   : > { %3908 = vperm.xlu0 %5805, %v5858_v56  }
 0x68e   : > { %3993 = vperm.xlu1 %5806, %v5860_v1  }
 0x68f   : > { %3913 = vperm.xlu0 %5805, %v5862_v61  }
 0x692   : > { %3998 = vperm.xlu1 %5806, %v5864_v16   ;;  %v3840_v16 = vld [vmem:[#allocation5 + $0xd0] sm:$0xff] }
 0x693   : > { %3918 = vperm.xlu0 %5805, %v5866_v6   ;;  %v3824_v6 = vld [vmem:[#allocation5 + $0x50] sm:$0xff] }
 0x696   : > { %4003 = vperm.xlu1 %5806, %v5868_v31  }
 0x697   : > { %3923 = vperm.xlu0 %5805, %v5870_v15  }
 0x6d5   : > { %v3854_v33 = vpop.permute.xlu1 %3853 }
 0x6d6   : > { %v4007_v46 = vmul.f32 %v3854_v33, %v3815_v48  ;;  %v3849_v25 = vpop.permute.xlu0 %3848  ;;  %v3841_v33 = vld [vmem:[#allocation5 + $0xd8] sm:$0xff] }
 0x6d7   : > { %v4006_v63 = vmul.f32 %v3849_v25, %v3814_v34 }
 0x6d9   : > { %5533 = vmatprep.mubr.msk.f32.mxu0 %vm1980_vm4, %v4006_v63  ;;  %v3934_v8 = vpop.permute.xlu1 %3933 }
 0x6da   : > { %v4023_v45 = vmul.f32 %v3934_v8, %v3831_v58  ;;  %5534 = vmatmul.mubr.msk.f32.vlgmr.msra.gmra.mxu0 %vm1980_vm4, %v4007_v46  ;;  %v3929_v2 = vpop.permute.xlu0 %3928  ;;  %v3825_v46 = vld [vmem:[#allocation5 + $0x58] sm:$0xff]  ;;  %v3842_v8 = vld [vmem:[#allocation5 + $0xe0] sm:$0xff] }
 0x6db   : > { %v4022_v37 = vmul.f32 %v3929_v2, %v3830_v19 }
 0x6dd   : > { %5559 = vmatprep.mubr.msk.f32.mxu1 %vm1980_vm4, %v4022_v37  ;;  %v3939_v54 = vpop.permute.xlu1 %3938 }
 0x6de   : > { %v4024_v24 = vmul.f32 %v3939_v54, %v3832_v14  ;;  %5560 = vmatmul.mubr.msk.f32.vlgmr.msra.gmra.mxu1 %vm1980_vm4, %v4023_v45  ;;  %v3859_v18 = vpop.permute.xlu0 %3858  ;;  %v3826_v45 = vld [vmem:[#allocation5 + $0x60] sm:$0xff]  ;;  %v3843_v54 = vld [vmem:[#allocation5 + $0xe8] sm:$0xff] }
 0x6df   : > { %v4008_v3 = vmul.f32 %v3859_v18, %v3816_v13 }
 0x6e0   : > { %5562 = vmatprep.mubr.msk.f32.mxu1 %vm1980_vm4, %v4024_v24  ;;  %v3827_v24 = vld [vmem:[#allocation5 + $0x68] sm:$0xff] }
 0x6e1   : > { %5536 = vmatprep.mubr.msk.f32.mxu0 %vm1980_vm4, %v4008_v3  ;;  %v3944_v4 = vpop.permute.xlu1 %3943 }
 0x6e2   : > { %v4025_v23 = vmul.f32 %v3944_v4, %v3833_v62  ;;  %v3864_v32 = vpop.permute.xlu0 %3863  ;;  %v3844_v4 = vld [vmem:[#allocation5 + $0xf0] sm:$0xff] }
 0x6e3   : > { %v4009_v17 = vmul.f32 %v3864_v32, %v3817_v60 }
 0x6e4   : > { %5563 = vmatmul.mubr.msk.f32.gmra.mxu1 %vm1980_vm4, %v4025_v23  ;;  %v3828_v23 = vld [vmem:[#allocation5 + $0x70] sm:$0xff] }
 0x6e5   : > { %5537 = vmatmul.mubr.msk.f32.gmra.mxu0 %vm1980_vm4, %v4009_v17  ;;  %v3949_v39 = vpop.permute.xlu1 %3948 }
 0x6e6   : > { %v4026_v29 = vmul.f32 %v3949_v39, %v3834_v28  ;;  %v3869_v40 = vpop.permute.xlu0 %3868  ;;  %v3845_v39 = vld [vmem:[#allocation5 + $0xf8] sm:$0xff] }
 0x6e7   : > { %v4010_v9 = vmul.f32 %v3869_v40, %v3818_v53 }
 0x6e8   : > { %5565 = vmatprep.mubr.msk.f32.mxu1 %vm1980_vm4, %v4026_v29  ;;  %v3829_v29 = vld [vmem:[#allocation5 + $0x78] sm:$0xff] }
 0x6e9   : > { %5539 = vmatprep.mubr.msk.f32.mxu0 %vm1980_vm4, %v4010_v9  ;;  %v3954_v22 = vpop.permute.xlu1 %3953 }
 0x6ea   : > { %v4027_v36 = vmul.f32 %v3954_v22, %v3835_v59  ;;  %v3874_v12 = vpop.permute.xlu0 %3873 }
 0x6eb   : > { %v4011_v57 = vmul.f32 %v3874_v12, %v3819_v55 }
 0x6ec   : > { %5566 = vmatmul.mubr.msk.f32.gmra.mxu1 %vm1980_vm4, %v4027_v36 }
 0x6ed   : > { %5540 = vmatmul.mubr.msk.f32.gmra.mxu0 %vm1980_vm4, %v4011_v57  ;;  %v3959_v0 = vpop.permute.xlu1 %3958 }
 0x6ee   : > { %v4028_v7 = vmul.f32 %v3959_v0, %v3836_v26  ;;  %v3879_v51 = vpop.permute.xlu0 %3878 }
 0x6ef   : > { %v4012_v52 = vmul.f32 %v3879_v51, %v3820_v21  ;;  %v4475_v21 = vld [vmem:[%s6029_s26 + $0x8] sm:$0xff] }
 0x6f0   : > { %5568 = vmatprep.mubr.msk.f32.mxu1 %vm1980_vm4, %v4028_v7 }
 0x6f1   : > { %5542 = vmatprep.mubr.msk.f32.mxu0 %vm1980_vm4, %v4012_v52  ;;  %v3964_v42 = vpop.permute.xlu1 %3963 }
 0x6f2   : > { %v4029_v30 = vmul.f32 %v3964_v42, %v3837_v43  ;;  %v3884_v38 = vpop.permute.xlu0 %3883  ;;  %v4474_v43 = vld [vmem:[%s6029_s26] sm:$0xff] }
 0x6f3   : > { %v4013_v35 = vmul.f32 %v3884_v38, %v3821_v47 }
 0x6f4   : > { %5569 = vmatmul.mubr.msk.f32.gmra.mxu1 %vm1980_vm4, %v4029_v30 }
 0x6f5   : > { %5543 = vmatmul.mubr.msk.f32.gmra.mxu0 %vm1980_vm4, %v4013_v35  ;;  %v3969_v20 = vpop.permute.xlu1 %3968 }
 0x6f6   : > { %v4030_v10 = vmul.f32 %v3969_v20, %v3838_v5  ;;  %v3889_v50 = vpop.permute.xlu0 %3888  ;;  %v4477_v20 = vld [vmem:[%s6029_s26 + $0x18] sm:$0xff] }
 0x6f7   : > { %v4014_v41 = vmul.f32 %v3889_v50, %v3822_v49 }
 0x6f8   : > { %5571 = vmatprep.mubr.msk.f32.mxu1 %vm1980_vm4, %v4030_v10 }
 0x6f9   : > { %5545 = vmatprep.mubr.msk.f32.mxu0 %vm1980_vm4, %v4014_v41  ;;  %v3974_v44 = vpop.permute.xlu1 %3973 }
 0x6fa   : > { %v4031_v56 = vmul.f32 %v3974_v44, %v3839_v27  ;;  %v3894_v1 = vpop.permute.xlu0 %3893  ;;  %v4476_v44 = vld [vmem:[%s6029_s26 + $0x10] sm:$0xff] }
 0x6fb   : > { %v4015_v61 = vmul.f32 %v3894_v1, %v3823_v11 }
 0x6fc   : > { %5572 = vmatmul.mubr.msk.f32.gmra.mxu1 %vm1980_vm4, %v4031_v56 }
 0x6fd   : > { %5546 = vmatmul.mubr.msk.f32.gmra.mxu0 %vm1980_vm4, %v4015_v61  ;;  %v3979_v31 = vpop.permute.xlu1 %3978 }
 0x6fe   : > { %v4032_v15 = vmul.f32 %v3979_v31, %v3840_v16  ;;  %v3899_v48 = vpop.permute.xlu0 %3898 }
 0x6ff   : > { %v4016_v34 = vmul.f32 %v3899_v48, %v3824_v6  ;;  %v4479_v48 = vld [vmem:[%s6029_s26 + $0x28] sm:$0xff] }
 0x700   : > { %5574 = vmatprep.mubr.msk.f32.mxu1 %vm1980_vm4, %v4032_v15 }
 0x701   : > { %5548 = vmatprep.mubr.msk.f32.mxu0 %vm1980_vm4, %v4016_v34  ;;  %v3984_v25 = vpop.permute.xlu1 %3983 }
 0x702   : > { %v4033_v63 = vmul.f32 %v3984_v25, %v3841_v33  ;;  %v3904_v58 = vpop.permute.xlu0 %3903 }
 0x703   : > { %v4017_v19 = vmul.f32 %v3904_v58, %v3825_v46  ;;  %v4478_v58 = vld [vmem:[%s6029_s26 + $0x20] sm:$0xff] }
 0x704   : > { %5575 = vmatmul.mubr.msk.f32.gmra.mxu1 %vm1980_vm4, %v4033_v63 }
 0x705   : > { %5549 = vmatmul.mubr.msk.f32.gmra.mxu0 %vm1980_vm4, %v4017_v19  ;;  %v3989_v2 = vpop.permute.xlu1 %3988 }
 0x706   : > { %v4034_v37 = vmul.f32 %v3989_v2, %v3842_v8  ;;  %v3909_v14 = vpop.permute.xlu0 %3908 }
 0x707   : > { %v4018_v13 = vmul.f32 %v3909_v14, %v3826_v45 }
 0x708   : > { %5577 = vmatprep.mubr.msk.f32.mxu1 %vm1980_vm4, %v4034_v37 }
 0x709   : > { %5551 = vmatprep.mubr.msk.f32.mxu0 %vm1980_vm4, %v4018_v13  ;;  %v3994_v18 = vpop.permute.xlu1 %3993 }
 0x70a   : > { %v4035_v3 = vmul.f32 %v3994_v18, %v3843_v54  ;;  %v3914_v62 = vpop.permute.xlu0 %3913  ;;  %v4481_v54 = vld [vmem:[%s6029_s26 + $0x38] sm:$0xff] }
 0x70b   : > { %v4019_v60 = vmul.f32 %v3914_v62, %v3827_v24 }
 0x70c   : > { %5578 = vmatmul.mubr.msk.f32.gmra.mxu1 %vm1980_vm4, %v4035_v3 }
 0x70d   : > { %5552 = vmatmul.mubr.msk.f32.gmra.mxu0 %vm1980_vm4, %v4019_v60  ;;  %v3999_v32 = vpop.permute.xlu1 %3998 }
 0x70e   : > { %v4036_v17 = vmul.f32 %v3999_v32, %v3844_v4  ;;  %v3919_v28 = vpop.permute.xlu0 %3918  ;;  %v4480_v4 = vld [vmem:[%s6029_s26 + $0x30] sm:$0xff] }
 0x70f   : > { %v4020_v53 = vmul.f32 %v3919_v28, %v3828_v23 }
 0x710   : > { %5580 = vmatprep.mubr.msk.f32.mxu1 %vm1980_vm4, %v4036_v17 }
 0x711   : > { %5554 = vmatprep.mubr.msk.f32.mxu0 %vm1980_vm4, %v4020_v53  ;;  %v4004_v40 = vpop.permute.xlu1 %4003 }
 0x712   : > { %v4037_v9 = vmul.f32 %v4004_v40, %v3845_v39  ;;  %v3924_v59 = vpop.permute.xlu0 %3923  ;;  %v4483_v40 = vld [vmem:[%s6029_s26 + $0x48] sm:$0xff] }
 0x713   : > { %v4021_v55 = vmul.f32 %v3924_v59, %v3829_v29 }
 0x714   : > { %5581 = vmatmul.mubr.msk.f32.gmra.mxu1 %vm1980_vm4, %v4037_v9 }
 0x715   : > { %5555 = vmatmul.mubr.msk.f32.gmra.mxu0 %vm1980_vm4, %v4021_v55 }
 0x79a   : > { %v5535_v22 = vpop.f32.mrf.mxu0 }
 0x79b   : > { %v4429_v57 = vsel %vm1267_vm3, %v5535_v22, 0.0 }
 0x79c   : > { %v4154_v36 = vpop.f32.mrf.mxu0 }
 0x79d   : > { %v4426_v51 = vsel %vm1267_vm3, %v4154_v36, 0.0 }
 0x79e   : > { %v5561_v12 = vpop.f32.mrf.mxu1 }
 0x79f   : > { %v4430_v26 = vsel %vm1267_vm3, %v5561_v12, 0.0  ;;  %v4482_v12 = vld [vmem:[%s6029_s26 + $0x40] sm:$0xff] }
 0x7a0   : > { %v4431_v0 = vadd.f32 %v4430_v26, %v4429_v57  ;;  %v4347_v7 = vpop.f32.mrf.mxu1 }
 0x7a1   : > { %v4427_v52 = vsel %vm1267_vm3, %v4347_v7, 0.0 }
 0x7a2   : > { %v4491_v47 = vadd.f32 %v4475_v21, %v4431_v0  ;;  %v4428_v42 = vadd.f32 %v4427_v52, %v4426_v51 }
 0x7a4   : > { %4507 = vst.msk [vmem:[%s6034_s29 + $0x8] sm:$0xff] %vm1267_vm3, %v4491_v47  ;;  %v4490_v30 = vadd.f32 %v4474_v43, %v4428_v42  ;;  %v5564_v38 = vpop.f32.mrf.mxu1  ;;  %v4485_v43 = vld [vmem:[%s6029_s26 + $0x58] sm:$0xff] }
 0x7a5   : > { %v5538_v35 = vpop.f32.mrf.mxu0  ;;  %v4436_v5 = vsel %vm1267_vm3, %v5564_v38, 0.0 }
 0x7a6   : > { %4506 = vst.msk [vmem:[%s6034_s29] sm:$0xff] %vm1267_vm3, %v4490_v30  ;;  %v4435_v49 = vsel %vm1267_vm3, %v5538_v35, 0.0  ;;  %v4357_v10 = vpop.f32.mrf.mxu1 }
 0x7a7   : > { %v4437_v50 = vadd.f32 %v4436_v5, %v4435_v49  ;;  %v4164_v41 = vpop.f32.mrf.mxu0  ;;  %v4433_v27 = vsel %vm1267_vm3, %v4357_v10, 0.0  ;;  %v4484_v5 = vld [vmem:[%s6029_s26 + $0x50] sm:$0xff] }
 0x7a8   : > { %v4432_v11 = vsel %vm1267_vm3, %v4164_v41, 0.0 }
 0x7a9   : > { %v4493_v56 = vadd.f32 %v4477_v20, %v4437_v50  ;;  %v4434_v1 = vadd.f32 %v4433_v27, %v4432_v11 }
 0x7ab   : > { %4509 = vst.msk [vmem:[%s6034_s29 + $0x18] sm:$0xff] %vm1267_vm3, %v4493_v56  ;;  %v4492_v61 = vadd.f32 %v4476_v44, %v4434_v1  ;;  %v4487_v44 = vld [vmem:[%s6029_s26 + $0x68] sm:$0xff] }
 0x7ac   : > { %v5567_v16 = vpop.f32.mrf.mxu1 }
 0x7ad   : > { %4508 = vst.msk [vmem:[%s6034_s29 + $0x10] sm:$0xff] %vm1267_vm3, %v4492_v61  ;;  %v5541_v6 = vpop.f32.mrf.mxu0  ;;  %v4442_v31 = vsel %vm1267_vm3, %v5567_v16, 0.0 }
 0x7ae   : > { %v4441_v15 = vsel %vm1267_vm3, %v5541_v6, 0.0  ;;  %v4367_v34 = vpop.f32.mrf.mxu1 }
 0x7af   : > { %v4443_v33 = vadd.f32 %v4442_v31, %v4441_v15  ;;  %v4174_v46 = vpop.f32.mrf.mxu0  ;;  %v4439_v25 = vsel %vm1267_vm3, %v4367_v34, 0.0  ;;  %v4486_v31 = vld [vmem:[%s6029_s26 + $0x60] sm:$0xff] }
 0x7b0   : > { %v4438_v63 = vsel %vm1267_vm3, %v4174_v46, 0.0 }
 0x7b1   : > { %v4495_v19 = vadd.f32 %v4479_v48, %v4443_v33  ;;  %v4440_v8 = vadd.f32 %v4439_v25, %v4438_v63 }
 0x7b3   : > { %4511 = vst.msk [vmem:[%s6034_s29 + $0x28] sm:$0xff] %vm1267_vm3, %v4495_v19  ;;  %v4494_v45 = vadd.f32 %v4478_v58, %v4440_v8  ;;  %v4489_v58 = vld [vmem:[%s6029_s26 + $0x78] sm:$0xff] }
 0x7b4   : > { %v5570_v2 = vpop.f32.mrf.mxu1 }
 0x7b5   : > { %4510 = vst.msk [vmem:[%s6034_s29 + $0x20] sm:$0xff] %vm1267_vm3, %v4494_v45  ;;  %v5544_v37 = vpop.f32.mrf.mxu0  ;;  %v4448_v14 = vsel %vm1267_vm3, %v5570_v2, 0.0 }
 0x7b6   : > { %v4447_v13 = vsel %vm1267_vm3, %v5544_v37, 0.0  ;;  %v4377_v24 = vpop.f32.mrf.mxu1 }
 0x7b7   : > { %v4449_v18 = vadd.f32 %v4448_v14, %v4447_v13  ;;  %v4184_v3 = vpop.f32.mrf.mxu0  ;;  %v4445_v62 = vsel %vm1267_vm3, %v4377_v24, 0.0  ;;  %v4488_v14 = vld [vmem:[%s6029_s26 + $0x70] sm:$0xff] }
 0x7b8   : > { %v4444_v60 = vsel %vm1267_vm3, %v4184_v3, 0.0 }
 0x7b9   : > { %v4497_v23 = vadd.f32 %v4481_v54, %v4449_v18  ;;  %v4446_v32 = vadd.f32 %v4445_v62, %v4444_v60 }
 0x7bb   : > { %4513 = vst.msk [vmem:[%s6034_s29 + $0x38] sm:$0xff] %vm1267_vm3, %v4497_v23  ;;  %v4496_v17 = vadd.f32 %v4480_v4, %v4446_v32 }
 0x7bc   : > { %v5573_v28 = vpop.f32.mrf.mxu1 }
 0x7bd   : > { %4512 = vst.msk [vmem:[%s6034_s29 + $0x30] sm:$0xff] %vm1267_vm3, %v4496_v17  ;;  %v5547_v53 = vpop.f32.mrf.mxu0  ;;  %v4454_v39 = vsel %vm1267_vm3, %v5573_v28, 0.0 }
 0x7be   : > { %v4453_v29 = vsel %vm1267_vm3, %v5547_v53, 0.0  ;;  %v4387_v9 = vpop.f32.mrf.mxu1 }
 0x7bf   : > { %v4455_v59 = vadd.f32 %v4454_v39, %v4453_v29  ;;  %v4194_v55 = vpop.f32.mrf.mxu0  ;;  %v4451_v22 = vsel %vm1267_vm3, %v4387_v9, 0.0 }
 0x7c0   : > { %v4450_v36 = vsel %vm1267_vm3, %v4194_v55, 0.0 }
 0x7c1   : > { %v4499_v57 = vadd.f32 %v4483_v40, %v4455_v59  ;;  %v4452_v26 = vadd.f32 %v4451_v22, %v4450_v36 }
 0x7c3   : > { %4515 = vst.msk [vmem:[%s6034_s29 + $0x48] sm:$0xff] %vm1267_vm3, %v4499_v57  ;;  %v4498_v21 = vadd.f32 %v4482_v12, %v4452_v26 }
 0x7c4   : > { %v5576_v0 = vpop.f32.mrf.mxu1 }
 0x7c5   : > { %4514 = vst.msk [vmem:[%s6034_s29 + $0x40] sm:$0xff] %vm1267_vm3, %v4498_v21  ;;  %v5550_v7 = vpop.f32.mrf.mxu0  ;;  %v4460_v51 = vsel %vm1267_vm3, %v5576_v0, 0.0 }
 0x7c6   : > { %v4459_v52 = vsel %vm1267_vm3, %v5550_v7, 0.0  ;;  %v4397_v47 = vpop.f32.mrf.mxu1 }
 0x7c7   : > { %v4461_v42 = vadd.f32 %v4460_v51, %v4459_v52  ;;  %v4204_v30 = vpop.f32.mrf.mxu0  ;;  %v4457_v38 = vsel %vm1267_vm3, %v4397_v47, 0.0 }
 0x7c8   : > { %v4456_v35 = vsel %vm1267_vm3, %v4204_v30, 0.0 }
 0x7c9   : > { %v4501_v49 = vadd.f32 %v4485_v43, %v4461_v42  ;;  %v4458_v20 = vadd.f32 %v4457_v38, %v4456_v35 }
 0x7cb   : > { %4517 = vst.msk [vmem:[%s6034_s29 + $0x58] sm:$0xff] %vm1267_vm3, %v4501_v49  ;;  %v4500_v10 = vadd.f32 %v4484_v5, %v4458_v20 }
 0x7cc   : > { %v5579_v50 = vpop.f32.mrf.mxu1 }
 0x7cd   : > { %4516 = vst.msk [vmem:[%s6034_s29 + $0x50] sm:$0xff] %vm1267_vm3, %v4500_v10  ;;  %v5553_v41 = vpop.f32.mrf.mxu0  ;;  %v4466_v27 = vsel %vm1267_vm3, %v5579_v50, 0.0 }
 0x7ce   : > { %v4465_v11 = vsel %vm1267_vm3, %v5553_v41, 0.0  ;;  %v4407_v56 = vpop.f32.mrf.mxu1 }
 0x7cf   : > { %v4467_v1 = vadd.f32 %v4466_v27, %v4465_v11  ;;  %v4214_v61 = vpop.f32.mrf.mxu0  ;;  %v4463_v16 = vsel %vm1267_vm3, %v4407_v56, 0.0 }
 0x7d0   : > { %v4462_v6 = vsel %vm1267_vm3, %v4214_v61, 0.0 }
 0x7d1   : > { %v4503_v15 = vadd.f32 %v4487_v44, %v4467_v1  ;;  %v4464_v48 = vadd.f32 %v4463_v16, %v4462_v6 }
 0x7d3   : > { %4519 = vst.msk [vmem:[%s6034_s29 + $0x68] sm:$0xff] %vm1267_vm3, %v4503_v15  ;;  %v4502_v34 = vadd.f32 %v4486_v31, %v4464_v48 }
 0x7d4   : > { %v5582_v33 = vpop.f32.mrf.mxu1 }
 0x7d5   : > { %4518 = vst.msk [vmem:[%s6034_s29 + $0x60] sm:$0xff] %vm1267_vm3, %v4502_v34  ;;  %v5556_v46 = vpop.f32.mrf.mxu0  ;;  %v4472_v25 = vsel %vm1267_vm3, %v5582_v33, 0.0 }
 0x7d6   : > { %v4471_v63 = vsel %vm1267_vm3, %v5556_v46, 0.0  ;;  %v4417_v19 = vpop.f32.mrf.mxu1 }
 0x7d7   : > { %v4473_v8 = vadd.f32 %v4472_v25, %v4471_v63  ;;  %v4224_v45 = vpop.f32.mrf.mxu0  ;;  %v4469_v2 = vsel %vm1267_vm3, %v4417_v19, 0.0 }
 0x7d8   : > { %v4468_v37 = vsel %vm1267_vm3, %v4224_v45, 0.0 }
 0x7d9   : > { %v4505_v13 = vadd.f32 %v4489_v58, %v4473_v8  ;;  %v4470_v54 = vadd.f32 %v4469_v2, %v4468_v37 }
 0x7db   : > { %4521 = vst.msk [vmem:[%s6034_s29 + $0x78] sm:$0xff] %vm1267_vm3, %v4505_v13  ;;  %v4504_v24 = vadd.f32 %v4488_v14, %v4470_v54 }
 0x7dd   : > { %4520 = vst.msk [vmem:[%s6034_s29 + $0x70] sm:$0xff] %vm1267_vm3, %v4504_v24 }
 0x7de PF: > { %s19_s15 = sadd.s32 1, %s5925_s15   ;;  %s7904_s11 = sld [smem:[#allocation6_spill]] }
 0x7df   : > { %p16_p11 = scmp.ge.s32.totalorder %s19_s15, 10   ;;  %s7905_s20 = sld [smem:[#allocation7_spill]] }
 0x7e0   : > { %s7906_s21 = sld [smem:[#allocation8_spill]]  ;;  %s7908_s30 = smov %s5913_s12 }
 0x7e1   : > { %s7907_s14 = sld [smem:[#allocation9_spill]]  ;;  %s7909_s10 = smov %s5917_s13 }
 0x7e2   :  { %18 = sbr.rel (!%p16_p11) target bundleno = 4 (0x4), region = 100 }
 0x7e5   : > { %s7910_s12 = smov %s7905_s20 }
 0x7e6   : > { %s7911_s13 = smov %s7906_s21 }

</bundles_post_ra>
